<compile_context>
chip_gen: v7x
topology: tpu7x:2x2x1
jax: 0.10.0
libtpu: 0.0.40
codegen_flags: <defaults>
</compile_context>

<pallas_src>
import jax
import jax.numpy as jnp
import numpy as np
from jax.experimental import pallas as pl
from jax.experimental.pallas import tpu as pltpu

EPS = 1e-5            # PyTorch InstanceNorm2d default eps
KMAX = 7              # largest conv kernel in the module
MAXPAD = (KMAX - 1) // 2


# ----------------------------------------------------------------------------
# Fused Pallas kernel: whole SAModule forward, one sample per grid step
# ----------------------------------------------------------------------------
def _build_samodule_call(N, Cin, H, W, sub, half, compute_dtype):
    P = H * W
    C1 = 3 * half + sub          # stage-1 rows: b2/b3/b4 conv1 (+ b1 conv)
    C2 = 4 * sub                 # final output channels (concat of 4 branches)
    KKC1 = KMAX * KMAX * C1      # im2col contraction length
    PADW = MAXPAD * W + MAXPAD   # flat zero padding for shifted slices
    inv_p = 1.0 / P              # hoisted constant (mean = sum * 1/P)

    def kernel(x_ref, cmask_ref, w1_ref, b1_ref, g1_ref, be1_ref, m1_ref,
               w2_ref, b2_ref, g2_ref, be2_ref, m2_ref, o_ref,
               zp_ref, patch_ref):

        def in_affine_relu(acc, g, b, m):
            # Per-channel InstanceNorm over spatial positions (lane reduce)
            # behind a 0/1 per-channel mask; stats/affine/ReLU in f32.
            mean = jnp.sum(acc, axis=-1, keepdims=True) * inv_p
            cen = acc - mean
            var = jnp.sum(cen * cen, axis=-1, keepdims=True) * inv_p
            normed = cen * jax.lax.rsqrt(var + EPS) * g + b
            return jnp.maximum(jnp.where(m > 0.5, normed, acc), 0.0)

        # ---- stage 1: all four first-layer 1x1 convs in one MXU matmul ----
        x = x_ref[0].astype(compute_dtype)                          # (Cin, P)
        y1 = jnp.dot(w1_ref[...], x, preferred_element_type=jnp.float32)
        y1 = y1 + b1_ref[...]                                       # (C1, P)
        z = in_affine_relu(y1, g1_ref[...], be1_ref[...], m1_ref[...])

        # Flat zero-padded copy of z in VMEM scratch: a shifted slice per tap
        # gives exact 'same' zero padding in the row direction; the column
        # direction is handled by a precomputed 0/1 lane mask per x-offset.
        # (Re-zeroed every step: scratch is per-core and persists, and with a
        # "parallel" grid a core may never see step 0.)
        zp_ref[...] = jnp.zeros((C1, P + 2 * PADW), compute_dtype)
        zp_ref[:, PADW:PADW + P] = z.astype(compute_dtype)

        # ---- stage 2: in-VMEM im2col over the 7x7 union support + ONE dot --
        # Every (49*C1, P) patch row is rewritten each step -> no stale data.
        for ox in range(-MAXPAD, MAXPAD + 1):
            if ox != 0:
                cm = cmask_ref[ox + MAXPAD:ox + MAXPAD + 1, :]      # (1, P)
            for oy in range(-MAXPAD, MAXPAD + 1):
                s = (oy + MAXPAD) * KMAX + (ox + MAXPAD)
                off = oy * W + ox
                sh = zp_ref[:, PADW + off:PADW + off + P]           # (C1, P)
                if ox != 0:
                    sh = sh * cm          # exact 0/1 mask, column validity
                patch_ref[s * C1:(s + 1) * C1, :] = sh

        # One MXU matmul replaces 49 tiny K=10 dots + 49 accumulate adds:
        # (C2, 49*C1) x (49*C1, P) with f32 accumulation inside the MXU.
        acc = jnp.dot(w2_ref[...], patch_ref[...],
                      preferred_element_type=jnp.float32)
        acc = acc + b2_ref[...]
        out = in_affine_relu(acc, g2_ref[...], be2_ref[...], m2_ref[...])
        o_ref[0] = out.astype(o_ref.dtype)        # lane-dense (C2, P) store

    vec = lambda c: pl.BlockSpec((c, 1), lambda n: (0, 0))
    grid_spec = pltpu.PrefetchScalarGridSpec(
        num_scalar_prefetch=0,
        grid=(N,),
        in_specs=[
            pl.BlockSpec((1, Cin, P), lambda n: (n, 0, 0)),           # x
            pl.BlockSpec((KMAX, P), lambda n: (0, 0)),                # col masks
            pl.BlockSpec((C1, Cin), lambda n: (0, 0)),                # w1
            vec(C1), vec(C1), vec(C1), vec(C1),                       # b1,g1,be1,m1
            pl.BlockSpec((C2, KKC1), lambda n: (0, 0)),               # w2 (im2col)
            vec(C2), vec(C2), vec(C2), vec(C2),                       # b2,g2,be2,m2
        ],
        out_specs=pl.BlockSpec((1, C2, P), lambda n: (n, 0, 0)),
        scratch_shapes=[
            pltpu.VMEM((C1, P + 2 * PADW), compute_dtype),            # padded z
            pltpu.VMEM((KKC1, P), compute_dtype),                     # im2col patches
        ],
    )
    return pl.pallas_call(
        kernel,
        out_shape=jax.ShapeDtypeStruct((N, C2, P), jnp.float32),
        grid_spec=grid_spec,
        compiler_params=pltpu.CompilerParams(
            dimension_semantics=("parallel",)),
    )


# ----------------------------------------------------------------------------
# Host-side parameter packing
# ----------------------------------------------------------------------------
def _pack_params(params, Cin, sub, half, compute_dtype):
    f32 = jnp.float32
    col = lambda xs: jnp.concatenate(xs).astype(f32)[:, None]

    # --- stage 1 rows: [b2.conv1, b3.conv1, b4.conv1, b1.conv] ---
    w_rows, b_rows, g_rows, be_rows, m_rows = [], [], [], [], []
    for bi in ("b2", "b3", "b4"):
        w_rows.append(params[bi]["conv1"]["w"].reshape(half, Cin))
        b_rows.append(params[bi]["conv1"]["b"])
        g_rows.append(params[bi]["in1"]["gamma"])
        be_rows.append(params[bi]["in1"]["beta"])
        m_rows.append(jnp.ones((half,), f32))
    w_rows.append(params["b1"]["conv"]["w"].reshape(sub, Cin))
    b_rows.append(params["b1"]["conv"]["b"])
    g_rows.append(jnp.ones((sub,), f32))          # unused (masked off)
    be_rows.append(jnp.zeros((sub,), f32))
    m_rows.append(jnp.zeros((sub,), f32))         # branch1: no InstanceNorm
    w1 = jnp.concatenate(w_rows, axis=0).astype(compute_dtype)      # (C1, Cin)
    b1, g1, be1, m1 = col(b_rows), col(g_rows), col(be_rows), col(m_rows)

    # --- stage 2: per-tap (7x7 union support) block-diagonal weights,
    #     packed as a single (C2, 49*C1) im2col matmul weight. ---
    C1 = 3 * half + sub
    C2 = 4 * sub
    w2 = jnp.zeros((KMAX, KMAX, C2, C1), f32)
    # branch1 identity pass-through at the center tap (double ReLU is a no-op)
    w2 = w2.at[MAXPAD, MAXPAD, 0:sub, 3 * half:3 * half + sub].set(
        jnp.eye(sub, dtype=f32))
    b_rows = [jnp.zeros((sub,), f32)]
    g_rows = [jnp.ones((sub,), f32)]
    be_rows = [jnp.zeros((sub,), f32)]
    m_rows = [jnp.zeros((sub,), f32)]
    for i, (bi, k) in enumerate((("b2", 3), ("b3", 5), ("b4", 7))):
        p = (k - 1) // 2
        wb = jnp.transpose(params[bi]["conv2"]["w"], (2, 3, 0, 1))  # (k,k,sub,half)
        w2 = w2.at[MAXPAD - p:MAXPAD + p + 1, MAXPAD - p:MAXPAD + p + 1,
                   sub * (i + 1):sub * (i + 2),
                   half * i:half * (i + 1)].set(wb)
        b_rows.append(params[bi]["conv2"]["b"])
        g_rows.append(params[bi]["in2"]["gamma"])
        be_rows.append(params[bi]["in2"]["beta"])
        m_rows.append(jnp.ones((sub,), f32))
    # (dy, dx, C2, C1) -> (C2, dy, dx, C1) -> (C2, 49*C1); column index is
    # s*C1 + c1 with s = (dy+3)*7 + (dx+3), matching the kernel's patch rows.
    w2 = jnp.transpose(w2, (2, 0, 1, 3)).reshape(
        C2, KMAX * KMAX * C1).astype(compute_dtype)
    b2, g2, be2, m2 = col(b_rows), col(g_rows), col(be_rows), col(m_rows)
    return (w1, b1, g1, be1, m1, w2, b2, g2, be2, m2)


def _make_column_masks(H, W, compute_dtype):
    """cmask[j, p] = 1 if column (p % W) + (j - MAXPAD) is inside [0, W)."""
    P = H * W
    colv = np.arange(P, dtype=np.int64) % W
    cmask = np.zeros((KMAX, P), np.float32)
    for j in range(KMAX):
        ox = j - MAXPAD
        cmask[j] = ((colv + ox >= 0) & (colv + ox < W)).astype(np.float32)
    return jnp.asarray(cmask, dtype=compute_dtype)


def sa_module_forward(params, x_nchw, compute_dtype=jnp.float32):
    """Pallas implementation.  Input/output in NCHW to match PyTorch."""
    N, Cin, H, W = x_nchw.shape
    sub = params["b1"]["conv"]["w"].shape[0]
    half = params["b2"]["conv1"]["w"].shape[0]
    P = H * W

    packed = _pack_params(params, Cin, sub, half, compute_dtype)
    cmask = _make_column_masks(H, W, compute_dtype)

    call = _build_samodule_call(N, Cin, H, W, sub, half, compute_dtype)
    out = call(x_nchw.reshape(N, Cin, P), cmask, *packed)
    return out.reshape(N, 4 * sub, H, W)


# ----------------------------------------------------------------------------
# Parameter init (reduc=True configuration)
# ----------------------------------------------------------------------------
def init_params(key, in_planes, out_planes):
    sub = out_planes // 4
    half = in_planes // 2

    def conv_p(key, cin, cout, k):
        k1, k2 = jax.random.split(key)
        w = 0.1 * jax.random.normal(k1, (cout, cin, k, k), jnp.float32)
        b = 0.1 * jax.random.normal(k2, (cout,), jnp.float32)
        return {"w": w, "b": b}

    def in_p(key, c):
        k1, k2 = jax.random.split(key)
        return {"gamma": 1.0 + 0.1 * jax.random.normal(k1, (c,), jnp.float32),
                "beta": 0.1 * jax.random.normal(k2, (c,), jnp.float32)}

    keys = jax.random.split(key, 16)
    params = {"b1": {"conv": conv_p(keys[0], in_planes, sub, 1)}}
    for bi, k_sz, base in (("b2", 3, 1), ("b3", 5, 5), ("b4", 7, 9)):
        params[bi] = {
            "conv1": conv_p(keys[base], in_planes, half, 1),
            "in1": in_p(keys[base + 1], half),
            "conv2": conv_p(keys[base + 2], half, sub, k_sz),
            "in2": in_p(keys[base + 3], sub),
        }
    return params


# ----------------------------------------------------------------------------
# Pure-JAX reference (for correctness check)
# ----------------------------------------------------------------------------
def _ref_conv(x_nchw, w, b, gamma, beta, k, apply_in):
    pad = (k - 1) // 2
    y = jax.lax.conv_general_dilated(
        x_nchw, w, (1, 1), [(pad, pad), (pad, pad)],
        dimension_numbers=("NCHW", "OIHW", "NCHW"))
    y = y + b[None, :, None, None]
    if apply_in:
        mean = y.mean(axis=(2, 3), keepdims=True)
        var = ((y - mean) ** 2).mean(axis=(2, 3), keepdims=True)
        y = (y - mean) / jnp.sqrt(var + EPS)
        y = y * gamma[None, :, None, None] + beta[None, :, None, None]
    return jnp.maximum(y, 0.0)


def sa_module_reference(params, x_nchw):
    p = params["b1"]["conv"]
    c1 = p["w"].shape[0]
    out1 = _ref_conv(x_nchw, p["w"], p["b"],
                     jnp.ones((c1,)), jnp.zeros((c1,)), 1, False)
    outs = [out1]
    for bi, k_sz in (("b2", 3), ("b3", 5), ("b4", 7)):
        bp = params[bi]
        y = _ref_conv(x_nchw, bp["conv1"]["w"], bp["conv1"]["b"],
                      bp["in1"]["gamma"], bp["in1"]["beta"], 1, True)
        y = _ref_conv(y, bp["conv2"]["w"], bp["conv2"]["b"],
                      bp["in2"]["gamma"], bp["in2"]["beta"], k_sz, True)
        outs.append(y)
    return jnp.concatenate(outs, axis=1)


# ----------------------------------------------------------------------------
if __name__ == "__main__":
    key = jax.random.PRNGKey(0)
    kx, kp = jax.random.split(key)

    N, in_planes, H, W = 2, 4, 16, 16
    out_planes = 16
    x = jax.random.normal(kx, (N, in_planes, H, W), jnp.float32)   # NCHW
    params = init_params(kp, in_planes, out_planes)

    ref = jax.block_until_ready(sa_module_reference(params, x))

    # f32 MXU operands: strict element-wise check against the f32 reference.
    out_f32 = jax.block_until_ready(sa_module_forward(params, x, jnp.float32))
    assert out_f32.shape == (N, out_planes, H, W), out_f32.shape
    np.testing.assert_allclose(np.asarray(out_f32), np.asarray(ref),
                               atol=2e-3, rtol=2e-3)

    # bf16 MXU operands (full-rate MXU path on v5e/v6e/v7x), f32 accumulation
    # and f32 IN/affine/ReLU: aggregate relative-error check (InstanceNorm
    # amplifies element-wise bf16 rounding, so check the Frobenius ratio).
    out_bf16 = jax.block_until_ready(sa_module_forward(params, x, jnp.bfloat16))
    rel = float(jnp.sqrt(jnp.sum((out_bf16 - ref) ** 2) /
                         (jnp.sum(ref ** 2) + 1e-12)))
    assert rel < 5e-2, f"bf16 path relative error too high: {rel}"

    print("KERNEL_OK")
</pallas_src>

<mosaic_0001>
module attributes {stable_mosaic.version = 11 : i64} {
  func.func @kernel(%arg0: i32, %arg1: memref<1x4x256xf32, #tpu.memory_space<vmem>>, %arg2: memref<7x256xf32, #tpu.memory_space<vmem>>, %arg3: memref<10x4xf32, #tpu.memory_space<vmem>>, %arg4: memref<10x1xf32, #tpu.memory_space<vmem>>, %arg5: memref<10x1xf32, #tpu.memory_space<vmem>>, %arg6: memref<10x1xf32, #tpu.memory_space<vmem>>, %arg7: memref<10x1xf32, #tpu.memory_space<vmem>>, %arg8: memref<16x490xf32, #tpu.memory_space<vmem>>, %arg9: memref<16x1xf32, #tpu.memory_space<vmem>>, %arg10: memref<16x1xf32, #tpu.memory_space<vmem>>, %arg11: memref<16x1xf32, #tpu.memory_space<vmem>>, %arg12: memref<16x1xf32, #tpu.memory_space<vmem>>, %arg13: memref<1x16x256xf32, #tpu.memory_space<vmem>>, %arg14: memref<10x358xf32, #tpu.memory_space<vmem>>, %arg15: memref<490x256xf32, #tpu.memory_space<vmem>>) attributes {dimension_semantics = [#tpu.dimension_semantics<parallel>], iteration_bounds = array<i64: 2>, scalar_prefetch = 0 : i64, scratch_operands = 2 : i64, tpu.core_type = #tpu.core_type<tc>, window_params = [{transform_indices = @transform_0, window_bounds = array<i64: 1, 4, 256>}, {pipeline_mode = #tpu.pipeline_mode<synchronous>, transform_indices = @transform_1, window_bounds = array<i64: 7, 256>}, {pipeline_mode = #tpu.pipeline_mode<synchronous>, transform_indices = @transform_2, window_bounds = array<i64: 10, 4>}, {pipeline_mode = #tpu.pipeline_mode<synchronous>, transform_indices = @transform_3, window_bounds = array<i64: 10, 1>}, {pipeline_mode = #tpu.pipeline_mode<synchronous>, transform_indices = @transform_4, window_bounds = array<i64: 10, 1>}, {pipeline_mode = #tpu.pipeline_mode<synchronous>, transform_indices = @transform_5, window_bounds = array<i64: 10, 1>}, {pipeline_mode = #tpu.pipeline_mode<synchronous>, transform_indices = @transform_6, window_bounds = array<i64: 10, 1>}, {pipeline_mode = #tpu.pipeline_mode<synchronous>, transform_indices = @transform_7, window_bounds = array<i64: 16, 490>}, {pipeline_mode = #tpu.pipeline_mode<synchronous>, transform_indices = @transform_8, window_bounds = array<i64: 16, 1>}, {pipeline_mode = #tpu.pipeline_mode<synchronous>, transform_indices = @transform_9, window_bounds = array<i64: 16, 1>}, {pipeline_mode = #tpu.pipeline_mode<synchronous>, transform_indices = @transform_10, window_bounds = array<i64: 16, 1>}, {pipeline_mode = #tpu.pipeline_mode<synchronous>, transform_indices = @transform_11, window_bounds = array<i64: 16, 1>}, {transform_indices = @transform_12, window_bounds = array<i64: 1, 16, 256>}]} {
    %c0 = arith.constant 0 : index
    %c0_0 = arith.constant 0 : index
    %c0_1 = arith.constant 0 : index
    %0 = vector.load %arg1[%c0, %c0_0, %c0_1] : memref<1x4x256xf32, #tpu.memory_space<vmem>>, vector<1x4x256xf32>
    %1 = vector.shape_cast %0 : vector<1x4x256xf32> to vector<4x256xf32>
    %c0_2 = arith.constant 0 : index
    %c0_3 = arith.constant 0 : index
    %2 = vector.load %arg3[%c0_2, %c0_3] : memref<10x4xf32, #tpu.memory_space<vmem>>, vector<10x4xf32>
    %cst = arith.constant dense<0.000000e+00> : vector<10x256xf32>
    %3 = tpu.matmul %2, %1, %cst {dimension_numbers = #tpu.dot_dimension_numbers<[1], [0], [0], [1], [0, 0, 1, 1], [], []>} : vector<10x4xf32>, vector<4x256xf32>, vector<10x256xf32> -> vector<10x256xf32>
    %c0_4 = arith.constant 0 : index
    %c0_5 = arith.constant 0 : index
    %4 = vector.load %arg4[%c0_4, %c0_5] : memref<10x1xf32, #tpu.memory_space<vmem>>, vector<10x1xf32>
    %5 = vector.broadcast %4 : vector<10x1xf32> to vector<10x256xf32>
    %6 = arith.addf %3, %5 : vector<10x256xf32>
    %c0_6 = arith.constant 0 : index
    %c0_7 = arith.constant 0 : index
    %7 = vector.load %arg5[%c0_6, %c0_7] : memref<10x1xf32, #tpu.memory_space<vmem>>, vector<10x1xf32>
    %c0_8 = arith.constant 0 : index
    %c0_9 = arith.constant 0 : index
    %8 = vector.load %arg6[%c0_8, %c0_9] : memref<10x1xf32, #tpu.memory_space<vmem>>, vector<10x1xf32>
    %c0_10 = arith.constant 0 : index
    %c0_11 = arith.constant 0 : index
    %9 = vector.load %arg7[%c0_10, %c0_11] : memref<10x1xf32, #tpu.memory_space<vmem>>, vector<10x1xf32>
    %cst_12 = arith.constant dense<0.000000e+00> : vector<10xf32>
    %10 = vector.multi_reduction <add>, %6, %cst_12 [1] : vector<10x256xf32> to vector<10xf32>
    %11 = vector.shape_cast %10 : vector<10xf32> to vector<10x1xf32>
    %cst_13 = arith.constant 3.906250e-03 : f32
    %12 = vector.broadcast %cst_13 : f32 to vector<10x1xf32>
    %13 = arith.mulf %11, %12 : vector<10x1xf32>
    %14 = vector.broadcast %13 : vector<10x1xf32> to vector<10x256xf32>
    %15 = arith.subf %6, %14 : vector<10x256xf32>
    %16 = arith.mulf %15, %15 : vector<10x256xf32>
    %cst_14 = arith.constant dense<0.000000e+00> : vector<10xf32>
    %17 = vector.multi_reduction <add>, %16, %cst_14 [1] : vector<10x256xf32> to vector<10xf32>
    %18 = vector.shape_cast %17 : vector<10xf32> to vector<10x1xf32>
    %cst_15 = arith.constant 3.906250e-03 : f32
    %19 = vector.broadcast %cst_15 : f32 to vector<10x1xf32>
    %20 = arith.mulf %18, %19 : vector<10x1xf32>
    %cst_16 = arith.constant 9.99999974E-6 : f32
    %21 = vector.broadcast %cst_16 : f32 to vector<10x1xf32>
    %22 = arith.addf %20, %21 : vector<10x1xf32>
    %23 = math.rsqrt %22 : vector<10x1xf32>
    %24 = vector.broadcast %23 : vector<10x1xf32> to vector<10x256xf32>
    %25 = arith.mulf %15, %24 : vector<10x256xf32>
    %26 = vector.broadcast %7 : vector<10x1xf32> to vector<10x256xf32>
    %27 = arith.mulf %25, %26 : vector<10x256xf32>
    %28 = vector.broadcast %8 : vector<10x1xf32> to vector<10x256xf32>
    %29 = arith.addf %27, %28 : vector<10x256xf32>
    %cst_17 = arith.constant 5.000000e-01 : f32
    %30 = vector.broadcast %cst_17 : f32 to vector<10x1xf32>
    %31 = arith.cmpf ogt, %9, %30 : vector<10x1xf32>
    %32 = vector.shape_cast %31 : vector<10x1xi1> to vector<10x1xi1>
    %33 = vector.broadcast %32 : vector<10x1xi1> to vector<10x256xi1>
    %34 = arith.select %33, %29, %6 : vector<10x256xi1>, vector<10x256xf32>
    %cst_18 = arith.constant 0.000000e+00 : f32
    %35 = vector.broadcast %cst_18 : f32 to vector<10x256xf32>
    %36 = arith.maximumf %34, %35 : vector<10x256xf32>
    %cst_19 = arith.constant 0.000000e+00 : f32
    %37 = vector.broadcast %cst_19 : f32 to vector<10x358xf32>
    %c0_20 = arith.constant 0 : index
    %c0_21 = arith.constant 0 : index
    %38 = vector.load %arg14[%c0_20, %c0_21] : memref<10x358xf32, #tpu.memory_space<vmem>>, vector<10x358xf32>
    tpu.vector_store %arg14[%c0_20, %c0_21], %37 {strides = array<i32>} : memref<10x358xf32, #tpu.memory_space<vmem>>, vector<10x358xf32>,
    %c0_22 = arith.constant 0 : index
    %c51 = arith.constant 51 : index
    %39 = vector.load %arg14[%c0_22, %c51] : memref<10x358xf32, #tpu.memory_space<vmem>>, vector<10x256xf32>
    tpu.vector_store %arg14[%c0_22, %c51], %36 {strides = array<i32>} : memref<10x358xf32, #tpu.memory_space<vmem>>, vector<10x256xf32>,
    %c0_23 = arith.constant 0 : index
    %c0_24 = arith.constant 0 : index
    %40 = vector.load %arg2[%c0_23, %c0_24] : memref<7x256xf32, #tpu.memory_space<vmem>>, vector<1x256xf32>
    %c0_25 = arith.constant 0 : index
    %c0_26 = arith.constant 0 : index
    %41 = vector.load %arg14[%c0_25, %c0_26] : memref<10x358xf32, #tpu.memory_space<vmem>>, vector<10x256xf32>
    %42 = vector.broadcast %40 : vector<1x256xf32> to vector<10x256xf32>
    %43 = arith.mulf %41, %42 : vector<10x256xf32>
    %c0_27 = arith.constant 0 : index
    %c0_28 = arith.constant 0 : index
    %44 = vector.load %arg15[%c0_27, %c0_28] : memref<490x256xf32, #tpu.memory_space<vmem>>, vector<10x256xf32>
    tpu.vector_store %arg15[%c0_27, %c0_28], %43 {strides = array<i32>} : memref<490x256xf32, #tpu.memory_space<vmem>>, vector<10x256xf32>,
    %c0_29 = arith.constant 0 : index
    %c16 = arith.constant 16 : index
    %45 = vector.load %arg14[%c0_29, %c16] : memref<10x358xf32, #tpu.memory_space<vmem>>, vector<10x256xf32>
    %46 = vector.broadcast %40 : vector<1x256xf32> to vector<10x256xf32>
    %47 = arith.mulf %45, %46 : vector<10x256xf32>
    %c70 = arith.constant 70 : index
    %c0_30 = arith.constant 0 : index
    %48 = vector.load %arg15[%c70, %c0_30] : memref<490x256xf32, #tpu.memory_space<vmem>>, vector<10x256xf32>
    tpu.vector_store %arg15[%c70, %c0_30], %47 {strides = array<i32>} : memref<490x256xf32, #tpu.memory_space<vmem>>, vector<10x256xf32>,
    %c0_31 = arith.constant 0 : index
    %c32 = arith.constant 32 : index
    %49 = vector.load %arg14[%c0_31, %c32] : memref<10x358xf32, #tpu.memory_space<vmem>>, vector<10x256xf32>
    %50 = vector.broadcast %40 : vector<1x256xf32> to vector<10x256xf32>
    %51 = arith.mulf %49, %50 : vector<10x256xf32>
    %c140 = arith.constant 140 : index
    %c0_32 = arith.constant 0 : index
    %52 = vector.load %arg15[%c140, %c0_32] : memref<490x256xf32, #tpu.memory_space<vmem>>, vector<10x256xf32>
    tpu.vector_store %arg15[%c140, %c0_32], %51 {strides = array<i32>} : memref<490x256xf32, #tpu.memory_space<vmem>>, vector<10x256xf32>,
    %c0_33 = arith.constant 0 : index
    %c48 = arith.constant 48 : index
    %53 = vector.load %arg14[%c0_33, %c48] : memref<10x358xf32, #tpu.memory_space<vmem>>, vector<10x256xf32>
    %54 = vector.broadcast %40 : vector<1x256xf32> to vector<10x256xf32>
    %55 = arith.mulf %53, %54 : vector<10x256xf32>
    %c210 = arith.constant 210 : index
    %c0_34 = arith.constant 0 : index
    %56 = vector.load %arg15[%c210, %c0_34] : memref<490x256xf32, #tpu.memory_space<vmem>>, vector<10x256xf32>
    tpu.vector_store %arg15[%c210, %c0_34], %55 {strides = array<i32>} : memref<490x256xf32, #tpu.memory_space<vmem>>, vector<10x256xf32>,
    %c0_35 = arith.constant 0 : index
    %c64 = arith.constant 64 : index
    %57 = vector.load %arg14[%c0_35, %c64] : memref<10x358xf32, #tpu.memory_space<vmem>>, vector<10x256xf32>
    %58 = vector.broadcast %40 : vector<1x256xf32> to vector<10x256xf32>
    %59 = arith.mulf %57, %58 : vector<10x256xf32>
    %c280 = arith.constant 280 : index
    %c0_36 = arith.constant 0 : index
    %60 = vector.load %arg15[%c280, %c0_36] : memref<490x256xf32, #tpu.memory_space<vmem>>, vector<10x256xf32>
    tpu.vector_store %arg15[%c280, %c0_36], %59 {strides = array<i32>} : memref<490x256xf32, #tpu.memory_space<vmem>>, vector<10x256xf32>,
    %c0_37 = arith.constant 0 : index
    %c80 = arith.constant 80 : index
    %61 = vector.load %arg14[%c0_37, %c80] : memref<10x358xf32, #tpu.memory_space<vmem>>, vector<10x256xf32>
    %62 = vector.broadcast %40 : vector<1x256xf32> to vector<10x256xf32>
    %63 = arith.mulf %61, %62 : vector<10x256xf32>
    %c350 = arith.constant 350 : index
    %c0_38 = arith.constant 0 : index
    %64 = vector.load %arg15[%c350, %c0_38] : memref<490x256xf32, #tpu.memory_space<vmem>>, vector<10x256xf32>
    tpu.vector_store %arg15[%c350, %c0_38], %63 {strides = array<i32>} : memref<490x256xf32, #tpu.memory_space<vmem>>, vector<10x256xf32>,
    %c0_39 = arith.constant 0 : index
    %c96 = arith.constant 96 : index
    %65 = vector.load %arg14[%c0_39, %c96] : memref<10x358xf32, #tpu.memory_space<vmem>>, vector<10x256xf32>
    %66 = vector.broadcast %40 : vector<1x256xf32> to vector<10x256xf32>
    %67 = arith.mulf %65, %66 : vector<10x256xf32>
    %c420 = arith.constant 420 : index
    %c0_40 = arith.constant 0 : index
    %68 = vector.load %arg15[%c420, %c0_40] : memref<490x256xf32, #tpu.memory_space<vmem>>, vector<10x256xf32>
    tpu.vector_store %arg15[%c420, %c0_40], %67 {strides = array<i32>} : memref<490x256xf32, #tpu.memory_space<vmem>>, vector<10x256xf32>,
    %c1 = arith.constant 1 : index
    %c0_41 = arith.constant 0 : index
    %69 = vector.load %arg2[%c1, %c0_41] : memref<7x256xf32, #tpu.memory_space<vmem>>, vector<1x256xf32>
    %c0_42 = arith.constant 0 : index
    %c1_43 = arith.constant 1 : index
    %70 = vector.load %arg14[%c0_42, %c1_43] : memref<10x358xf32, #tpu.memory_space<vmem>>, vector<10x256xf32>
    %71 = vector.broadcast %69 : vector<1x256xf32> to vector<10x256xf32>
    %72 = arith.mulf %70, %71 : vector<10x256xf32>
    %c10 = arith.constant 10 : index
    %c0_44 = arith.constant 0 : index
    %73 = vector.load %arg15[%c10, %c0_44] : memref<490x256xf32, #tpu.memory_space<vmem>>, vector<10x256xf32>
    tpu.vector_store %arg15[%c10, %c0_44], %72 {strides = array<i32>} : memref<490x256xf32, #tpu.memory_space<vmem>>, vector<10x256xf32>,
    %c0_45 = arith.constant 0 : index
    %c17 = arith.constant 17 : index
    %74 = vector.load %arg14[%c0_45, %c17] : memref<10x358xf32, #tpu.memory_space<vmem>>, vector<10x256xf32>
    %75 = vector.broadcast %69 : vector<1x256xf32> to vector<10x256xf32>
    %76 = arith.mulf %74, %75 : vector<10x256xf32>
    %c80_46 = arith.constant 80 : index
    %c0_47 = arith.constant 0 : index
    %77 = vector.load %arg15[%c80_46, %c0_47] : memref<490x256xf32, #tpu.memory_space<vmem>>, vector<10x256xf32>
    tpu.vector_store %arg15[%c80_46, %c0_47], %76 {strides = array<i32>} : memref<490x256xf32, #tpu.memory_space<vmem>>, vector<10x256xf32>,
    %c0_48 = arith.constant 0 : index
    %c33 = arith.constant 33 : index
    %78 = vector.load %arg14[%c0_48, %c33] : memref<10x358xf32, #tpu.memory_space<vmem>>, vector<10x256xf32>
    %79 = vector.broadcast %69 : vector<1x256xf32> to vector<10x256xf32>
    %80 = arith.mulf %78, %79 : vector<10x256xf32>
    %c150 = arith.constant 150 : index
    %c0_49 = arith.constant 0 : index
    %81 = vector.load %arg15[%c150, %c0_49] : memref<490x256xf32, #tpu.memory_space<vmem>>, vector<10x256xf32>
    tpu.vector_store %arg15[%c150, %c0_49], %80 {strides = array<i32>} : memref<490x256xf32, #tpu.memory_space<vmem>>, vector<10x256xf32>,
    %c0_50 = arith.constant 0 : index
    %c49 = arith.constant 49 : index
    %82 = vector.load %arg14[%c0_50, %c49] : memref<10x358xf32, #tpu.memory_space<vmem>>, vector<10x256xf32>
    %83 = vector.broadcast %69 : vector<1x256xf32> to vector<10x256xf32>
    %84 = arith.mulf %82, %83 : vector<10x256xf32>
    %c220 = arith.constant 220 : index
    %c0_51 = arith.constant 0 : index
    %85 = vector.load %arg15[%c220, %c0_51] : memref<490x256xf32, #tpu.memory_space<vmem>>, vector<10x256xf32>
    tpu.vector_store %arg15[%c220, %c0_51], %84 {strides = array<i32>} : memref<490x256xf32, #tpu.memory_space<vmem>>, vector<10x256xf32>,
    %c0_52 = arith.constant 0 : index
    %c65 = arith.constant 65 : index
    %86 = vector.load %arg14[%c0_52, %c65] : memref<10x358xf32, #tpu.memory_space<vmem>>, vector<10x256xf32>
    %87 = vector.broadcast %69 : vector<1x256xf32> to vector<10x256xf32>
    %88 = arith.mulf %86, %87 : vector<10x256xf32>
    %c290 = arith.constant 290 : index
    %c0_53 = arith.constant 0 : index
    %89 = vector.load %arg15[%c290, %c0_53] : memref<490x256xf32, #tpu.memory_space<vmem>>, vector<10x256xf32>
    tpu.vector_store %arg15[%c290, %c0_53], %88 {strides = array<i32>} : memref<490x256xf32, #tpu.memory_space<vmem>>, vector<10x256xf32>,
    %c0_54 = arith.constant 0 : index
    %c81 = arith.constant 81 : index
    %90 = vector.load %arg14[%c0_54, %c81] : memref<10x358xf32, #tpu.memory_space<vmem>>, vector<10x256xf32>
    %91 = vector.broadcast %69 : vector<1x256xf32> to vector<10x256xf32>
    %92 = arith.mulf %90, %91 : vector<10x256xf32>
    %c360 = arith.constant 360 : index
    %c0_55 = arith.constant 0 : index
    %93 = vector.load %arg15[%c360, %c0_55] : memref<490x256xf32, #tpu.memory_space<vmem>>, vector<10x256xf32>
    tpu.vector_store %arg15[%c360, %c0_55], %92 {strides = array<i32>} : memref<490x256xf32, #tpu.memory_space<vmem>>, vector<10x256xf32>,
    %c0_56 = arith.constant 0 : index
    %c97 = arith.constant 97 : index
    %94 = vector.load %arg14[%c0_56, %c97] : memref<10x358xf32, #tpu.memory_space<vmem>>, vector<10x256xf32>
    %95 = vector.broadcast %69 : vector<1x256xf32> to vector<10x256xf32>
    %96 = arith.mulf %94, %95 : vector<10x256xf32>
    %c430 = arith.constant 430 : index
    %c0_57 = arith.constant 0 : index
    %97 = vector.load %arg15[%c430, %c0_57] : memref<490x256xf32, #tpu.memory_space<vmem>>, vector<10x256xf32>
    tpu.vector_store %arg15[%c430, %c0_57], %96 {strides = array<i32>} : memref<490x256xf32, #tpu.memory_space<vmem>>, vector<10x256xf32>,
    %c2 = arith.constant 2 : index
    %c0_58 = arith.constant 0 : index
    %98 = vector.load %arg2[%c2, %c0_58] : memref<7x256xf32, #tpu.memory_space<vmem>>, vector<1x256xf32>
    %c0_59 = arith.constant 0 : index
    %c2_60 = arith.constant 2 : index
    %99 = vector.load %arg14[%c0_59, %c2_60] : memref<10x358xf32, #tpu.memory_space<vmem>>, vector<10x256xf32>
    %100 = vector.broadcast %98 : vector<1x256xf32> to vector<10x256xf32>
    %101 = arith.mulf %99, %100 : vector<10x256xf32>
    %c20 = arith.constant 20 : index
    %c0_61 = arith.constant 0 : index
    %102 = vector.load %arg15[%c20, %c0_61] : memref<490x256xf32, #tpu.memory_space<vmem>>, vector<10x256xf32>
    tpu.vector_store %arg15[%c20, %c0_61], %101 {strides = array<i32>} : memref<490x256xf32, #tpu.memory_space<vmem>>, vector<10x256xf32>,
    %c0_62 = arith.constant 0 : index
    %c18 = arith.constant 18 : index
    %103 = vector.load %arg14[%c0_62, %c18] : memref<10x358xf32, #tpu.memory_space<vmem>>, vector<10x256xf32>
    %104 = vector.broadcast %98 : vector<1x256xf32> to vector<10x256xf32>
    %105 = arith.mulf %103, %104 : vector<10x256xf32>
    %c90 = arith.constant 90 : index
    %c0_63 = arith.constant 0 : index
    %106 = vector.load %arg15[%c90, %c0_63] : memref<490x256xf32, #tpu.memory_space<vmem>>, vector<10x256xf32>
    tpu.vector_store %arg15[%c90, %c0_63], %105 {strides = array<i32>} : memref<490x256xf32, #tpu.memory_space<vmem>>, vector<10x256xf32>,
    %c0_64 = arith.constant 0 : index
    %c34 = arith.constant 34 : index
    %107 = vector.load %arg14[%c0_64, %c34] : memref<10x358xf32, #tpu.memory_space<vmem>>, vector<10x256xf32>
    %108 = vector.broadcast %98 : vector<1x256xf32> to vector<10x256xf32>
    %109 = arith.mulf %107, %108 : vector<10x256xf32>
    %c160 = arith.constant 160 : index
    %c0_65 = arith.constant 0 : index
    %110 = vector.load %arg15[%c160, %c0_65] : memref<490x256xf32, #tpu.memory_space<vmem>>, vector<10x256xf32>
    tpu.vector_store %arg15[%c160, %c0_65], %109 {strides = array<i32>} : memref<490x256xf32, #tpu.memory_space<vmem>>, vector<10x256xf32>,
    %c0_66 = arith.constant 0 : index
    %c50 = arith.constant 50 : index
    %111 = vector.load %arg14[%c0_66, %c50] : memref<10x358xf32, #tpu.memory_space<vmem>>, vector<10x256xf32>
    %112 = vector.broadcast %98 : vector<1x256xf32> to vector<10x256xf32>
    %113 = arith.mulf %111, %112 : vector<10x256xf32>
    %c230 = arith.constant 230 : index
    %c0_67 = arith.constant 0 : index
    %114 = vector.load %arg15[%c230, %c0_67] : memref<490x256xf32, #tpu.memory_space<vmem>>, vector<10x256xf32>
    tpu.vector_store %arg15[%c230, %c0_67], %113 {strides = array<i32>} : memref<490x256xf32, #tpu.memory_space<vmem>>, vector<10x256xf32>,
    %c0_68 = arith.constant 0 : index
    %c66 = arith.constant 66 : index
    %115 = vector.load %arg14[%c0_68, %c66] : memref<10x358xf32, #tpu.memory_space<vmem>>, vector<10x256xf32>
    %116 = vector.broadcast %98 : vector<1x256xf32> to vector<10x256xf32>
    %117 = arith.mulf %115, %116 : vector<10x256xf32>
    %c300 = arith.constant 300 : index
    %c0_69 = arith.constant 0 : index
    %118 = vector.load %arg15[%c300, %c0_69] : memref<490x256xf32, #tpu.memory_space<vmem>>, vector<10x256xf32>
    tpu.vector_store %arg15[%c300, %c0_69], %117 {strides = array<i32>} : memref<490x256xf32, #tpu.memory_space<vmem>>, vector<10x256xf32>,
    %c0_70 = arith.constant 0 : index
    %c82 = arith.constant 82 : index
    %119 = vector.load %arg14[%c0_70, %c82] : memref<10x358xf32, #tpu.memory_space<vmem>>, vector<10x256xf32>
    %120 = vector.broadcast %98 : vector<1x256xf32> to vector<10x256xf32>
    %121 = arith.mulf %119, %120 : vector<10x256xf32>
    %c370 = arith.constant 370 : index
    %c0_71 = arith.constant 0 : index
    %122 = vector.load %arg15[%c370, %c0_71] : memref<490x256xf32, #tpu.memory_space<vmem>>, vector<10x256xf32>
    tpu.vector_store %arg15[%c370, %c0_71], %121 {strides = array<i32>} : memref<490x256xf32, #tpu.memory_space<vmem>>, vector<10x256xf32>,
    %c0_72 = arith.constant 0 : index
    %c98 = arith.constant 98 : index
    %123 = vector.load %arg14[%c0_72, %c98] : memref<10x358xf32, #tpu.memory_space<vmem>>, vector<10x256xf32>
    %124 = vector.broadcast %98 : vector<1x256xf32> to vector<10x256xf32>
    %125 = arith.mulf %123, %124 : vector<10x256xf32>
    %c440 = arith.constant 440 : index
    %c0_73 = arith.constant 0 : index
    %126 = vector.load %arg15[%c440, %c0_73] : memref<490x256xf32, #tpu.memory_space<vmem>>, vector<10x256xf32>
    tpu.vector_store %arg15[%c440, %c0_73], %125 {strides = array<i32>} : memref<490x256xf32, #tpu.memory_space<vmem>>, vector<10x256xf32>,
    %c0_74 = arith.constant 0 : index
    %c3 = arith.constant 3 : index
    %127 = vector.load %arg14[%c0_74, %c3] : memref<10x358xf32, #tpu.memory_space<vmem>>, vector<10x256xf32>
    %c30 = arith.constant 30 : index
    %c0_75 = arith.constant 0 : index
    %128 = vector.load %arg15[%c30, %c0_75] : memref<490x256xf32, #tpu.memory_space<vmem>>, vector<10x256xf32>
    tpu.vector_store %arg15[%c30, %c0_75], %127 {strides = array<i32>} : memref<490x256xf32, #tpu.memory_space<vmem>>, vector<10x256xf32>,
    %c0_76 = arith.constant 0 : index
    %c19 = arith.constant 19 : index
    %129 = vector.load %arg14[%c0_76, %c19] : memref<10x358xf32, #tpu.memory_space<vmem>>, vector<10x256xf32>
    %c100 = arith.constant 100 : index
    %c0_77 = arith.constant 0 : index
    %130 = vector.load %arg15[%c100, %c0_77] : memref<490x256xf32, #tpu.memory_space<vmem>>, vector<10x256xf32>
    tpu.vector_store %arg15[%c100, %c0_77], %129 {strides = array<i32>} : memref<490x256xf32, #tpu.memory_space<vmem>>, vector<10x256xf32>,
    %c0_78 = arith.constant 0 : index
    %c35 = arith.constant 35 : index
    %131 = vector.load %arg14[%c0_78, %c35] : memref<10x358xf32, #tpu.memory_space<vmem>>, vector<10x256xf32>
    %c170 = arith.constant 170 : index
    %c0_79 = arith.constant 0 : index
    %132 = vector.load %arg15[%c170, %c0_79] : memref<490x256xf32, #tpu.memory_space<vmem>>, vector<10x256xf32>
    tpu.vector_store %arg15[%c170, %c0_79], %131 {strides = array<i32>} : memref<490x256xf32, #tpu.memory_space<vmem>>, vector<10x256xf32>,
    %c0_80 = arith.constant 0 : index
    %c51_81 = arith.constant 51 : index
    %133 = vector.load %arg14[%c0_80, %c51_81] : memref<10x358xf32, #tpu.memory_space<vmem>>, vector<10x256xf32>
    %c240 = arith.constant 240 : index
    %c0_82 = arith.constant 0 : index
    %134 = vector.load %arg15[%c240, %c0_82] : memref<490x256xf32, #tpu.memory_space<vmem>>, vector<10x256xf32>
    tpu.vector_store %arg15[%c240, %c0_82], %133 {strides = array<i32>} : memref<490x256xf32, #tpu.memory_space<vmem>>, vector<10x256xf32>,
    %c0_83 = arith.constant 0 : index
    %c67 = arith.constant 67 : index
    %135 = vector.load %arg14[%c0_83, %c67] : memref<10x358xf32, #tpu.memory_space<vmem>>, vector<10x256xf32>
    %c310 = arith.constant 310 : index
    %c0_84 = arith.constant 0 : index
    %136 = vector.load %arg15[%c310, %c0_84] : memref<490x256xf32, #tpu.memory_space<vmem>>, vector<10x256xf32>
    tpu.vector_store %arg15[%c310, %c0_84], %135 {strides = array<i32>} : memref<490x256xf32, #tpu.memory_space<vmem>>, vector<10x256xf32>,
    %c0_85 = arith.constant 0 : index
    %c83 = arith.constant 83 : index
    %137 = vector.load %arg14[%c0_85, %c83] : memref<10x358xf32, #tpu.memory_space<vmem>>, vector<10x256xf32>
    %c380 = arith.constant 380 : index
    %c0_86 = arith.constant 0 : index
    %138 = vector.load %arg15[%c380, %c0_86] : memref<490x256xf32, #tpu.memory_space<vmem>>, vector<10x256xf32>
    tpu.vector_store %arg15[%c380, %c0_86], %137 {strides = array<i32>} : memref<490x256xf32, #tpu.memory_space<vmem>>, vector<10x256xf32>,
    %c0_87 = arith.constant 0 : index
    %c99 = arith.constant 99 : index
    %139 = vector.load %arg14[%c0_87, %c99] : memref<10x358xf32, #tpu.memory_space<vmem>>, vector<10x256xf32>
    %c450 = arith.constant 450 : index
    %c0_88 = arith.constant 0 : index
    %140 = vector.load %arg15[%c450, %c0_88] : memref<490x256xf32, #tpu.memory_space<vmem>>, vector<10x256xf32>
    tpu.vector_store %arg15[%c450, %c0_88], %139 {strides = array<i32>} : memref<490x256xf32, #tpu.memory_space<vmem>>, vector<10x256xf32>,
    %c4 = arith.constant 4 : index
    %c0_89 = arith.constant 0 : index
    %141 = vector.load %arg2[%c4, %c0_89] : memref<7x256xf32, #tpu.memory_space<vmem>>, vector<1x256xf32>
    %c0_90 = arith.constant 0 : index
    %c4_91 = arith.constant 4 : index
    %142 = vector.load %arg14[%c0_90, %c4_91] : memref<10x358xf32, #tpu.memory_space<vmem>>, vector<10x256xf32>
    %143 = vector.broadcast %141 : vector<1x256xf32> to vector<10x256xf32>
    %144 = arith.mulf %142, %143 : vector<10x256xf32>
    %c40 = arith.constant 40 : index
    %c0_92 = arith.constant 0 : index
    %145 = vector.load %arg15[%c40, %c0_92] : memref<490x256xf32, #tpu.memory_space<vmem>>, vector<10x256xf32>
    tpu.vector_store %arg15[%c40, %c0_92], %144 {strides = array<i32>} : memref<490x256xf32, #tpu.memory_space<vmem>>, vector<10x256xf32>,
    %c0_93 = arith.constant 0 : index
    %c20_94 = arith.constant 20 : index
    %146 = vector.load %arg14[%c0_93, %c20_94] : memref<10x358xf32, #tpu.memory_space<vmem>>, vector<10x256xf32>
    %147 = vector.broadcast %141 : vector<1x256xf32> to vector<10x256xf32>
    %148 = arith.mulf %146, %147 : vector<10x256xf32>
    %c110 = arith.constant 110 : index
    %c0_95 = arith.constant 0 : index
    %149 = vector.load %arg15[%c110, %c0_95] : memref<490x256xf32, #tpu.memory_space<vmem>>, vector<10x256xf32>
    tpu.vector_store %arg15[%c110, %c0_95], %148 {strides = array<i32>} : memref<490x256xf32, #tpu.memory_space<vmem>>, vector<10x256xf32>,
    %c0_96 = arith.constant 0 : index
    %c36 = arith.constant 36 : index
    %150 = vector.load %arg14[%c0_96, %c36] : memref<10x358xf32, #tpu.memory_space<vmem>>, vector<10x256xf32>
    %151 = vector.broadcast %141 : vector<1x256xf32> to vector<10x256xf32>
    %152 = arith.mulf %150, %151 : vector<10x256xf32>
    %c180 = arith.constant 180 : index
    %c0_97 = arith.constant 0 : index
    %153 = vector.load %arg15[%c180, %c0_97] : memref<490x256xf32, #tpu.memory_space<vmem>>, vector<10x256xf32>
    tpu.vector_store %arg15[%c180, %c0_97], %152 {strides = array<i32>} : memref<490x256xf32, #tpu.memory_space<vmem>>, vector<10x256xf32>,
    %c0_98 = arith.constant 0 : index
    %c52 = arith.constant 52 : index
    %154 = vector.load %arg14[%c0_98, %c52] : memref<10x358xf32, #tpu.memory_space<vmem>>, vector<10x256xf32>
    %155 = vector.broadcast %141 : vector<1x256xf32> to vector<10x256xf32>
    %156 = arith.mulf %154, %155 : vector<10x256xf32>
    %c250 = arith.constant 250 : index
    %c0_99 = arith.constant 0 : index
    %157 = vector.load %arg15[%c250, %c0_99] : memref<490x256xf32, #tpu.memory_space<vmem>>, vector<10x256xf32>
    tpu.vector_store %arg15[%c250, %c0_99], %156 {strides = array<i32>} : memref<490x256xf32, #tpu.memory_space<vmem>>, vector<10x256xf32>,
    %c0_100 = arith.constant 0 : index
    %c68 = arith.constant 68 : index
    %158 = vector.load %arg14[%c0_100, %c68] : memref<10x358xf32, #tpu.memory_space<vmem>>, vector<10x256xf32>
    %159 = vector.broadcast %141 : vector<1x256xf32> to vector<10x256xf32>
    %160 = arith.mulf %158, %159 : vector<10x256xf32>
    %c320 = arith.constant 320 : index
    %c0_101 = arith.constant 0 : index
    %161 = vector.load %arg15[%c320, %c0_101] : memref<490x256xf32, #tpu.memory_space<vmem>>, vector<10x256xf32>
    tpu.vector_store %arg15[%c320, %c0_101], %160 {strides = array<i32>} : memref<490x256xf32, #tpu.memory_space<vmem>>, vector<10x256xf32>,
    %c0_102 = arith.constant 0 : index
    %c84 = arith.constant 84 : index
    %162 = vector.load %arg14[%c0_102, %c84] : memref<10x358xf32, #tpu.memory_space<vmem>>, vector<10x256xf32>
    %163 = vector.broadcast %141 : vector<1x256xf32> to vector<10x256xf32>
    %164 = arith.mulf %162, %163 : vector<10x256xf32>
    %c390 = arith.constant 390 : index
    %c0_103 = arith.constant 0 : index
    %165 = vector.load %arg15[%c390, %c0_103] : memref<490x256xf32, #tpu.memory_space<vmem>>, vector<10x256xf32>
    tpu.vector_store %arg15[%c390, %c0_103], %164 {strides = array<i32>} : memref<490x256xf32, #tpu.memory_space<vmem>>, vector<10x256xf32>,
    %c0_104 = arith.constant 0 : index
    %c100_105 = arith.constant 100 : index
    %166 = vector.load %arg14[%c0_104, %c100_105] : memref<10x358xf32, #tpu.memory_space<vmem>>, vector<10x256xf32>
    %167 = vector.broadcast %141 : vector<1x256xf32> to vector<10x256xf32>
    %168 = arith.mulf %166, %167 : vector<10x256xf32>
    %c460 = arith.constant 460 : index
    %c0_106 = arith.constant 0 : index
    %169 = vector.load %arg15[%c460, %c0_106] : memref<490x256xf32, #tpu.memory_space<vmem>>, vector<10x256xf32>
    tpu.vector_store %arg15[%c460, %c0_106], %168 {strides = array<i32>} : memref<490x256xf32, #tpu.memory_space<vmem>>, vector<10x256xf32>,
    %c5 = arith.constant 5 : index
    %c0_107 = arith.constant 0 : index
    %170 = vector.load %arg2[%c5, %c0_107] : memref<7x256xf32, #tpu.memory_space<vmem>>, vector<1x256xf32>
    %c0_108 = arith.constant 0 : index
    %c5_109 = arith.constant 5 : index
    %171 = vector.load %arg14[%c0_108, %c5_109] : memref<10x358xf32, #tpu.memory_space<vmem>>, vector<10x256xf32>
    %172 = vector.broadcast %170 : vector<1x256xf32> to vector<10x256xf32>
    %173 = arith.mulf %171, %172 : vector<10x256xf32>
    %c50_110 = arith.constant 50 : index
    %c0_111 = arith.constant 0 : index
    %174 = vector.load %arg15[%c50_110, %c0_111] : memref<490x256xf32, #tpu.memory_space<vmem>>, vector<10x256xf32>
    tpu.vector_store %arg15[%c50_110, %c0_111], %173 {strides = array<i32>} : memref<490x256xf32, #tpu.memory_space<vmem>>, vector<10x256xf32>,
    %c0_112 = arith.constant 0 : index
    %c21 = arith.constant 21 : index
    %175 = vector.load %arg14[%c0_112, %c21] : memref<10x358xf32, #tpu.memory_space<vmem>>, vector<10x256xf32>
    %176 = vector.broadcast %170 : vector<1x256xf32> to vector<10x256xf32>
    %177 = arith.mulf %175, %176 : vector<10x256xf32>
    %c120 = arith.constant 120 : index
    %c0_113 = arith.constant 0 : index
    %178 = vector.load %arg15[%c120, %c0_113] : memref<490x256xf32, #tpu.memory_space<vmem>>, vector<10x256xf32>
    tpu.vector_store %arg15[%c120, %c0_113], %177 {strides = array<i32>} : memref<490x256xf32, #tpu.memory_space<vmem>>, vector<10x256xf32>,
    %c0_114 = arith.constant 0 : index
    %c37 = arith.constant 37 : index
    %179 = vector.load %arg14[%c0_114, %c37] : memref<10x358xf32, #tpu.memory_space<vmem>>, vector<10x256xf32>
    %180 = vector.broadcast %170 : vector<1x256xf32> to vector<10x256xf32>
    %181 = arith.mulf %179, %180 : vector<10x256xf32>
    %c190 = arith.constant 190 : index
    %c0_115 = arith.constant 0 : index
    %182 = vector.load %arg15[%c190, %c0_115] : memref<490x256xf32, #tpu.memory_space<vmem>>, vector<10x256xf32>
    tpu.vector_store %arg15[%c190, %c0_115], %181 {strides = array<i32>} : memref<490x256xf32, #tpu.memory_space<vmem>>, vector<10x256xf32>,
    %c0_116 = arith.constant 0 : index
    %c53 = arith.constant 53 : index
    %183 = vector.load %arg14[%c0_116, %c53] : memref<10x358xf32, #tpu.memory_space<vmem>>, vector<10x256xf32>
    %184 = vector.broadcast %170 : vector<1x256xf32> to vector<10x256xf32>
    %185 = arith.mulf %183, %184 : vector<10x256xf32>
    %c260 = arith.constant 260 : index
    %c0_117 = arith.constant 0 : index
    %186 = vector.load %arg15[%c260, %c0_117] : memref<490x256xf32, #tpu.memory_space<vmem>>, vector<10x256xf32>
    tpu.vector_store %arg15[%c260, %c0_117], %185 {strides = array<i32>} : memref<490x256xf32, #tpu.memory_space<vmem>>, vector<10x256xf32>,
    %c0_118 = arith.constant 0 : index
    %c69 = arith.constant 69 : index
    %187 = vector.load %arg14[%c0_118, %c69] : memref<10x358xf32, #tpu.memory_space<vmem>>, vector<10x256xf32>
    %188 = vector.broadcast %170 : vector<1x256xf32> to vector<10x256xf32>
    %189 = arith.mulf %187, %188 : vector<10x256xf32>
    %c330 = arith.constant 330 : index
    %c0_119 = arith.constant 0 : index
    %190 = vector.load %arg15[%c330, %c0_119] : memref<490x256xf32, #tpu.memory_space<vmem>>, vector<10x256xf32>
    tpu.vector_store %arg15[%c330, %c0_119], %189 {strides = array<i32>} : memref<490x256xf32, #tpu.memory_space<vmem>>, vector<10x256xf32>,
    %c0_120 = arith.constant 0 : index
    %c85 = arith.constant 85 : index
    %191 = vector.load %arg14[%c0_120, %c85] : memref<10x358xf32, #tpu.memory_space<vmem>>, vector<10x256xf32>
    %192 = vector.broadcast %170 : vector<1x256xf32> to vector<10x256xf32>
    %193 = arith.mulf %191, %192 : vector<10x256xf32>
    %c400 = arith.constant 400 : index
    %c0_121 = arith.constant 0 : index
    %194 = vector.load %arg15[%c400, %c0_121] : memref<490x256xf32, #tpu.memory_space<vmem>>, vector<10x256xf32>
    tpu.vector_store %arg15[%c400, %c0_121], %193 {strides = array<i32>} : memref<490x256xf32, #tpu.memory_space<vmem>>, vector<10x256xf32>,
    %c0_122 = arith.constant 0 : index
    %c101 = arith.constant 101 : index
    %195 = vector.load %arg14[%c0_122, %c101] : memref<10x358xf32, #tpu.memory_space<vmem>>, vector<10x256xf32>
    %196 = vector.broadcast %170 : vector<1x256xf32> to vector<10x256xf32>
    %197 = arith.mulf %195, %196 : vector<10x256xf32>
    %c470 = arith.constant 470 : index
    %c0_123 = arith.constant 0 : index
    %198 = vector.load %arg15[%c470, %c0_123] : memref<490x256xf32, #tpu.memory_space<vmem>>, vector<10x256xf32>
    tpu.vector_store %arg15[%c470, %c0_123], %197 {strides = array<i32>} : memref<490x256xf32, #tpu.memory_space<vmem>>, vector<10x256xf32>,
    %c6 = arith.constant 6 : index
    %c0_124 = arith.constant 0 : index
    %199 = vector.load %arg2[%c6, %c0_124] : memref<7x256xf32, #tpu.memory_space<vmem>>, vector<1x256xf32>
    %c0_125 = arith.constant 0 : index
    %c6_126 = arith.constant 6 : index
    %200 = vector.load %arg14[%c0_125, %c6_126] : memref<10x358xf32, #tpu.memory_space<vmem>>, vector<10x256xf32>
    %201 = vector.broadcast %199 : vector<1x256xf32> to vector<10x256xf32>
    %202 = arith.mulf %200, %201 : vector<10x256xf32>
    %c60 = arith.constant 60 : index
    %c0_127 = arith.constant 0 : index
    %203 = vector.load %arg15[%c60, %c0_127] : memref<490x256xf32, #tpu.memory_space<vmem>>, vector<10x256xf32>
    tpu.vector_store %arg15[%c60, %c0_127], %202 {strides = array<i32>} : memref<490x256xf32, #tpu.memory_space<vmem>>, vector<10x256xf32>,
    %c0_128 = arith.constant 0 : index
    %c22 = arith.constant 22 : index
    %204 = vector.load %arg14[%c0_128, %c22] : memref<10x358xf32, #tpu.memory_space<vmem>>, vector<10x256xf32>
    %205 = vector.broadcast %199 : vector<1x256xf32> to vector<10x256xf32>
    %206 = arith.mulf %204, %205 : vector<10x256xf32>
    %c130 = arith.constant 130 : index
    %c0_129 = arith.constant 0 : index
    %207 = vector.load %arg15[%c130, %c0_129] : memref<490x256xf32, #tpu.memory_space<vmem>>, vector<10x256xf32>
    tpu.vector_store %arg15[%c130, %c0_129], %206 {strides = array<i32>} : memref<490x256xf32, #tpu.memory_space<vmem>>, vector<10x256xf32>,
    %c0_130 = arith.constant 0 : index
    %c38 = arith.constant 38 : index
    %208 = vector.load %arg14[%c0_130, %c38] : memref<10x358xf32, #tpu.memory_space<vmem>>, vector<10x256xf32>
    %209 = vector.broadcast %199 : vector<1x256xf32> to vector<10x256xf32>
    %210 = arith.mulf %208, %209 : vector<10x256xf32>
    %c200 = arith.constant 200 : index
    %c0_131 = arith.constant 0 : index
    %211 = vector.load %arg15[%c200, %c0_131] : memref<490x256xf32, #tpu.memory_space<vmem>>, vector<10x256xf32>
    tpu.vector_store %arg15[%c200, %c0_131], %210 {strides = array<i32>} : memref<490x256xf32, #tpu.memory_space<vmem>>, vector<10x256xf32>,
    %c0_132 = arith.constant 0 : index
    %c54 = arith.constant 54 : index
    %212 = vector.load %arg14[%c0_132, %c54] : memref<10x358xf32, #tpu.memory_space<vmem>>, vector<10x256xf32>
    %213 = vector.broadcast %199 : vector<1x256xf32> to vector<10x256xf32>
    %214 = arith.mulf %212, %213 : vector<10x256xf32>
    %c270 = arith.constant 270 : index
    %c0_133 = arith.constant 0 : index
    %215 = vector.load %arg15[%c270, %c0_133] : memref<490x256xf32, #tpu.memory_space<vmem>>, vector<10x256xf32>
    tpu.vector_store %arg15[%c270, %c0_133], %214 {strides = array<i32>} : memref<490x256xf32, #tpu.memory_space<vmem>>, vector<10x256xf32>,
    %c0_134 = arith.constant 0 : index
    %c70_135 = arith.constant 70 : index
    %216 = vector.load %arg14[%c0_134, %c70_135] : memref<10x358xf32, #tpu.memory_space<vmem>>, vector<10x256xf32>
    %217 = vector.broadcast %199 : vector<1x256xf32> to vector<10x256xf32>
    %218 = arith.mulf %216, %217 : vector<10x256xf32>
    %c340 = arith.constant 340 : index
    %c0_136 = arith.constant 0 : index
    %219 = vector.load %arg15[%c340, %c0_136] : memref<490x256xf32, #tpu.memory_space<vmem>>, vector<10x256xf32>
    tpu.vector_store %arg15[%c340, %c0_136], %218 {strides = array<i32>} : memref<490x256xf32, #tpu.memory_space<vmem>>, vector<10x256xf32>,
    %c0_137 = arith.constant 0 : index
    %c86 = arith.constant 86 : index
    %220 = vector.load %arg14[%c0_137, %c86] : memref<10x358xf32, #tpu.memory_space<vmem>>, vector<10x256xf32>
    %221 = vector.broadcast %199 : vector<1x256xf32> to vector<10x256xf32>
    %222 = arith.mulf %220, %221 : vector<10x256xf32>
    %c410 = arith.constant 410 : index
    %c0_138 = arith.constant 0 : index
    %223 = vector.load %arg15[%c410, %c0_138] : memref<490x256xf32, #tpu.memory_space<vmem>>, vector<10x256xf32>
    tpu.vector_store %arg15[%c410, %c0_138], %222 {strides = array<i32>} : memref<490x256xf32, #tpu.memory_space<vmem>>, vector<10x256xf32>,
    %c0_139 = arith.constant 0 : index
    %c102 = arith.constant 102 : index
    %224 = vector.load %arg14[%c0_139, %c102] : memref<10x358xf32, #tpu.memory_space<vmem>>, vector<10x256xf32>
    %225 = vector.broadcast %199 : vector<1x256xf32> to vector<10x256xf32>
    %226 = arith.mulf %224, %225 : vector<10x256xf32>
    %c480 = arith.constant 480 : index
    %c0_140 = arith.constant 0 : index
    %227 = vector.load %arg15[%c480, %c0_140] : memref<490x256xf32, #tpu.memory_space<vmem>>, vector<10x256xf32>
    tpu.vector_store %arg15[%c480, %c0_140], %226 {strides = array<i32>} : memref<490x256xf32, #tpu.memory_space<vmem>>, vector<10x256xf32>,
    %c0_141 = arith.constant 0 : index
    %c0_142 = arith.constant 0 : index
    %228 = vector.load %arg8[%c0_141, %c0_142] : memref<16x490xf32, #tpu.memory_space<vmem>>, vector<16x490xf32>
    %c0_143 = arith.constant 0 : index
    %c0_144 = arith.constant 0 : index
    %229 = vector.load %arg15[%c0_143, %c0_144] : memref<490x256xf32, #tpu.memory_space<vmem>>, vector<490x256xf32>
    %cst_145 = arith.constant dense<0.000000e+00> : vector<16x256xf32>
    %230 = tpu.matmul %228, %229, %cst_145 {dimension_numbers = #tpu.dot_dimension_numbers<[1], [0], [0], [1], [0, 0, 1, 1], [], []>} : vector<16x490xf32>, vector<490x256xf32>, vector<16x256xf32> -> vector<16x256xf32>
    %c0_146 = arith.constant 0 : index
    %c0_147 = arith.constant 0 : index
    %231 = vector.load %arg9[%c0_146, %c0_147] : memref<16x1xf32, #tpu.memory_space<vmem>>, vector<16x1xf32>
    %232 = vector.broadcast %231 : vector<16x1xf32> to vector<16x256xf32>
    %233 = arith.addf %230, %232 : vector<16x256xf32>
    %c0_148 = arith.constant 0 : index
    %c0_149 = arith.constant 0 : index
    %234 = vector.load %arg10[%c0_148, %c0_149] : memref<16x1xf32, #tpu.memory_space<vmem>>, vector<16x1xf32>
    %c0_150 = arith.constant 0 : index
    %c0_151 = arith.constant 0 : index
    %235 = vector.load %arg11[%c0_150, %c0_151] : memref<16x1xf32, #tpu.memory_space<vmem>>, vector<16x1xf32>
    %c0_152 = arith.constant 0 : index
    %c0_153 = arith.constant 0 : index
    %236 = vector.load %arg12[%c0_152, %c0_153] : memref<16x1xf32, #tpu.memory_space<vmem>>, vector<16x1xf32>
    %cst_154 = arith.constant dense<0.000000e+00> : vector<16xf32>
    %237 = vector.multi_reduction <add>, %233, %cst_154 [1] : vector<16x256xf32> to vector<16xf32>
    %238 = vector.shape_cast %237 : vector<16xf32> to vector<16x1xf32>
    %cst_155 = arith.constant 3.906250e-03 : f32
    %239 = vector.broadcast %cst_155 : f32 to vector<16x1xf32>
    %240 = arith.mulf %238, %239 : vector<16x1xf32>
    %241 = vector.broadcast %240 : vector<16x1xf32> to vector<16x256xf32>
    %242 = arith.subf %233, %241 : vector<16x256xf32>
    %243 = arith.mulf %242, %242 : vector<16x256xf32>
    %cst_156 = arith.constant dense<0.000000e+00> : vector<16xf32>
    %244 = vector.multi_reduction <add>, %243, %cst_156 [1] : vector<16x256xf32> to vector<16xf32>
    %245 = vector.shape_cast %244 : vector<16xf32> to vector<16x1xf32>
    %cst_157 = arith.constant 3.906250e-03 : f32
    %246 = vector.broadcast %cst_157 : f32 to vector<16x1xf32>
    %247 = arith.mulf %245, %246 : vector<16x1xf32>
    %cst_158 = arith.constant 9.99999974E-6 : f32
    %248 = vector.broadcast %cst_158 : f32 to vector<16x1xf32>
    %249 = arith.addf %247, %248 : vector<16x1xf32>
    %250 = math.rsqrt %249 : vector<16x1xf32>
    %251 = vector.broadcast %250 : vector<16x1xf32> to vector<16x256xf32>
    %252 = arith.mulf %242, %251 : vector<16x256xf32>
    %253 = vector.broadcast %234 : vector<16x1xf32> to vector<16x256xf32>
    %254 = arith.mulf %252, %253 : vector<16x256xf32>
    %255 = vector.broadcast %235 : vector<16x1xf32> to vector<16x256xf32>
    %256 = arith.addf %254, %255 : vector<16x256xf32>
    %cst_159 = arith.constant 5.000000e-01 : f32
    %257 = vector.broadcast %cst_159 : f32 to vector<16x1xf32>
    %258 = arith.cmpf ogt, %236, %257 : vector<16x1xf32>
    %259 = vector.shape_cast %258 : vector<16x1xi1> to vector<16x1xi1>
    %260 = vector.broadcast %259 : vector<16x1xi1> to vector<16x256xi1>
    %261 = arith.select %260, %256, %233 : vector<16x256xi1>, vector<16x256xf32>
    %cst_160 = arith.constant 0.000000e+00 : f32
    %262 = vector.broadcast %cst_160 : f32 to vector<16x256xf32>
    %263 = arith.maximumf %261, %262 : vector<16x256xf32>
    %c0_161 = arith.constant 0 : index
    %c0_162 = arith.constant 0 : index
    %c0_163 = arith.constant 0 : index
    %264 = vector.load %arg13[%c0_161, %c0_162, %c0_163] : memref<1x16x256xf32, #tpu.memory_space<vmem>>, vector<1x16x256xf32>
    %265 = vector.shape_cast %264 : vector<1x16x256xf32> to vector<16x256xf32>
    %266 = vector.shape_cast %263 : vector<16x256xf32> to vector<1x16x256xf32>
    tpu.vector_store %arg13[%c0_161, %c0_162, %c0_163], %266 {strides = array<i32>} : memref<1x16x256xf32, #tpu.memory_space<vmem>>, vector<1x16x256xf32>,
    return
  }
  func.func @transform_0(%arg0: i32) -> (i32, i32, i32) {
    %c0_i32 = arith.constant 0 : i32
    %c0_i32_0 = arith.constant 0 : i32
    %c0_i32_1 = arith.constant 0 : i32
    return %arg0, %c0_i32, %c0_i32_0 : i32, i32, i32
  }
  func.func @transform_1(%arg0: i32) -> (i32, i32) {
    %c0_i32 = arith.constant 0 : i32
    %c0_i32_0 = arith.constant 0 : i32
    %c0_i32_1 = arith.constant 0 : i32
    return %c0_i32, %c0_i32_0 : i32, i32
  }
  func.func @transform_2(%arg0: i32) -> (i32, i32) {
    %c0_i32 = arith.constant 0 : i32
    %c0_i32_0 = arith.constant 0 : i32
    %c0_i32_1 = arith.constant 0 : i32
    return %c0_i32, %c0_i32_0 : i32, i32
  }
  func.func @transform_3(%arg0: i32) -> (i32, i32) {
    %c0_i32 = arith.constant 0 : i32
    %c0_i32_0 = arith.constant 0 : i32
    %c0_i32_1 = arith.constant 0 : i32
    return %c0_i32, %c0_i32_0 : i32, i32
  }
  func.func @transform_4(%arg0: i32) -> (i32, i32) {
    %c0_i32 = arith.constant 0 : i32
    %c0_i32_0 = arith.constant 0 : i32
    %c0_i32_1 = arith.constant 0 : i32
    return %c0_i32, %c0_i32_0 : i32, i32
  }
  func.func @transform_5(%arg0: i32) -> (i32, i32) {
    %c0_i32 = arith.constant 0 : i32
    %c0_i32_0 = arith.constant 0 : i32
    %c0_i32_1 = arith.constant 0 : i32
    return %c0_i32, %c0_i32_0 : i32, i32
  }
  func.func @transform_6(%arg0: i32) -> (i32, i32) {
    %c0_i32 = arith.constant 0 : i32
    %c0_i32_0 = arith.constant 0 : i32
    %c0_i32_1 = arith.constant 0 : i32
    return %c0_i32, %c0_i32_0 : i32, i32
  }
  func.func @transform_7(%arg0: i32) -> (i32, i32) {
    %c0_i32 = arith.constant 0 : i32
    %c0_i32_0 = arith.constant 0 : i32
    %c0_i32_1 = arith.constant 0 : i32
    return %c0_i32, %c0_i32_0 : i32, i32
  }
  func.func @transform_8(%arg0: i32) -> (i32, i32) {
    %c0_i32 = arith.constant 0 : i32
    %c0_i32_0 = arith.constant 0 : i32
    %c0_i32_1 = arith.constant 0 : i32
    return %c0_i32, %c0_i32_0 : i32, i32
  }
  func.func @transform_9(%arg0: i32) -> (i32, i32) {
    %c0_i32 = arith.constant 0 : i32
    %c0_i32_0 = arith.constant 0 : i32
    %c0_i32_1 = arith.constant 0 : i32
    return %c0_i32, %c0_i32_0 : i32, i32
  }
  func.func @transform_10(%arg0: i32) -> (i32, i32) {
    %c0_i32 = arith.constant 0 : i32
    %c0_i32_0 = arith.constant 0 : i32
    %c0_i32_1 = arith.constant 0 : i32
    return %c0_i32, %c0_i32_0 : i32, i32
  }
  func.func @transform_11(%arg0: i32) -> (i32, i32) {
    %c0_i32 = arith.constant 0 : i32
    %c0_i32_0 = arith.constant 0 : i32
    %c0_i32_1 = arith.constant 0 : i32
    return %c0_i32, %c0_i32_0 : i32, i32
  }
  func.func @transform_12(%arg0: i32) -> (i32, i32, i32) {
    %c0_i32 = arith.constant 0 : i32
    %c0_i32_0 = arith.constant 0 : i32
    %c0_i32_1 = arith.constant 0 : i32
    return %arg0, %c0_i32, %c0_i32_0 : i32, i32, i32
  }
}

</mosaic_0001>

<bundles_post_ra>
// kernel: tpu_custom_call.1
= control target key start
LH: loop header
LB: loop body
LE: loop exit
PB: predicated region body
PF: predicated region fallthrough
CT: control target
= control target key end

     0   :  { %s7267_s0 = inlined_call_operand.vmem [shape: f32[2,4,256], index: 0, kind: input, shape index: {}]   ;;  %s7268_s1 = inlined_call_operand.vmem [shape: f32[7,256], index: 1, kind: input, shape index: {}]   ;;  %s7269_s2 = inlined_call_operand.vmem [shape: f32[10,4], index: 2, kind: input, shape index: {}]   ;;  %s7270_s3 = inlined_call_operand.vmem [shape: f32[10,1], index: 3, kind: input, shape index: {}]   ;;  %s7271_s4 = inlined_call_operand.vmem [shape: f32[10,1], index: 4, kind: input, shape index: {}]   ;;  %s7272_s5 = inlined_call_operand.vmem [shape: f32[10,1], index: 5, kind: input, shape index: {}]   ;;  %s7273_s6 = inlined_call_operand.vmem [shape: f32[10,1], index: 6, kind: input, shape index: {}]   ;;  %s7274_s7 = inlined_call_operand.vmem [shape: f32[16,490], index: 7, kind: input, shape index: {}]   ;;  %s7275_s8 = inlined_call_operand.vmem [shape: f32[16,1], index: 8, kind: input, shape index: {}]   ;;  %s7276_s9 = inlined_call_operand.vmem [shape: f32[16,1], index: 9, kind: input, shape index: {}]   ;;  %s7277_s10 = inlined_call_operand.vmem [shape: f32[16,1], index: 10, kind: input, shape index: {}]   ;;  %s7278_s11 = inlined_call_operand.vmem [shape: f32[16,1], index: 11, kind: input, shape index: {}]   ;;  %s7279_s12 = inlined_call_operand.hbm [shape: f32[2,16,256], index: 12, kind: output, shape index: {}]  }
   0x1   :  { %7710 = sst [smem:[#allocation186_spill]] %s7267_s0 }
   0x2   :  { %7711 = sst [smem:[#allocation187_spill]] %s7268_s1 }
   0x3   :  { %7712 = sst [smem:[#allocation188_spill]] %s7269_s2 }
   0x4   :  { %7713 = sst [smem:[#allocation189_spill]] %s7270_s3 }
   0x5   :  { %7714 = sst [smem:[#allocation190_spill]] %s7271_s4 }
   0x6   :  { %7715 = sst [smem:[#allocation191_spill]] %s7272_s5 }
   0x7   :  { %7716 = sst [smem:[#allocation192_spill]] %s7273_s6 }
   0x8   :  { %7717 = sst [smem:[#allocation193_spill]] %s7277_s10 }
   0x9   :  { %7718 = sst [smem:[#allocation194_spill]] %s7278_s11 }
   0xa   :  { %7719 = sst [smem:[#allocation195_spill]] %s7279_s12 }
   0xb   :  { %17 = vsyncpa [#allocation5], 0 }
   0xc   :  { %19 = vsyncpa [#allocation5 + $0x1], 0  ;;  %s4440_s21 = smov 0   ;;  %s4442_s22 = smov 0  }
   0xd   :  { %s4444_s23 = smov 0   ;;  %s4446_s24 = smov 0  }
   0xe LB: > { %7720 = sst [smem:[#allocation7_spill]] %s4271_s21  ;;  %s4461_s25 = sadd.s32 4294967295, %s4283_s24   ;;  %s4283_s24 = sphi %s4446_s24, %s8357_s24   ;;  %s4279_s23 = sphi %s4444_s23, %s8360_s23   ;;  %s4275_s22 = sphi %s4442_s22, %s8359_s22   ;;  %s4271_s21 = sphi %s4440_s21, %s8358_s21  }
   0xf   : > { %7721 = sst [smem:[#allocation8_spill]] %s4275_s22  ;;  %s3911_s26 = sadd.s32 4294967294, %s4283_s24  }
  0x10   : > { %7722 = sst [smem:[#allocation9_spill]] %s4279_s23  ;;  %s4465_s27 = sadd.s32 1, %s4283_s24  }
  0x11   : > { %7723 = sst [smem:[#allocation10_spill]] %s4283_s24  ;;  %s289_s28 = sadd.s32 1, %s4279_s23 }
  0x12   : > { %7724 = sst [smem:[#allocation11_spill]] %s4461_s25  ;;  %s286_s29 = ssub.s32 %s4283_s24, %s4465_s27 }
  0x13   : > { %7725 = sst [smem:[#allocation12_spill]] %s4465_s27  ;;  %p299_p0 = scmp.ne.s32.totalorder %s4279_s23, %s4275_s22 }
  0x14   : > { %p287_p1 = scmp.eq.s32.totalorder %s286_s29, 0  ;;  %p300_p2 = scmp.eq.s32.totalorder %s4461_s25, 1 }
  0x15   : > { %p305_p3 = scmp.ne.s32.totalorder %s4275_s22, %s4271_s21  ;;  %p306_p4 = scmp.eq.s32.totalorder %s3911_s26, 1 }
  0x16   : > { %s4476_s30 = scalar_select %p287_p1, %s4279_s23, %s289_s28  }
  0x17   : > { %p4478_p5 = por %p300_p2, %p299_p0  ;;  %p4482_p6 = por %p306_p4, %p305_p3 }
  0x18   : > { %7726 = sst [smem:[#allocation13_spill]] %s4476_s30  ;;  %p3914_p7 = scmp.ge.s32.totalorder %s4283_s24, 1 }
  0x19   : > { %s7727_s13 = scalar_select %p4478_p5, 1, 0 }
  0x1a   : > { %s7729_s14 = scalar_select %p4482_p6, 1, 0 }
  0x1b   : > { %7728 = sst [smem:[#allocation14_spill]] %s7727_s13  ;;  %p365_p8 = scmp.lt.s32.totalorder %s4283_s24, 3 }
  0x1c   : > { %7730 = sst [smem:[#allocation15_spill]] %s7729_s14 }
  0x1d   : > { %p366_p9 = pnand %p3914_p7, %p365_p8 }
  0x1f   : > { %369 = sbr.rel (%p366_p9) target bundleno = 1972 (0x7b4), region = 68 }
  0x26   : > { %s7731_s4 = sld [smem:[#allocation190_spill]]  ;;  %p407_p10 = scmp.lt.s32.totalorder %s4461_s25, 1  ;;  %v7288_v1 = vmov 0   ;;  %vm615_vm0 = vcmask 828416   ;;  %v653_v3 = vlaneseq  ;;  %v4286_v4 = vmov 0.0  }
  0x27   : > { %4201 = vset.pattern.permute.xlu1 %v7288_v1  ;;  %4200 = vset.pattern.permute.xlu0 %v7288_v1  ;;  %s7732_s3 = sld [smem:[#allocation189_spill]]  ;;  %609 = vst [vmem:[#allocation2] sm:$0xff] %v4286_v4  ;;  %613 = vst [vmem:[#allocation2 + $0x18] sm:$0x3] %v4286_v4  ;;  %s7733_s6 = sld [smem:[#allocation192_spill]]  ;;  %vm436_vm2 = vcmask 1043456  }
  0x28   : > { %s408_s19 = scalar_select %p407_p10, %s4461_s25, 1  ;;  %505 = vmatprep.mubr.f32.mxu0 %v4286_v4  ;;  %614 = vst [vmem:[#allocation2 + $0x20] sm:$0x3] %v4286_v4  ;;  %616 = vst.msk [vmem:[#allocation2 + $0x28] sm:$0x3] %vm615_vm0, %v4286_v4  ;;  %v654_v8 = vshrl.u32 %v653_v3, 7 }
  0x29   : > { %s7734_s0 = sld [smem:[#allocation186_spill]]  ;;  %s7735_s5 = sld [smem:[#allocation191_spill]]  ;;  %vm429_vm3 = vcmask 31744   ;;  %vm7584_vm5 = vcmask 834560   ;;  %vm527_vm6 = vcmask 1041408   ;;  %vm638_vm9 = vcmask 1047960  }
  0x2a   : > { %s3936_s15 = sshll.u32 %s408_s19, 3  ;;  %v4518_v12 = vsub.s32 0, %v654_v8  ;;  %s7736_s2 = sld [smem:[#allocation188_spill]]  ;;  %v4543_v20 = vsub.s32 1, %v654_v8  ;;  %612 = vst.msk [vmem:[#allocation2 + $0x10] sm:$0xff] %vm7584_vm5, %v4286_v4  ;;  %vm629_vm10 = vcmask 416768  }
  0x2b   : > { %s7737_s1 = sld [smem:[#allocation187_spill]]  ;;  %s7281_s26 = smov 16   ;;  %vm642_vm11 = vcmask 1041816   ;;  %vm645_vm12 = vcmask 410624   ;;  %vm698_vm13 = vcmask 1045504   ;;  %vm1393_vm14 = vcmask 793600  }
  0x2c   : > { %v518_v0 = vld [vmem:[%s7731_s4] sm:$0xff]  ;;  %v519_v6 = vld [vmem:[%s7731_s4 + $0x8] sm:$0x3]  ;;  %s7282_s19 = smov 32   ;;  %s7284_s28 = smov 48   ;;  %vm3211_vm15 = vcmask 441344  }
  0x2d   : > { %v415_v2 = vld [vmem:[%s7732_s3] sm:$0xff]  ;;  %563 = vperm.xlu1 %4201, %v518_v0   ;;  %v416_v7 = vld [vmem:[%s7732_s3 + $0x8] sm:$0x3]  ;;  %s7446_s30 = smov 64   ;;  %s7364_s16 = smov 96   ;;  %vm2249_vm0 = vcmask 162816  }
  0x2e   : > { %v522_v5 = vld [vmem:[%s7733_s6] sm:$0xff]  ;;  %419 = vperm.xlu0 %4200, %v415_v2   ;;  %v523_v15 = vld [vmem:[%s7733_s6 + $0x8] sm:$0x3]  ;;  %s4293_s17 = smov 1   ;;  %s4294_s18 = smov 17   ;;  %vm7592_vm5 = vcmask 498688  }
  0x2f   : > { %s411_s23 = scalar_lea.vmem %s7734_s0, %s3936_s15  ;;  %vm589_vm1 = vcmp.gt.f32.partialorder %v522_v5, 0.5  ;;  %v520_v11 = vld [vmem:[%s7735_s5] sm:$0xff]  ;;  %v521_v17 = vld [vmem:[%s7735_s5 + $0x8] sm:$0x3]  ;;  %vm590_vm4 = vcmp.gt.f32.partialorder %v523_v15, 0.5  ;;  %s4295_s20 = smov 33  }
  0x30   : > { %v412_v9 = vld [vmem:[%s411_s23] sm:$0xff]  ;;  %v591_v14 = vsel %vm589_vm1, 1, %v7288_v1  ;;  %v414_v19 = vld [vmem:[%s7736_s2 + $0x8] sm:$0x3]  ;;  %v592_v21 = vsel %vm590_vm4, 1, %v7288_v1  ;;  %s7286_s23 = smov 80  }
  0x31   : > { %568 = vperm.xlu1 %4201, %v519_v6   ;;  %v428_v10 = vcombine.high %v412_v9, %v412_v9  ;;  %v413_v13 = vld [vmem:[%s7736_s2] sm:$0xff]  ;;  %s4296_s29 = smov 49   ;;  %s4297_s15 = smov 65   ;;  %vm2484_vm1 = vcmask 687104   ;;  %vm2730_vm4 = vcmask 302080  }
  0x32   : > { %424 = vperm.xlu0 %4200, %v416_v7   ;;  %v647_v16 = vld [vmem:[%s7737_s1] ss:$8 sm:$0x3]  ;;  %v3922_v23 = vld [vmem:[%s7737_s1 + $0x1] ss:$8 sm:$0x3] }
  0x33   : > { %3918 = vmatprep.subr.msk.mxu0 %vm436_vm2, %v428_v10  ;;  %v4537_v18 = vrot.slane %v647_v16, %v4518_v12  ;;  %v4550_v22 = vrot.slane %v647_v16, %v4543_v20  ;;  %v1036_v24 = vrot.slane %v3922_v23, %v4518_v12  ;;  %v1040_v25 = vrot.slane %v3922_v23, %v4543_v20  ;;  %v3923_v26 = vld [vmem:[%s7737_s1 + $0x2] ss:$8 sm:$0x3]  ;;  %v3924_v28 = vld [vmem:[%s7737_s1 + $0x4] ss:$8 sm:$0x3] }
  0x34   : > { %3919 = vmatpush1.msk.msra.mxu0 %vm436_vm2, %v412_v9  ;;  %v4583_v27 = vrot.slane %v3923_v26, %v4518_v12  ;;  %v4590_v29 = vrot.slane %v3924_v28, %v4543_v20  ;;  %v4593_v30 = vrot.slane %v3923_v26, %v4543_v20  ;;  %v3925_v31 = vld [vmem:[%s7737_s1 + $0x5] ss:$8 sm:$0x3]  ;;  %v4604_v33 = vrot.slane %v3924_v28, %v4518_v12  ;;  %v3926_v34 = vld [vmem:[%s7737_s1 + $0x6] ss:$8 sm:$0x3] }
  0x35   : > { %577 = vperm.xlu1 %4201, %v520_v11   ;;  %3920 = vmatmul.mubr.msk.f32.vlgmr.msra.gmra.mrb[0].mxu0 %vm429_vm3, %v413_v13  ;;  %v4600_v32 = vrot.slane %v3925_v31, %v4543_v20  ;;  %v4611_v35 = vrot.slane %v3926_v34, %v4543_v20  ;;  %v4615_v36 = vrot.slane %v3925_v31, %v4518_v12  ;;  %s7617_s0 = smov 91   ;;  %s7970_s1 = smov 42  }
  0x36   : > { %594 = vperm.xlu0 %4200, %v591_v14   ;;  %511 = vmatprep.mubr.f32.mxu0 %v4286_v4  ;;  %v4620_v37 = vrot.slane %v3926_v34, %v4518_v12  ;;  %s7971_s2 = smov 47   ;;  %s7974_s3 = smov 92  }
  0x37   : > { %s7977_s4 = smov 91   ;;  %s7978_s5 = smov 124  }
  0x38   : > { %s7981_s6 = smov 123   ;;  %s7984_s27 = smov 122  }
  0x39   : > { %582 = vperm.xlu1 %4201, %v521_v17   ;;  %3921 = vmatmul.mubr.msk.f32.gmra.mrb[2].mxu0 %vm429_vm3, %v414_v19  ;;  %s7988_s14 = smov 43   ;;  %s7989_s21 = smov 106  }
  0x3a   : > { %677 = vrot.lane.b32.xlu0 %v4537_v18, %s7281_s26  ;;  %s7993_s24 = smov 44   ;;  %s7996_s12 = smov 125  }
  0x3b   : > { %s7999_s13 = smov 61   ;;  %s8002_s25 = smov 109  }
  0x3c   : > { %s8005_s22 = smov 45   ;;  %s8008_s11 = smov 94  }
  0x3d   : > { %597 = vperm.xlu1 %4201, %v592_v21   ;;  %s8012_s10 = smov 93  }
  0x3e   : > { %739 = vrot.lane.b32.xlu0 %v4537_v18, %s7282_s19 }
  0x41   : > { %679 = vrot.lane.b32.xlu1 %v4550_v22, %s7281_s26  ;;  %s4298_s26 = smov 81  }
  0x42   : > { %800 = vrot.lane.b32.xlu0 %v4537_v18, %s7284_s28 }
  0x45   : > { %741 = vrot.lane.b32.xlu1 %v4550_v22, %s7282_s19  ;;  %s4306_s19 = smov 6  }
  0x46   : > { %861 = vrot.lane.b32.xlu0 %v4537_v18, %s7446_s30 }
  0x49   : > { %802 = vrot.lane.b32.xlu1 %v4550_v22, %s7284_s28  ;;  %s4307_s28 = smov 66  }
  0x4a   : > { %912 = vrot.lane.b32.xlu0 %v4537_v18, %s7286_s23 }
  0x4d   : > { %863 = vrot.lane.b32.xlu1 %v4550_v22, %s7446_s30 }
  0x4e   : > { %971 = vrot.lane.b32.xlu0 %v4537_v18, %s7364_s16 }
  0x51   : > { %914 = vrot.lane.b32.xlu1 %v4550_v22, %s7286_s23  ;;  %s4299_s23 = smov 97  }
  0x52   : > { %1041 = vrot.lane.b32.xlu0 %v1036_v24, %s4293_s17 }
  0x55   : > { %973 = vrot.lane.b32.xlu1 %v4550_v22, %s7364_s16  ;;  %s7390_s16 = smov 93  }
  0x56   : > { %1102 = vrot.lane.b32.xlu0 %v1036_v24, %s4294_s18 }
  0x59   : > { %1043 = vrot.lane.b32.xlu1 %v1040_v25, %s4293_s17  ;;  %s4303_s17 = smov 54  }
  0x5a   : > { %1154 = vrot.lane.b32.xlu0 %v1036_v24, %s4295_s20 }
  0x5d   : > { %1104 = vrot.lane.b32.xlu1 %v1040_v25, %s4294_s18  ;;  %s4304_s18 = smov 4  }
  0x5e   : > { %1215 = vrot.lane.b32.xlu0 %v1036_v24, %s4296_s29 }
  0x61   : > { %1156 = vrot.lane.b32.xlu1 %v1040_v25, %s4295_s20  ;;  %s4300_s20 = smov 2  }
  0x62   : > { %1276 = vrot.lane.b32.xlu0 %v1036_v24, %s4297_s15 }
  0x65   : > { %1217 = vrot.lane.b32.xlu1 %v1040_v25, %s4296_s29  ;;  %s4301_s29 = smov 52  }
  0x66   : > { %1337 = vrot.lane.b32.xlu0 %v1036_v24, %s4298_s26 }
  0x69   : > { %1278 = vrot.lane.b32.xlu1 %v1040_v25, %s4297_s15  ;;  %s4302_s15 = smov 53  }
  0x6a   : > { %1389 = vrot.lane.b32.xlu0 %v1036_v24, %s4299_s23 }
  0x6d   : > { %1339 = vrot.lane.b32.xlu1 %v1040_v25, %s4298_s26  ;;  %s4309_s26 = smov 69  }
  0x6e   : > { %1461 = vrot.lane.b32.xlu0 %v4583_v27, %s4300_s20 }
  0x71   : > { %1391 = vrot.lane.b32.xlu1 %v1040_v25, %s4299_s23  ;;  %s4310_s23 = smov 20  }
  0x72   : > { %2369 = vrot.lane.b32.xlu0 %v4590_v29, %s4301_s29 }
  0x75   : > { %1463 = vrot.lane.b32.xlu1 %v4593_v30, %s4300_s20  ;;  %s4305_s20 = smov 5  }
  0x76   : > { %2789 = vrot.lane.b32.xlu0 %v4600_v32, %s4302_s15 }
  0x79   : > { %2367 = vrot.lane.b32.xlu1 %v4604_v33, %s4301_s29  ;;  %s4308_s29 = smov 18  }
  0x7a   : > { %3209 = vrot.lane.b32.xlu0 %v4611_v35, %s4303_s17 }
  0x7d   : > { %2787 = vrot.lane.b32.xlu1 %v4615_v36, %s4302_s15  ;;  %s4311_s15 = smov 68  }
  0x7e   : > { %2196 = vrot.lane.b32.xlu0 %v4590_v29, %s4304_s18 }
  0x81   : > { %3207 = vrot.lane.b32.xlu1 %v4620_v37, %s4303_s17  ;;  %s4312_s17 = smov 70  }
  0x82   : > { %2615 = vrot.lane.b32.xlu0 %v4600_v32, %s4305_s20 }
  0x85   : > { %2194 = vrot.lane.b32.xlu1 %v4604_v33, %s4304_s18  ;;  %s4313_s18 = smov 21  }
  0x86   : > { %3035 = vrot.lane.b32.xlu0 %v4611_v35, %s4306_s19 }
  0x89   : > { %2613 = vrot.lane.b32.xlu1 %v4615_v36, %s4305_s20  ;;  %s4314_s20 = smov 22  }
  0x8a   : > { %1698 = vrot.lane.b32.xlu0 %v4593_v30, %s4307_s28 }
  0x8d   : > { %3033 = vrot.lane.b32.xlu1 %v4620_v37, %s4306_s19  ;;  %s4315_s19 = smov 82  }
  0x8e   : > { %1524 = vrot.lane.b32.xlu0 %v4593_v30, %s4308_s29 }
  0x91   : > { %1696 = vrot.lane.b32.xlu1 %v4583_v27, %s4307_s28  ;;  %s4316_s28 = smov 84  }
  0x92   : > { %2850 = vrot.lane.b32.xlu0 %v4600_v32, %s4309_s26 }
  0x95   : > { %1522 = vrot.lane.b32.xlu1 %v4583_v27, %s4308_s29  ;;  %s4317_s29 = smov 34  }
  0x96   : > { %2247 = vrot.lane.b32.xlu0 %v4590_v29, %s4310_s23 }
  0x99   : > { %2848 = vrot.lane.b32.xlu1 %v4615_v36, %s4309_s26  ;;  %s4318_s26 = smov 86  }
  0x9a   : > { %2430 = vrot.lane.b32.xlu0 %v4590_v29, %s4311_s15 }
  0x9d   : > { %2245 = vrot.lane.b32.xlu1 %v4604_v33, %s4310_s23  ;;  %s4319_s23 = smov 36  }
  0x9e   : > { %3270 = vrot.lane.b32.xlu0 %v4611_v35, %s4312_s17 }
  0xa1   : > { %2428 = vrot.lane.b32.xlu1 %v4604_v33, %s4311_s15  ;;  %s4320_s15 = smov 37  }
  0xa2   : > { %2676 = vrot.lane.b32.xlu0 %v4600_v32, %s4313_s18 }
  0xa5   : > { %3268 = vrot.lane.b32.xlu1 %v4620_v37, %s4312_s17  ;;  %s4321_s17 = smov 85  }
  0xa6   : > { %3096 = vrot.lane.b32.xlu0 %v4611_v35, %s4314_s20 }
  0xa9   : > { %2674 = vrot.lane.b32.xlu1 %v4615_v36, %s4313_s18  ;;  %s4322_s18 = smov 38  }
  0xaa   : > { %1759 = vrot.lane.b32.xlu0 %v4593_v30, %s4315_s19 }
  0xac   : > { %v4645_v38 = vpop.permute.xlu1 %563 }
  0xad   : > { %3094 = vrot.lane.b32.xlu1 %v4620_v37, %s4314_s20  ;;  %s4323_s20 = smov 98   ;;  %v420_v59 = vpop.permute.xlu0 %419 }
  0xae   : > { %2482 = vrot.lane.b32.xlu0 %v4590_v29, %s4316_s28 }
  0xb0   : > { %v4649_v39 = vpop.permute.xlu1 %568 }
  0xb1   : > { %1757 = vrot.lane.b32.xlu1 %v4583_v27, %s4315_s19  ;;  %s4324_s19 = smov 100   ;;  %v425_v2 = vpop.permute.xlu0 %424 }
  0xb2   : > { %1585 = vrot.lane.b32.xlu0 %v4593_v30, %s4317_s29 }
  0xb4   : > { %v4653_v40 = vpop.permute.xlu1 %577 }
  0xb5   : > { %2480 = vrot.lane.b32.xlu1 %v4604_v33, %s4316_s28  ;;  %s4325_s28 = smov 50   ;;  %v4745_v19 = vpop.permute.xlu0 %594 }
  0xb6   : > { %3331 = vrot.lane.b32.xlu0 %v4611_v35, %s4318_s26  ;;  %vm599_vm7 = vcmp.eq.s32.totalorder %v4745_v19, 1 }
  0xb8   : > { %v4657_v41 = vpop.permute.xlu1 %582 }
  0xb9   : > { %1583 = vrot.lane.b32.xlu1 %v4583_v27, %s4317_s29  ;;  %s4326_s29 = smov 101   ;;  %v4749_v21 = vpop.permute.xlu0 %677 }
  0xba   : > { %2308 = vrot.lane.b32.xlu0 %v4590_v29, %s4319_s23  ;;  %7758 = vst [vmem:[#allocation36_spill] sm:$0xff] %v4749_v21 }
  0xbc   : > { %v4661_v42 = vpop.permute.xlu1 %597 }
  0xbd   : > { %3329 = vrot.lane.b32.xlu1 %v4620_v37, %s4318_s26  ;;  %s4327_s26 = smov 102   ;;  %v4753_v24 = vpop.permute.xlu0 %739  ;;  %vm600_vm8 = vcmp.eq.s32.totalorder %v4661_v42, 1 }
  0xbe   : > { %2728 = vrot.lane.b32.xlu0 %v4600_v32, %s4320_s15  ;;  %7760 = vst [vmem:[#allocation38_spill] sm:$0xff] %v4753_v24 }
  0xc0   : > { %v4665_v43 = vpop.permute.xlu1 %679 }
  0xc1   : > { %7738 = vst [vmem:[#allocation16_spill] sm:$0xff] %v4665_v43  ;;  %2306 = vrot.lane.b32.xlu1 %v4604_v33, %s4319_s23  ;;  %v4757_v26 = vpop.permute.xlu0 %800  ;;  %s4328_s23 = smov 51  }
  0xc2   : > { %2911 = vrot.lane.b32.xlu0 %v4600_v32, %s4321_s17  ;;  %7762 = vst [vmem:[#allocation40_spill] sm:$0xff] %v4757_v26 }
  0xc4   : > { %v4669_v44 = vpop.permute.xlu1 %741 }
  0xc5   : > { %7739 = vst [vmem:[#allocation17_spill] sm:$0xff] %v4669_v44  ;;  %2726 = vrot.lane.b32.xlu1 %v4615_v36, %s4320_s15  ;;  %v4761_v28 = vpop.permute.xlu0 %861  ;;  %s7402_s15 = smov 125  }
  0xc6   : > { %3157 = vrot.lane.b32.xlu0 %v4611_v35, %s4322_s18 }
  0xc8   : > { %v4673_v45 = vpop.permute.xlu1 %802 }
  0xc9   : > { %7740 = vst [vmem:[#allocation18_spill] sm:$0xff] %v4673_v45  ;;  %2909 = vrot.lane.b32.xlu1 %v4615_v36, %s4321_s17  ;;  %s7395_s17 = smov 61  }
  0xca   : > { %1820 = vrot.lane.b32.xlu0 %v4593_v30, %s4323_s20 }
  0xcc   : > { %v4677_v46 = vpop.permute.xlu1 %863 }
  0xcd   : > { %3155 = vrot.lane.b32.xlu1 %v4620_v37, %s4322_s18  ;;  %s7437_s18 = smov 111  }
  0xce   : > { %2543 = vrot.lane.b32.xlu0 %v4590_v29, %s4324_s19 }
  0xd0   : > { %v4681_v47 = vpop.permute.xlu1 %914 }
  0xd1   : > { %7741 = vst [vmem:[#allocation19_spill] sm:$0xff] %v4681_v47  ;;  %1818 = vrot.lane.b32.xlu1 %v4583_v27, %s4323_s20  ;;  %s7368_s20 = smov 60  }
  0xd2   : > { %1637 = vrot.lane.b32.xlu0 %v4593_v30, %s4325_s28  ;;  %v4765_v30 = vpop.permute.xlu0 %912 }
  0xd3   : > { %7765 = vst [vmem:[#allocation43_spill] sm:$0xff] %v4765_v30 }
  0xd4   : > { %v4685_v48 = vpop.permute.xlu1 %973 }
  0xd5   : > { %7742 = vst [vmem:[#allocation20_spill] sm:$0xff] %v4685_v48  ;;  %2541 = vrot.lane.b32.xlu1 %v4604_v33, %s4324_s19  ;;  %s7429_s19 = smov 47  }
  0xd6   : > { %2963 = vrot.lane.b32.xlu0 %v4600_v32, %s4326_s29  ;;  %v4769_v32 = vpop.permute.xlu0 %971 }
  0xd7   : > { %7767 = vst [vmem:[#allocation45_spill] sm:$0xff] %v4769_v32 }
  0xd8   : > { %v4689_v49 = vpop.permute.xlu1 %1043 }
  0xd9   : > { %7743 = vst [vmem:[#allocation21_spill] sm:$0xff] %v4689_v49  ;;  %1635 = vrot.lane.b32.xlu1 %v4583_v27, %s4325_s28  ;;  %s7366_s28 = smov 107  }
  0xda   : > { %3392 = vrot.lane.b32.xlu0 %v4611_v35, %s4327_s26  ;;  %v4773_v34 = vpop.permute.xlu0 %1041 }
  0xdb   : > { %7769 = vst [vmem:[#allocation47_spill] sm:$0xff] %v4773_v34 }
  0xdc   : > { %v4693_v50 = vpop.permute.xlu1 %1104 }
  0xdd   : > { %2961 = vrot.lane.b32.xlu1 %v4615_v36, %s4326_s29  ;;  %s7378_s29 = smov 45  }
  0xde   : > { %v4777_v36 = vpop.permute.xlu0 %1102 }
  0xe0   : > { %v4696_v51 = vpop.permute.xlu1 %1156 }
  0xe1   : > { %7744 = vst [vmem:[#allocation22_spill] sm:$0xff] %v4696_v51  ;;  %3390 = vrot.lane.b32.xlu1 %v4620_v37, %s4327_s26  ;;  %s7421_s26 = smov 124  }
  0xe4   : > { %v4701_v52 = vpop.permute.xlu1 %1217 }
  0xe5   : > { %7745 = vst [vmem:[#allocation23_spill] sm:$0xff] %v4701_v52 }
  0xe8   : > { %v4703_v53 = vpop.permute.xlu1 %1278 }
  0xe9   : > { %7746 = vst [vmem:[#allocation24_spill] sm:$0xff] %v4703_v53 }
  0xec   : > { %v4705_v54 = vpop.permute.xlu1 %1339 }
  0xf0   : > { %v4707_v55 = vpop.permute.xlu1 %1391 }
  0xf1   : > { %7747 = vst [vmem:[#allocation25_spill] sm:$0xff] %v4707_v55 }
  0xf4   : > { %v4709_v56 = vpop.permute.xlu1 %1463 }
  0xf5   : > { %7748 = vst [vmem:[#allocation26_spill] sm:$0xff] %v4709_v56 }
  0xf8   : > { %v4711_v57 = vpop.permute.xlu1 %2367 }
  0xf9   : > { %7749 = vst [vmem:[#allocation27_spill] sm:$0xff] %v4711_v57 }
  0xfc   : > { %v4713_v58 = vpop.permute.xlu1 %2787 }
  0xfd   : > { %7750 = vst [vmem:[#allocation28_spill] sm:$0xff] %v4713_v58 }
 0x100   : > { %v4715_v60 = vpop.permute.xlu1 %3207 }
 0x101   : > { %7751 = vst [vmem:[#allocation29_spill] sm:$0xff] %v4715_v60 }
 0x104   : > { %v4723_v5 = vpop.permute.xlu1 %2194 }
 0x105   : > { %7752 = vst [vmem:[#allocation30_spill] sm:$0xff] %v4723_v5 }
 0x108   : > { %v507_v61 = vpop.f32.mrb[0].mxu0  ;;  %v4733_v12 = vpop.permute.xlu1 %2613 }
 0x109   : > { %v4717_v62 = vadd.f32 %v507_v61, %v420_v59  ;;  %v509_v63 = vpop.f32.mrb[1].mxu0 }
 0x10a   : > { %v4719_v0 = vadd.f32 %v509_v63, %v420_v59  ;;  %v4781_v59 = vpop.permute.xlu0 %1154 }
 0x10b   : > { %7772 = vst [vmem:[#allocation50_spill] sm:$0xff] %v4781_v59 }
 0x10c   : > { %v513_v3 = vpop.f32.mrb[2].mxu0  ;;  %v524_v4 = vadd.f32 %v4719_v0, %v4717_v62  ;;  %v4735_v13 = vpop.permute.xlu1 %3033 }
 0x10d   : > { %v4725_v6 = vadd.f32 %v513_v3, %v425_v2  ;;  %v515_v7 = vpop.f32.mrb[3].mxu0  ;;  %7753 = vst [vmem:[#allocation31_spill] sm:$0xff] %v4735_v13 }
 0x10e   : > { %v4727_v8 = vadd.f32 %v515_v7, %v425_v2  ;;  %525 = vadd.xlane.f32.xlu1 %v524_v4  ;;  %v4785_v63 = vpop.permute.xlu0 %1215 }
 0x10f   : > { %v528_v9 = vsel %vm527_vm6, %v4725_v6, 0.0  ;;  %7773 = vst [vmem:[#allocation51_spill] sm:$0xff] %v4785_v63 }
 0x110   : > { %v529_v10 = vsel %vm527_vm6, %v4727_v8, 0.0  ;;  %v4737_v14 = vpop.permute.xlu1 %1696 }
 0x111   : > { %v530_v11 = vadd.f32 %v529_v10, %v528_v9  ;;  %7754 = vst [vmem:[#allocation32_spill] sm:$0xff] %v4737_v14 }
 0x112   : > { %v4789_v3 = vpop.permute.xlu0 %1276 }
 0x113   : > { %531 = vadd.xlane.f32.xlu1 %v530_v11  ;;  %7774 = vst [vmem:[#allocation52_spill] sm:$0xff] %v4789_v3 }
 0x114   : > { %v4739_v15 = vpop.permute.xlu1 %1522 }
 0x115   : > { %7755 = vst [vmem:[#allocation33_spill] sm:$0xff] %v4739_v15 }
 0x116   : > { %v4793_v7 = vpop.permute.xlu0 %1337 }
 0x118   : > { %v4741_v16 = vpop.permute.xlu1 %2848 }
 0x119   : > { %7756 = vst [vmem:[#allocation34_spill] sm:$0xff] %v4741_v16 }
 0x11a   : > { %v4797_v10 = vpop.permute.xlu0 %1389 }
 0x11b   : > { %7777 = vst [vmem:[#allocation55_spill] sm:$0xff] %v4797_v10 }
 0x11c   : > { %v4743_v17 = vpop.permute.xlu1 %2245 }
 0x11d   : > { %7757 = vst [vmem:[#allocation35_spill] sm:$0xff] %v4743_v17 }
 0x11e   : > { %v4801_v1 = vpop.permute.xlu0 %1461 }
 0x11f   : > { %7779 = vst [vmem:[#allocation57_spill] sm:$0xff] %v4801_v1 }
 0x120   : > { %v4747_v20 = vpop.permute.xlu1 %2428 }
 0x124   : > { %v4751_v23 = vpop.permute.xlu1 %3268 }
 0x125   : > { %7759 = vst [vmem:[#allocation37_spill] sm:$0xff] %v4751_v23 }
 0x128   : > { %v4755_v25 = vpop.permute.xlu1 %2674 }
 0x129   : > { %7761 = vst [vmem:[#allocation39_spill] sm:$0xff] %v4755_v25 }
 0x12c   : > { %v4759_v27 = vpop.permute.xlu1 %3094 }
 0x12d   : > { %7763 = vst [vmem:[#allocation41_spill] sm:$0xff] %v4759_v27 }
 0x130   : > { %v4763_v29 = vpop.permute.xlu1 %1757 }
 0x131   : > { %7764 = vst [vmem:[#allocation42_spill] sm:$0xff] %v4763_v29 }
 0x134   : > { %v4767_v31 = vpop.permute.xlu1 %2480 }
 0x135   : > { %7766 = vst [vmem:[#allocation44_spill] sm:$0xff] %v4767_v31 }
 0x138   : > { %v4771_v33 = vpop.permute.xlu1 %1583 }
 0x139   : > { %7768 = vst [vmem:[#allocation46_spill] sm:$0xff] %v4771_v33 }
 0x13c   : > { %v4775_v35 = vpop.permute.xlu1 %3329 }
 0x13d   : > { %7770 = vst [vmem:[#allocation48_spill] sm:$0xff] %v4775_v35  ;;  %v4805_v35 = vpop.permute.xlu0 %2369 }
 0x13e   : > { %7780 = vst [vmem:[#allocation58_spill] sm:$0xff] %v4805_v35 }
 0x140   : > { %v4779_v37 = vpop.permute.xlu1 %2306 }
 0x141   : > { %7771 = vst [vmem:[#allocation49_spill] sm:$0xff] %v4779_v37  ;;  %v4809_v37 = vpop.permute.xlu0 %2789 }
 0x142   : > { %7781 = vst [vmem:[#allocation59_spill] sm:$0xff] %v4809_v37 }
 0x144   : > { %v4783_v61 = vpop.permute.xlu1 %2726 }
 0x145   : > { %v4813_v58 = vpop.permute.xlu0 %3209 }
 0x146   : > { %7783 = vst [vmem:[#allocation61_spill] sm:$0xff] %v4813_v58 }
 0x148   : > { %v4787_v2 = vpop.permute.xlu1 %2909 }
 0x149   : > { %v4817_v35 = vpop.permute.xlu0 %2196 }
 0x14c   : > { %v4791_v4 = vpop.permute.xlu1 %3155 }
 0x14d   : > { %7775 = vst [vmem:[#allocation53_spill] sm:$0xff] %v4791_v4 }
 0x150   : > { %v4795_v9 = vpop.permute.xlu1 %1818 }
 0x151   : > { %7776 = vst [vmem:[#allocation54_spill] sm:$0xff] %v4795_v9 }
 0x154   : > { %v4799_v11 = vpop.permute.xlu1 %2541 }
 0x155   : > { %7778 = vst [vmem:[#allocation56_spill] sm:$0xff] %v4799_v11 }
 0x158   : > { %v4803_v57 = vpop.permute.xlu1 %1635 }
 0x15c   : > { %v4807_v16 = vpop.permute.xlu1 %2961 }
 0x160   : > { %v4811_v14 = vpop.permute.xlu1 %3390 }
 0x161   : > { %7782 = vst [vmem:[#allocation60_spill] sm:$0xff] %v4811_v14 }
 0x19b   : > { %v526_v4 = vpop.xlane.xlu1 %525 }
 0x19c   : > { %v533_v23 = vmul.f32 0.00390625, %v526_v4 }
 0x19e   : > { %v535_v9 = vsub.f32 %v4717_v62, %v533_v23  ;;  %v536_v11 = vsub.f32 %v4719_v0, %v533_v23  ;;  %v4823_v23 = vpop.permute.xlu0 %2615 }
 0x19f   : > { %7784 = vst [vmem:[#allocation62_spill] sm:$0xff] %v4823_v23 }
 0x1a0   : > { %v532_v56 = vpop.xlane.xlu1 %531  ;;  %v539_v1 = vmul.f32 %v535_v9, %v535_v9  ;;  %v540_v53 = vmul.f32 %v536_v11, %v536_v11 }
 0x1a1   : > { %v534_v3 = vmul.f32 0.00390625, %v532_v56 }
 0x1a2   : > { %v543_v52 = vadd.f32 %v540_v53, %v539_v1  ;;  %v4825_v34 = vpop.permute.xlu0 %3035 }
 0x1a3   : > { %v537_v63 = vsub.f32 %v4725_v6, %v534_v3  ;;  %v538_v37 = vsub.f32 %v4727_v8, %v534_v3 }
 0x1a4   : > { %544 = vadd.xlane.f32.xlu0 %v543_v52 }
 0x1a5   : > { %v541_v14 = vmul.f32 %v537_v63, %v537_v63  ;;  %v542_v4 = vmul.f32 %v538_v37, %v538_v37 }
 0x1a6   : > { %v4827_v1 = vpop.permute.xlu0 %1698 }
 0x1a7   : > { %v546_v51 = vsel %vm527_vm6, %v541_v14, 0.0  ;;  %v547_v59 = vsel %vm527_vm6, %v542_v4, 0.0  ;;  %7785 = vst [vmem:[#allocation63_spill] sm:$0xff] %v4827_v1 }
 0x1a8   : > { %v548_v49 = vadd.f32 %v547_v59, %v546_v51 }
 0x1aa   : > { %549 = vadd.xlane.f32.xlu1 %v548_v49  ;;  %v4829_v53 = vpop.permute.xlu0 %1524 }
 0x1ab   : > { %7786 = vst [vmem:[#allocation64_spill] sm:$0xff] %v4829_v53 }
 0x1ae   : > { %v4831_v56 = vpop.permute.xlu0 %2850 }
 0x1af   : > { %7787 = vst [vmem:[#allocation65_spill] sm:$0xff] %v4831_v56 }
 0x1b2   : > { %v4833_v3 = vpop.permute.xlu0 %2247 }
 0x1b3   : > { %7788 = vst [vmem:[#allocation66_spill] sm:$0xff] %v4833_v3 }
 0x1b6   : > { %v4835_v52 = vpop.permute.xlu0 %2430 }
 0x1ba   : > { %v4837_v48 = vpop.permute.xlu0 %3270 }
 0x1bb   : > { %7789 = vst [vmem:[#allocation67_spill] sm:$0xff] %v4837_v48 }
 0x1be   : > { %v4839_v14 = vpop.permute.xlu0 %2676 }
 0x1c2   : > { %v4841_v51 = vpop.permute.xlu0 %3096 }
 0x1c3   : > { %7790 = vst [vmem:[#allocation68_spill] sm:$0xff] %v4841_v51 }
 0x1c6   : > { %v4843_v59 = vpop.permute.xlu0 %1759 }
 0x1c7   : > { %7791 = vst [vmem:[#allocation69_spill] sm:$0xff] %v4843_v59 }
 0x1ca   : > { %v4845_v49 = vpop.permute.xlu0 %2482 }
 0x1cb   : > { %7792 = vst [vmem:[#allocation70_spill] sm:$0xff] %v4845_v49 }
 0x1ce   : > { %v4847_v4 = vpop.permute.xlu0 %1585 }
 0x1cf   : > { %7793 = vst [vmem:[#allocation71_spill] sm:$0xff] %v4847_v4 }
 0x1d2   : > { %v4849_v32 = vpop.permute.xlu0 %3331 }
 0x1d3   : > { %7794 = vst [vmem:[#allocation72_spill] sm:$0xff] %v4849_v32 }
 0x1d6   : > { %v4851_v53 = vpop.permute.xlu0 %2308 }
 0x1d7   : > { %7795 = vst [vmem:[#allocation73_spill] sm:$0xff] %v4851_v53 }
 0x1da   : > { %v4853_v47 = vpop.permute.xlu0 %2728 }
 0x1db   : > { %7796 = vst [vmem:[#allocation74_spill] sm:$0xff] %v4853_v47 }
 0x1de   : > { %v4855_v29 = vpop.permute.xlu0 %2911 }
 0x1e2   : > { %v4857_v27 = vpop.permute.xlu0 %3157 }
 0x1e3   : > { %7797 = vst [vmem:[#allocation75_spill] sm:$0xff] %v4857_v27 }
 0x1e6   : > { %v4859_v48 = vpop.permute.xlu0 %1820 }
 0x1e7   : > { %7798 = vst [vmem:[#allocation76_spill] sm:$0xff] %v4859_v48 }
 0x1ea   : > { %v4861_v30 = vpop.permute.xlu0 %2543 }
 0x1eb   : > { %7799 = vst [vmem:[#allocation77_spill] sm:$0xff] %v4861_v30 }
 0x1ee   : > { %v4863_v51 = vpop.permute.xlu0 %1637 }
 0x1ef   : > { %7800 = vst [vmem:[#allocation78_spill] sm:$0xff] %v4863_v51 }
 0x1f2   : > { %v4865_v59 = vpop.permute.xlu0 %2963 }
 0x1f3   : > { %7801 = vst [vmem:[#allocation79_spill] sm:$0xff] %v4865_v59 }
 0x1f6   : > { %v4867_v45 = vpop.permute.xlu0 %3392 }
 0x1f7   : > { %7802 = vst [vmem:[#allocation80_spill] sm:$0xff] %v4867_v45 }
 0x231   : > { %v545_v56 = vpop.xlane.xlu0 %544 }
 0x232   : > { %v551_v32 = vmul.f32 0.00390625, %v545_v56 }
 0x234   : > { %v553_v26 = vadd.f32 1e-05, %v551_v32 }
 0x236   : > { %4203 = vrsqrt.f32 %v553_v26 }
 0x237   : > { %v550_v53 = vpop.xlane.xlu1 %549 }
 0x238   : > { %v552_v44 = vmul.f32 0.00390625, %v550_v53 }
 0x23a   : > { %v554_v15 = vadd.f32 1e-05, %v552_v44 }
 0x23c   : > { %4205 = vrsqrt.f32 %v554_v15 }
 0x240   : > { %v4204_v1 = vpop.eup %4203 }
 0x241   : > { %v557_v27 = vmul.f32 %v4204_v1, %v535_v9  ;;  %v558_v24 = vmul.f32 %v4204_v1, %v536_v11 }
 0x243   : > { %v571_v48 = vmul.f32 %v4645_v38, %v557_v27  ;;  %v572_v30 = vmul.f32 %v4645_v38, %v558_v24 }
 0x245   : > { %v585_v43 = vadd.f32 %v4653_v40, %v571_v48  ;;  %v586_v13 = vadd.f32 %v4653_v40, %v572_v30 }
 0x246   : > { %v4206_v45 = vpop.eup %4205 }
 0x247   : > { %v559_v32 = vmul.f32 %v4206_v45, %v537_v63  ;;  %v560_v26 = vmul.f32 %v4206_v45, %v538_v37  ;;  %v601_v53 = vsel %vm599_vm7, %v585_v43, %v4717_v62  ;;  %v602_v15 = vsel %vm599_vm7, %v586_v13, %v4719_v0 }
 0x248   : > { %v605_v44 = vmax.f32 %v601_v53, 0.0  ;;  %v606_v40 = vmax.f32 %v602_v15, 0.0  ;;  %vm1639_vm7 = vcmask 408576  }
 0x249   : > { %v573_v9 = vmul.f32 %v4649_v39, %v559_v32  ;;  %v574_v27 = vmul.f32 %v4649_v39, %v560_v26 }
 0x24a   : > { %621 = vrot.lane.b32.xlu1 %v605_v44, %s4328_s23 }
 0x24b   : > { %v587_v38 = vadd.f32 %v4657_v41, %v573_v9  ;;  %v588_v45 = vadd.f32 %v4657_v41, %v574_v27 }
 0x24d   : > { %v603_v48 = vsel %vm600_vm8, %v587_v38, %v4725_v6  ;;  %v604_v62 = vsel %vm600_vm8, %v588_v45, %v4727_v8  ;;  %vm2965_vm8 = vcmask 826368  }
 0x24e   : > { %623 = vrot.lane.b32.xlu1 %v606_v40, %s4328_s23  ;;  %v607_v43 = vmax.f32 %v603_v48, 0.0  ;;  %v608_v0 = vmax.f32 %v604_v62, 0.0 }
 0x252   : > { %625 = vrot.lane.b32.xlu1 %v607_v43, %s4328_s23 }
 0x256   : > { %627 = vrot.lane.b32.xlu1 %v608_v0, %s4328_s23  ;;  %s7383_s23 = smov 94  }
 0x2bc   : > { %v622_v39 = vpop.permute.xlu1 %621 }
 0x2bd   : > { %639 = vst.msk [vmem:[#allocation2] sm:$0xff] %vm638_vm9, %v622_v39  ;;  %vm865_vm9 = vcmask 523264  }
 0x2c0   : > { %v624_v13 = vpop.permute.xlu1 %623 }
 0x2c1   : > { %v4883_v19 = vsel %vm629_vm10, %v622_v39, %v624_v13  ;;  %641 = vst.msk [vmem:[#allocation2 + $0x10] sm:$0xff] %vm629_vm10, %v624_v13 }
 0x2c2   : > { %640 = vst [vmem:[#allocation2 + $0x8] sm:$0xff] %v4883_v19 }
 0x2c4   : > { %v626_v42 = vpop.permute.xlu1 %625  ;;  %v4886_v6 = vld [vmem:[#allocation2] sm:$0xff] }
 0x2c5   : > { %643 = vst.msk [vmem:[#allocation2 + $0x18] sm:$0x3] %vm642_vm11, %v626_v42  ;;  %v870_v8 = vmul.f32 %v4761_v28, %v4886_v6  ;;  %v4902_v1 = vld [vmem:[#allocation2] sm:$0xff]  ;;  %v1346_v45 = vmul.f32 %v4793_v7, %v4886_v6  ;;  %vm1341_vm11 = vcmask 662528  }
 0x2c6   : > { %7804 = vst [vmem:[#allocation82_spill] sm:$0xff] %v4902_v1  ;;  %v1111_v32 = vmul.f32 %v4777_v36, %v4902_v1  ;;  %v4914_v15 = vrot.slane %v4902_v1, 2  ;;  %v663_v40 = vmul.f32 %v4902_v1, %v4537_v18 }
 0x2c7   : > { %882 = vrot.lane.b32.xlu0 %v870_v8, %s7446_s30 }
 0x2c8   : > { %v628_v41 = vpop.permute.xlu1 %627  ;;  %v4891_v30 = vld [vmem:[#allocation2 + $0x10] sm:$0xff]  ;;  %7806 = vst [vmem:[#allocation84_spill] sm:$0xff] %v4914_v15  ;;  %667 = vst [vmem:[#allocation3] sm:$0xff] %v663_v40 }
 0x2c9   : > { %646 = vst.msk [vmem:[#allocation2 + $0x28] sm:$0x3] %vm645_vm12, %v628_v41  ;;  %v631_v24 = vsel %vm629_vm10, %v626_v42, %v628_v41  ;;  %v7338_v37 = vrot.slane %v4891_v30, 2  ;;  %v4897_v63 = vld [vmem:[#allocation2 + $0x10] sm:$0xff]  ;;  %v4907_v26 = vld [vmem:[#allocation2 + $0x8] sm:$0xff]  ;;  %v2439_v43 = vmul.f32 %v4835_v52, %v4891_v30  ;;  %v1348_v62 = vmul.f32 %v4705_v54, %v4891_v30 }
 0x2ca   : > { %644 = vst [vmem:[#allocation2 + $0x20] sm:$0x3] %v631_v24  ;;  %7803 = vst [vmem:[#allocation81_spill] sm:$0xff] %v4897_v63  ;;  %v872_v11 = vmul.f32 %v4677_v46, %v4897_v63  ;;  %v7339_v56 = vrot.slane %v4897_v63, 2  ;;  %v1113_v9 = vmul.f32 %v4693_v50, %v4897_v63  ;;  %v664_v27 = vmul.f32 %v4907_v26, %v4550_v22 }
 0x2cb   : > { %1889 = vrot.lane.b32.xlu1 %v7338_v37, %s7402_s15  ;;  %7805 = vst [vmem:[#allocation83_spill] sm:$0xff] %v4907_v26  ;;  %v4938_v0 = vrot.slane %v4907_v26, 2  ;;  %v2683_v42 = vmul.f32 %v4755_v25, %v4886_v6  ;;  %v1394_v24 = vsel %vm1393_vm14, %v4797_v10, %v4707_v55  ;;  %v2204_v40 = vmul.f32 %v4817_v35, %v4891_v30 }
 0x2cc   : > { %886 = vrot.lane.b32.xlu0 %v872_v11, %s7446_s30  ;;  %v650_v44 = vld [vmem:[#allocation2 + $0x18] sm:$0x3]  ;;  %668 = vst [vmem:[#allocation3 + $0x8] sm:$0xff] %v664_v27  ;;  %v3212_v11 = vsel %vm3211_vm15, %v4715_v60, %v4813_v58  ;;  %vm1106_vm10 = vcmask 138240   ;;  %vm2432_vm12 = vcmask 556032   ;;  %vm2678_vm14 = vcmask 171008  }
 0x2cd   : > { %v665_v48 = vmul.f32 %v4537_v18, %v650_v44  ;;  %v2685_v18 = vmul.f32 %v4839_v14, %v4891_v30  ;;  %7807 = vst [vmem:[#allocation85_spill] sm:$0xff] %v4938_v0  ;;  %v2485_v44 = vsel %vm2484_vm1, %v4767_v31, %v4845_v49  ;;  %v2723_v37 = vld [vmem:[#allocation2 + $0x18] sm:$0x3]  ;;  %vm2913_vm15 = vcmask 695296  }
 0x2ce   : > { %v5000_v60 = vmul.f32 %v2485_v44, %v4883_v19  ;;  %vm7678_vm1 = vcmask 261120  }
 0x2cf   : > { %2064 = vrot.lane.b32.xlu1 %v7339_v56, %s7395_s17  ;;  %669 = vst [vmem:[#allocation3 + $0x10] sm:$0x3] %v665_v48  ;;  %v4982_v56 = vmul.f32 %v3212_v11, %v4883_v19 }
 0x2d0   : > { %1123 = vrot.lane.b32.xlu0 %v1111_v32, %s7437_s18  ;;  %7813 = vst [vmem:[#allocation91_spill] sm:$0xff] %v5000_v60 }
 0x2d1   : > { %v651_v53 = vld [vmem:[#allocation2 + $0x20] sm:$0x3]  ;;  %v7382_v31 = vrot.slane %v4982_v56, 2 }
 0x2d2   : > { %v666_v38 = vmul.f32 %v4550_v22, %v651_v53  ;;  %v2043_v22 = vld [vmem:[#allocation2 + $0x20] sm:$0x3]  ;;  %v2250_v53 = vsel %vm2249_vm0, %v4743_v17, %v4833_v3  ;;  %vm681_vm0 = vcmask 130048  }
 0x2d3   : > { %2060 = vrot.lane.b32.xlu1 %v4914_v15, %s7395_s17  ;;  %v2056_v39 = vrot.slane %v2043_v22, 2  ;;  %v1387_v41 = vld [vmem:[#allocation2 + $0x20] sm:$0x3]  ;;  %v2966_v22 = vsel %vm2965_vm8, %v4807_v16, %v4865_v59  ;;  %v4990_v59 = vmul.f32 %v2250_v53, %v4883_v19  ;;  %vm781_vm8 = vcmask 785408  }
 0x2d4   : > { %1127 = vrot.lane.b32.xlu0 %v1113_v9, %s7437_s18  ;;  %670 = vst [vmem:[#allocation3 + $0x18] sm:$0x3] %v666_v38  ;;  %v3205_v8 = vld [vmem:[#allocation2 + $0x20] sm:$0x3]  ;;  %v2731_v9 = vsel %vm2730_vm4, %v4783_v61, %v4853_v47  ;;  %v1402_v27 = vmul.f32 %v1394_v24, %v1387_v41  ;;  %v1640_v38 = vsel %vm1639_vm7, %v4803_v57, %v4863_v51  ;;  %vm7689_vm4 = vcmask 392192  }
 0x2d5   : > { %v4944_v13 = vsel %vm698_vm13, %v4938_v0, %v2056_v39  ;;  %v2243_v32 = vld [vmem:[#allocation2 + $0x20] sm:$0x3]  ;;  %v4977_v41 = vmul.f32 %v4803_v57, %v4886_v6  ;;  %v4997_v47 = vmul.f32 %v1640_v38, %v4883_v19  ;;  %vm842_vm7 = vcmask 654336  }
 0x2d6   : > { %7808 = vst [vmem:[#allocation86_spill] sm:$0xff] %v4944_v13  ;;  %v2478_v48 = vld [vmem:[#allocation2 + $0x20] sm:$0x3] }
 0x2d7   : > { %2453 = vrot.lane.b32.xlu1 %v2439_v43, %s7368_s20  ;;  %v4966_v43 = vrot.slane %v4902_v1, 4  ;;  %v2724_v39 = vld [vmem:[#allocation2 + $0x20] sm:$0x3]  ;;  %7810 = vst [vmem:[#allocation88_spill] sm:$0xff] %v4977_v41  ;;  %v2493_v13 = vmul.f32 %v2485_v44, %v2478_v48  ;;  %7812 = vst [vmem:[#allocation90_spill] sm:$0xff] %v4997_v47  ;;  %v7381_v44 = vrot.slane %v4990_v59, 2 }
 0x2d8   : > { %1358 = vrot.lane.b32.xlu0 %v1346_v45, %s7429_s19  ;;  %v3220_v45 = vmul.f32 %v3212_v11, %v3205_v8  ;;  %v2202_v8 = vmul.f32 %v4723_v5, %v4886_v6  ;;  %v1633_v51 = vld [vmem:[#allocation2 + $0x20] sm:$0x3]  ;;  %v4994_v11 = vmul.f32 %v4783_v61, %v4886_v6  ;;  %v2739_v3 = vmul.f32 %v2731_v9, %v2724_v39  ;;  %v2958_v48 = vld [vmem:[#allocation2 + $0x18] sm:$0x3] }
 0x2d9   : > { %7809 = vst [vmem:[#allocation87_spill] sm:$0xff] %v4966_v43  ;;  %v2959_v17 = vld [vmem:[#allocation2 + $0x20] sm:$0x3]  ;;  %v1648_v49 = vmul.f32 %v1640_v38, %v1633_v51  ;;  %v2506_v39 = vrot.slane %v2493_v13, 2  ;;  %v7376_v51 = vrot.slane %v4902_v1, 6  ;;  %v7377_v38 = vrot.slane %v5000_v60, 2 }
 0x2da   : > { %7811 = vst [vmem:[#allocation89_spill] sm:$0xff] %v4994_v11 }
 0x2db   : > { %2699 = vrot.lane.b32.xlu1 %v2685_v18, %s7366_s28  ;;  %v4973_v18 = vmul.f32 %v1394_v24, %v4883_v19  ;;  %v2437_v24 = vmul.f32 %v4747_v20, %v4886_v6 }
 0x2dc   : > { %1362 = vrot.lane.b32.xlu0 %v1348_v62, %s7429_s19  ;;  %v1592_v62 = vmul.f32 %v4771_v33, %v4886_v6 }
 0x2dd   : > { %v7388_v58 = vrot.slane %v4973_v18, 2 }
 0x2df   : > { %2695 = vrot.lane.b32.xlu1 %v2683_v42, %s7366_s28  ;;  %v2258_v42 = vmul.f32 %v2250_v53, %v2243_v32  ;;  %v1632_v32 = vld [vmem:[#allocation2 + $0x18] sm:$0x3]  ;;  %v2738_v53 = vmul.f32 %v4783_v61, %v2723_v37  ;;  %v5018_v37 = vmul.f32 %v2966_v22, %v4883_v19  ;;  %s7404_s28 = smov 43  }
 0x2e0   : > { %1885 = vrot.lane.b32.xlu0 %v4914_v15, %s7402_s15  ;;  %v1415_v15 = vrot.slane %v1402_v27, 2  ;;  %v5005_v27 = vmul.f32 %v2731_v9, %v4883_v19  ;;  %v1647_v10 = vmul.f32 %v4803_v57, %v1632_v32  ;;  %v2752_v57 = vrot.slane %v2739_v3, 2 }
 0x2e1   : > { %v2271_v55 = vrot.slane %v2258_v42, 2  ;;  %7815 = vst [vmem:[#allocation93_spill] sm:$0xff] %v5018_v37  ;;  %v2750_v13 = vrot.slane %v2738_v53, 2  ;;  %v5035_v3 = vmul.f32 %v4807_v16, %v4886_v6  ;;  %v7374_v42 = vrot.slane %v4994_v11, 2  ;;  %v7852_v11 = vld [vmem:[#allocation17_spill] sm:$0xff] }
 0x2e2   : > { %v5015_v61 = vsel %vm698_vm13, %v7388_v58, %v1415_v15  ;;  %v5046_v32 = vsel %vm698_vm13, %v7377_v38, %v2506_v39  ;;  %v7372_v53 = vrot.slane %v5018_v37, 2  ;;  %v7387_v38 = vrot.slane %v4907_v26, 6 }
 0x2e3   : > { %2106 = vrot.lane.b32.xlu1 %v4966_v43, %s7378_s29  ;;  %7814 = vst [vmem:[#allocation92_spill] sm:$0xff] %v5015_v61  ;;  %v5031_v15 = vsel %vm698_vm13, %v7381_v44, %v2271_v55  ;;  %7818 = vst [vmem:[#allocation96_spill] sm:$0xff] %v5035_v3  ;;  %v5175_v44 = vmul.f32 %v4825_v34, %v4891_v30  ;;  %v5192_v58 = vmul.f32 %v4733_v12, %v4886_v6 }
 0x2e4   : > { %2218 = vrot.lane.b32.xlu0 %v2204_v40, %s7421_s26  ;;  %v3233_v40 = vrot.slane %v3220_v45, 2  ;;  %v2974_v45 = vmul.f32 %v2966_v22, %v2959_v17  ;;  %v2973_v17 = vmul.f32 %v4807_v16, %v2958_v48  ;;  %7817 = vst [vmem:[#allocation95_spill] sm:$0xff] %v5031_v15  ;;  %v7380_v22 = vrot.slane %v5005_v27, 2  ;;  %7819 = vst [vmem:[#allocation97_spill] sm:$0xff] %v5046_v32 }
 0x2e5   : > { %v2920_v16 = vmul.f32 %v4855_v29, %v4891_v30  ;;  %7837 = vst [vmem:[#allocation114_spill] sm:$0xff] %v5175_v44  ;;  %7841 = vst [vmem:[#allocation117_spill] sm:$0xff] %v5192_v58  ;;  %v5239_v32 = vmul.f32 %v7852_v11, %v4891_v30 }
 0x2e6   : > { %v5024_v9 = vsel %vm698_vm13, %v7382_v31, %v3233_v40  ;;  %v2987_v55 = vrot.slane %v2974_v45, 2  ;;  %v5052_v40 = vrot.slane %v4897_v63, 4  ;;  %v2985_v48 = vrot.slane %v2973_v17, 2 }
 0x2e7   : > { %1604 = vrot.lane.b32.xlu1 %v1592_v62, %s7383_s23  ;;  %7816 = vst [vmem:[#allocation94_spill] sm:$0xff] %v5024_v9  ;;  %v1661_v62 = vrot.slane %v1648_v49, 2  ;;  %v7370_v49 = vrot.slane %v4997_v47, 2  ;;  %v5064_v45 = vsel %vm698_vm13, %v7374_v42, %v2750_v13  ;;  %v7371_v17 = vrot.slane %v5035_v3, 2  ;;  %7853 = vst [vmem:[#allocation123_spill] sm:$0xff] %v5239_v32 }
 0x2e8   : > { %2214 = vrot.lane.b32.xlu0 %v2202_v8, %s7421_s26  ;;  %v1659_v8 = vrot.slane %v1647_v10, 2  ;;  %7820 = vst [vmem:[#allocation98_spill] sm:$0xff] %v5052_v40  ;;  %v7373_v10 = vrot.slane %v4977_v41, 2  ;;  %7822 = vst [vmem:[#allocation100_spill] sm:$0xff] %v5064_v45  ;;  %v7397_v3 = vrot.slane %v5175_v44, 4  ;;  %v7399_v41 = vrot.slane %v5192_v58, 6 }
 0x2e9   : > { %v5072_v39 = vsel %vm698_vm13, %v7370_v49, %v1661_v62  ;;  %v5095_v49 = vsel %vm698_vm13, %v7371_v17, %v2985_v48  ;;  %v5111_v48 = vsel %vm1341_vm11, %v4793_v7, %v4705_v54  ;;  %v1594_v17 = vmul.f32 %v4847_v4, %v4891_v30  ;;  %v7861_v58 = vld [vmem:[#allocation68_spill] sm:$0xff] }
 0x2ea   : > { %7823 = vst [vmem:[#allocation101_spill] sm:$0xff] %v5072_v39  ;;  %v5083_v13 = vsel %vm698_vm13, %v7373_v10, %v1659_v8  ;;  %7827 = vst [vmem:[#allocation105_spill] sm:$0xff] %v5095_v49  ;;  %v5102_v8 = vsel %vm1106_vm10, %v4777_v36, %v4693_v50  ;;  %v7375_v10 = vrot.slane %v4897_v63, 6  ;;  %v7848_v39 = vld [vmem:[#allocation63_spill] sm:$0xff]  ;;  %v7424_v44 = vrot.slane %v5239_v32, 4 }
 0x2eb   : > { %1977 = vrot.lane.b32.xlu1 %v7376_v51, %s7390_s16  ;;  %7825 = vst [vmem:[#allocation103_spill] sm:$0xff] %v5083_v13  ;;  %7828 = vst [vmem:[#allocation106_spill] sm:$0xff] %v5102_v8  ;;  %v5160_v51 = vmul.f32 %v4823_v23, %v4891_v30  ;;  %v5223_v47 = vmul.f32 %v7848_v39, %v4891_v30  ;;  %vm1045_vm10 = vcmask 7168   ;;  %vm1158_vm11 = vcmask 269312  }
 0x2ec   : > { %2449 = vrot.lane.b32.xlu0 %v2437_v24, %s7368_s20  ;;  %v5057_v24 = vsel %vm698_vm13, %v7380_v22, %v2752_v57  ;;  %s7385_s20 = smov 109   ;;  %v5077_v57 = vsel %vm865_vm9, %v4761_v28, %v4677_v46  ;;  %7829 = vst [vmem:[#allocation107_spill] sm:$0xff] %v5111_v48 }
 0x2ed   : > { %7821 = vst [vmem:[#allocation99_spill] sm:$0xff] %v5057_v24  ;;  %7824 = vst [vmem:[#allocation102_spill] sm:$0xff] %v5077_v57  ;;  %v871_v62 = vmul.f32 %v5077_v57, %v4883_v19  ;;  %v7392_v31 = vrot.slane %v5160_v51, 6  ;;  %v7413_v9 = vrot.slane %v5223_v47, 4 }
 0x2ee   : > { %7834 = vst [vmem:[#allocation112_spill] sm:$0xff] %v5160_v51  ;;  %7849 = vst [vmem:[#allocation121_spill] sm:$0xff] %v5223_v47 }
 0x2ef   : > { %2934 = vrot.lane.b32.xlu1 %v2920_v16, %s7404_s28  ;;  %v5088_v16 = vsel %vm698_vm13, %v7372_v53, %v2987_v55  ;;  %v1112_v55 = vmul.f32 %v5102_v8, %v4883_v19  ;;  %v5122_v53 = vsel %vm429_vm3, %v4723_v5, %v4817_v35  ;;  %vm1587_vm3 = vcmask 277504   ;;  %v7884_v8 = vld [vmem:[#allocation72_spill] sm:$0xff] }
 0x2f0   : > { %1935 = vrot.lane.b32.xlu0 %v5052_v40, %s7385_s20  ;;  %7826 = vst [vmem:[#allocation104_spill] sm:$0xff] %v5088_v16  ;;  %7830 = vst [vmem:[#allocation108_spill] sm:$0xff] %v5122_v53  ;;  %v7844_v16 = vld [vmem:[#allocation16_spill] sm:$0xff] }
 0x2f1   : > { %v5207_v37 = vmul.f32 %v7844_v16, %v4891_v30 }
 0x2f3   : > { %884 = vrot.lane.b32.xlu1 %v871_v62, %s7446_s30  ;;  %v1347_v62 = vmul.f32 %v5111_v48, %v4883_v19  ;;  %7845 = vst [vmem:[#allocation119_spill] sm:$0xff] %v5207_v37  ;;  %v7407_v24 = vrot.slane %v5207_v37, 2  ;;  %s7475_s30 = smov 46  }
 0x2f4   : > { %1931 = vrot.lane.b32.xlu0 %v4966_v43, %s7385_s20 }
 0x2f7   : > { %1125 = vrot.lane.b32.xlu1 %v1112_v55, %s7437_s18  ;;  %v2203_v55 = vmul.f32 %v5122_v53, %v4883_v19  ;;  %s7872_s18 = smov 48  }
 0x2f8   : > { %2110 = vrot.lane.b32.xlu0 %v5052_v40, %s7378_s29 }
 0x2fb   : > { %1360 = vrot.lane.b32.xlu1 %v1347_v62, %s7429_s19  ;;  %v5134_v62 = vrot.slane %v4907_v26, 4  ;;  %s7454_s19 = smov 106  }
 0x2fc   : > { %1608 = vrot.lane.b32.xlu0 %v1594_v17, %s7383_s23  ;;  %v2918_v17 = vmul.f32 %v4787_v2, %v4886_v6 }
 0x2fd   : > { %7831 = vst [vmem:[#allocation109_spill] sm:$0xff] %v5134_v62 }
 0x2ff   : > { %2216 = vrot.lane.b32.xlu1 %v2203_v55, %s7421_s26  ;;  %v5145_v55 = vsel %vm1587_vm3, %v4771_v33, %v4847_v4  ;;  %s7456_s26 = smov 59   ;;  %vm1219_vm3 = vcmask 400384  }
 0x300   : > { %1981 = vrot.lane.b32.xlu0 %v7375_v10, %s7390_s16  ;;  %7832 = vst [vmem:[#allocation110_spill] sm:$0xff] %v5145_v55  ;;  %v1593_v42 = vmul.f32 %v5145_v55, %v4883_v19 }
 0x303   : > { %1933 = vrot.lane.b32.xlu1 %v5134_v62, %s7385_s20  ;;  %s7419_s20 = smov 123  }
 0x304   : > { %2930 = vrot.lane.b32.xlu0 %v2918_v17, %s7404_s28  ;;  %v5154_v17 = vsel %vm2432_vm12, %v4747_v20, %v4835_v52  ;;  %vm1280_vm12 = vcmask 531456  }
 0x305   : > { %7833 = vst [vmem:[#allocation111_spill] sm:$0xff] %v5154_v17  ;;  %v2438_v10 = vmul.f32 %v5154_v17, %v4883_v19 }
 0x307   : > { %2108 = vrot.lane.b32.xlu1 %v5134_v62, %s7378_s29  ;;  %s7835_s29 = smov 60  }
 0x308   : > { %1887 = vrot.lane.b32.xlu0 %v4938_v0, %s7402_s15  ;;  %s7854_s15 = smov 96  }
 0x30b   : > { %1606 = vrot.lane.b32.xlu1 %v1593_v42, %s7383_s23  ;;  %v5169_v42 = vsel %vm2678_vm14, %v4755_v25, %v4839_v14  ;;  %s7838_s23 = smov 107   ;;  %vm1465_vm14 = vcmask 15360  }
 0x30c   : > { %2062 = vrot.lane.b32.xlu0 %v4938_v0, %s7395_s17  ;;  %7836 = vst [vmem:[#allocation113_spill] sm:$0xff] %v5169_v42  ;;  %v2684_v22 = vmul.f32 %v5169_v42, %v4883_v19  ;;  %s7493_s17 = smov 112   ;;  %v7888_v0 = vld [vmem:[#allocation21_spill] sm:$0xff] }
 0x30d   : > { %v5377_v57 = vmul.f32 %v7888_v0, %v4891_v30 }
 0x30f   : > { %1979 = vrot.lane.b32.xlu1 %v7387_v38, %s7390_s16  ;;  %v5188_v38 = vmul.f32 %v4749_v21, %v4886_v6  ;;  %s7411_s16 = smov 122   ;;  %7889 = vst [vmem:[#allocation137_spill] sm:$0xff] %v5377_v57 }
 0x310   : > { %2451 = vrot.lane.b32.xlu0 %v2438_v10, %s7835_s29  ;;  %v5184_v10 = vsel %vm2913_vm15, %v4787_v2, %v4855_v29  ;;  %vm1135_vm15 = vcmask 908288  }
 0x311   : > { %7839 = vst [vmem:[#allocation115_spill] sm:$0xff] %v5184_v10  ;;  %7840 = vst [vmem:[#allocation116_spill] sm:$0xff] %v5188_v38  ;;  %v7400_v13 = vrot.slane %v5188_v38, 2 }
 0x313   : > { %2647 = vrot.lane.b32.xlu1 %v7392_v31, %s7419_s20  ;;  %v7842_v31 = vld [vmem:[#allocation31_spill] sm:$0xff] }
 0x314   : > { %2697 = vrot.lane.b32.xlu0 %v2684_v22, %s7838_s23  ;;  %v2919_v22 = vmul.f32 %v5184_v10, %v4883_v19  ;;  %v5203_v49 = vmul.f32 %v7842_v31, %v4886_v6  ;;  %v5272_v10 = vmul.f32 %v7861_v58, %v4891_v30 }
 0x316   : > { %7843 = vst [vmem:[#allocation118_spill] sm:$0xff] %v5203_v49  ;;  %v7406_v45 = vrot.slane %v5203_v49, 4  ;;  %v7857_v49 = vld [vmem:[#allocation65_spill] sm:$0xff]  ;;  %7862 = vst [vmem:[#allocation126_spill] sm:$0xff] %v5272_v10 }
 0x317   : > { %3067 = vrot.lane.b32.xlu1 %v7397_v3, %s7411_s16  ;;  %v5256_v51 = vmul.f32 %v7857_v49, %v4891_v30 }
 0x318   : > { %2932 = vrot.lane.b32.xlu0 %v2919_v22, %s7404_s28  ;;  %v7846_v22 = vld [vmem:[#allocation38_spill] sm:$0xff]  ;;  %s7531_s28 = smov 62  }
 0x319   : > { %v5219_v3 = vmul.f32 %v7846_v22, %v4886_v6  ;;  %7858 = vst [vmem:[#allocation65_spill] sm:$0xff] %v5256_v51  ;;  %v7431_v42 = vrot.slane %v5256_v51, 6  ;;  %v7870_v51 = vld [vmem:[#allocation19_spill] sm:$0xff] }
 0x31b   : > { %2643 = vrot.lane.b32.xlu1 %v7399_v41, %s7419_s20  ;;  %7847 = vst [vmem:[#allocation120_spill] sm:$0xff] %v5219_v3  ;;  %v7850_v41 = vld [vmem:[#allocation33_spill] sm:$0xff]  ;;  %v7414_v15 = vrot.slane %v5219_v3, 4  ;;  %s7863_s20 = smov 80   ;;  %v7439_v3 = vrot.slane %v5272_v10, 6 }
 0x31c   : > { %708 = vrot.lane.b32.xlu0 %v7400_v13, %s7493_s17  ;;  %v5235_v13 = vmul.f32 %v7850_v41, %v4886_v6 }
 0x31e   : > { %7851 = vst [vmem:[#allocation122_spill] sm:$0xff] %v5235_v13  ;;  %v7423_v61 = vrot.slane %v5235_v13, 6  ;;  %v7866_v13 = vld [vmem:[#allocation41_spill] sm:$0xff] }
 0x31f   : > { %3063 = vrot.lane.b32.xlu1 %v7406_v45, %s7411_s16  ;;  %v7855_v45 = vld [vmem:[#allocation40_spill] sm:$0xff]  ;;  %s7603_s16 = smov 110   ;;  %v5287_v32 = vmul.f32 %v7866_v13, %v4886_v6 }
 0x320   : > { %712 = vrot.lane.b32.xlu0 %v7407_v24, %s7493_s17  ;;  %v5251_v24 = vmul.f32 %v7855_v45, %v4886_v6 }
 0x321   : > { %7867 = vst [vmem:[#allocation41_spill] sm:$0xff] %v5287_v32  ;;  %v7448_v53 = vrot.slane %v5287_v32, 6 }
 0x322   : > { %7856 = vst [vmem:[#allocation124_spill] sm:$0xff] %v5251_v24  ;;  %v7432_v47 = vrot.slane %v5251_v24, 6  ;;  %v5303_v24 = vmul.f32 %v7870_v51, %v4891_v30 }
 0x323   : > { %1730 = vrot.lane.b32.xlu1 %v7413_v9, %s7531_s28  ;;  %v7859_v9 = vld [vmem:[#allocation18_spill] sm:$0xff]  ;;  %s7562_s28 = smov 63  }
 0x324   : > { %769 = vrot.lane.b32.xlu0 %v7414_v15, %s7854_s15  ;;  %v5267_v15 = vmul.f32 %v7859_v9, %v4891_v30  ;;  %7871 = vst [vmem:[#allocation128_spill] sm:$0xff] %v5303_v24  ;;  %v7459_v26 = vrot.slane %v5303_v24, 2 }
 0x326   : > { %7860 = vst [vmem:[#allocation125_spill] sm:$0xff] %v5267_v15  ;;  %v7440_v17 = vrot.slane %v5267_v15, 6  ;;  %v7875_v15 = vld [vmem:[#allocation70_spill] sm:$0xff] }
 0x327   : > { %1552 = vrot.lane.b32.xlu1 %v7423_v61, %s7603_s16  ;;  %v7864_v61 = vld [vmem:[#allocation43_spill] sm:$0xff]  ;;  %v5320_v38 = vmul.f32 %v7875_v15, %v4891_v30  ;;  %v7879_v15 = vld [vmem:[#allocation20_spill] sm:$0xff] }
 0x328   : > { %773 = vrot.lane.b32.xlu0 %v7424_v44, %s7854_s15  ;;  %v5283_v44 = vmul.f32 %v7864_v61, %v4886_v6  ;;  %v5337_v32 = vmul.f32 %v7879_v15, %v4891_v30 }
 0x329   : > { %7876 = vst [vmem:[#allocation130_spill] sm:$0xff] %v5320_v38  ;;  %v7465_v62 = vrot.slane %v5320_v38, 2 }
 0x32a   : > { %7865 = vst [vmem:[#allocation127_spill] sm:$0xff] %v5283_v44  ;;  %v7449_v37 = vrot.slane %v5283_v44, 2  ;;  %7880 = vst [vmem:[#allocation132_spill] sm:$0xff] %v5337_v32 }
 0x32b   : > { %2882 = vrot.lane.b32.xlu1 %v7431_v42, %s7456_s26  ;;  %v7868_v42 = vld [vmem:[#allocation42_spill] sm:$0xff]  ;;  %s7473_s26 = smov 44  }
 0x32c   : > { %830 = vrot.lane.b32.xlu0 %v7432_v47, %s7863_s20  ;;  %v5299_v47 = vmul.f32 %v7868_v42, %v4886_v6 }
 0x32e   : > { %7869 = vst [vmem:[#allocation42_spill] sm:$0xff] %v5299_v47  ;;  %v7458_v10 = vrot.slane %v5299_v47, 6  ;;  %v7882_v47 = vld [vmem:[#allocation47_spill] sm:$0xff] }
 0x32f   : > { %3128 = vrot.lane.b32.xlu1 %v7439_v3, %s7454_s19  ;;  %v7873_v3 = vld [vmem:[#allocation45_spill] sm:$0xff] }
 0x330   : > { %834 = vrot.lane.b32.xlu0 %v7440_v17, %s7863_s20  ;;  %v5315_v17 = vmul.f32 %v7873_v3, %v4886_v6 }
 0x332   : > { %7874 = vst [vmem:[#allocation129_spill] sm:$0xff] %v5315_v17  ;;  %v7464_v44 = vrot.slane %v5315_v17, 4  ;;  %v5358_v17 = vmul.f32 %v7884_v8, %v4891_v30 }
 0x333   : > { %3124 = vrot.lane.b32.xlu1 %v7448_v53, %s7454_s19  ;;  %v7877_v53 = vld [vmem:[#allocation44_spill] sm:$0xff]  ;;  %s7881_s19 = smov 32  }
 0x334   : > { %941 = vrot.lane.b32.xlu0 %v7449_v37, %s7872_s18  ;;  %v5333_v37 = vmul.f32 %v7877_v53, %v4886_v6  ;;  %v5353_v53 = vmul.f32 %v7882_v47, %v4886_v6  ;;  %7885 = vst [vmem:[#allocation134_spill] sm:$0xff] %v5358_v17 }
 0x336   : > { %7878 = vst [vmem:[#allocation131_spill] sm:$0xff] %v5333_v37  ;;  %7883 = vst [vmem:[#allocation133_spill] sm:$0xff] %v5353_v53  ;;  %v7472_v24 = vrot.slane %v5333_v37, 2  ;;  %v5394_v37 = vsel %vm7678_vm1, %v7846_v22, %v7852_v11  ;;  %v7896_v22 = vld [vmem:[#allocation22_spill] sm:$0xff] }
 0x337   : > { %1787 = vrot.lane.b32.xlu1 %v7458_v10, %s7475_s30  ;;  %s7511_s30 = smov 42   ;;  %7890 = vst [vmem:[#allocation138_spill] sm:$0xff] %v5394_v37  ;;  %v5427_v33 = vmul.f32 %v7896_v22, %v4891_v30 }
 0x338   : > { %945 = vrot.lane.b32.xlu0 %v7459_v26, %s7872_s18 }
 0x339   : > { %v5323_v48 = vpop.permute.xlu0 %882  ;;  %7897 = vst [vmem:[#allocation143_spill] sm:$0xff] %v5427_v33 }
 0x33b   : > { %2514 = vrot.lane.b32.xlu1 %v7465_v62, %s7473_s26  ;;  %v5369_v62 = vsel %vm681_vm0, %v4749_v21, %v7844_v16  ;;  %v5402_v21 = vmul.f32 %v5394_v37, %v4883_v19  ;;  %v5419_v37 = vsel %vm7689_vm4, %v7855_v45, %v7859_v9  ;;  %v7899_v9 = vld [vmem:[#allocation51_spill] sm:$0xff]  ;;  %vm2791_vm0 = vcmask 433152  }
 0x33c   : > { %1000 = vrot.lane.b32.xlu0 %v7464_v44, %s7881_s19  ;;  %v7470_v44 = vrot.slane %v5337_v32, 4  ;;  %7886 = vst [vmem:[#allocation135_spill] sm:$0xff] %v5369_v62  ;;  %v5373_v38 = vmul.f32 %v5369_v62, %v4883_v19  ;;  %v7481_v32 = vrot.slane %v5353_v53, 6  ;;  %v7891_v62 = vld [vmem:[#allocation50_spill] sm:$0xff]  ;;  %v7489_v53 = vrot.slane %v5377_v57, 6  ;;  %7894 = vst [vmem:[#allocation141_spill] sm:$0xff] %v5419_v37 }
 0x33d   : > { %v5349_v26 = vpop.permute.xlu1 %1889  ;;  %v5398_v16 = vmul.f32 %v7891_v62, %v4886_v6  ;;  %7893 = vst [vmem:[#allocation140_spill] sm:$0xff] %v5402_v21  ;;  %v5423_v11 = vmul.f32 %v5419_v37, %v4883_v19  ;;  %v7502_v57 = vrot.slane %v5402_v21, 4  ;;  %v5444_v37 = vsel %vm842_vm7, %v7864_v61, %v7870_v51  ;;  %v7904_v61 = vld [vmem:[#allocation23_spill] sm:$0xff] }
 0x33e   : > { %v5347_v10 = vpop.permute.xlu0 %886  ;;  %7887 = vst [vmem:[#allocation136_spill] sm:$0xff] %v5373_v38  ;;  %7898 = vst [vmem:[#allocation144_spill] sm:$0xff] %v5444_v37  ;;  %v5448_v45 = vmul.f32 %v7899_v9, %v4886_v6  ;;  %v5452_v4 = vmul.f32 %v5444_v37, %v4883_v19  ;;  %v5469_v37 = vsel %vm781_vm8, %v7873_v3, %v7879_v15  ;;  %v7907_v15 = vld [vmem:[#allocation52_spill] sm:$0xff] }
 0x33f   : > { %2510 = vrot.lane.b32.xlu1 %v7472_v24, %s7473_s26  ;;  %s7601_s26 = smov 127   ;;  %7892 = vst [vmem:[#allocation139_spill] sm:$0xff] %v5398_v16  ;;  %7895 = vst [vmem:[#allocation142_spill] sm:$0xff] %v5423_v11  ;;  %v5473_v51 = vmul.f32 %v5469_v37, %v4883_v19  ;;  %v5477_v55 = vmul.f32 %v7904_v61, %v4891_v30  ;;  %v5497_v3 = vmul.f32 %v7907_v15, %v4886_v6 }
 0x340   : > { %1004 = vrot.lane.b32.xlu0 %v7470_v44, %s7881_s19  ;;  %v7484_v44 = vrot.slane %v5358_v17, 6  ;;  %7900 = vst [vmem:[#allocation145_spill] sm:$0xff] %v5448_v45  ;;  %7901 = vst [vmem:[#allocation146_spill] sm:$0xff] %v5452_v4 }
 0x341   : > { %v5383_v24 = vpop.permute.xlu1 %2064  ;;  %7902 = vst [vmem:[#allocation147_spill] sm:$0xff] %v5469_v37  ;;  %7903 = vst [vmem:[#allocation148_spill] sm:$0xff] %v5473_v51  ;;  %v5493_v37 = vsel %vm1045_vm10, %v7882_v47, %v7888_v0  ;;  %v7912_v0 = vld [vmem:[#allocation24_spill] sm:$0xff]  ;;  %vm7593_vm10 = vcmask 384000  }
 0x342   : > { %v5381_v1 = vpop.permute.xlu0 %1123  ;;  %7905 = vst [vmem:[#allocation149_spill] sm:$0xff] %v5477_v55  ;;  %7906 = vst [vmem:[#allocation150_spill] sm:$0xff] %v5493_v37  ;;  %v5501_v40 = vmul.f32 %v5493_v37, %v4883_v19  ;;  %v5525_v47 = vmul.f32 %v7912_v0, %v4891_v30 }
 0x343   : > { %3363 = vrot.lane.b32.xlu1 %v7484_v44, %s7511_s30  ;;  %s7590_s30 = smov 79   ;;  %7908 = vst [vmem:[#allocation151_spill] sm:$0xff] %v5497_v3 }
 0x344   : > { %1071 = vrot.lane.b32.xlu0 %v7481_v32, %s7601_s26  ;;  %v7492_v32 = vrot.slane %v5373_v38, 2  ;;  %7909 = vst [vmem:[#allocation152_spill] sm:$0xff] %v5501_v40  ;;  %7913 = vst [vmem:[#allocation155_spill] sm:$0xff] %v5525_v47 }
 0x345   : > { %v5408_v44 = vpop.permute.xlu1 %2060 }
 0x346   : > { %v5406_v17 = vpop.permute.xlu0 %1127 }
 0x347   : > { %710 = vrot.lane.b32.xlu1 %v7492_v32, %s7493_s17  ;;  %s7548_s17 = smov 95  }
 0x348   : > { %1075 = vrot.lane.b32.xlu0 %v7489_v53, %s7601_s26  ;;  %v7499_v53 = vrot.slane %v5398_v16, 2  ;;  %v7507_v16 = vrot.slane %v5427_v33, 2  ;;  %v7521_v33 = vrot.slane %v5452_v4, 2  ;;  %v5517_v4 = vsel %vm1158_vm11, %v7891_v62, %v7896_v22 }
 0x349   : > { %v5433_v32 = vpop.permute.xlu1 %2453  ;;  %7910 = vst [vmem:[#allocation153_spill] sm:$0xff] %v5517_v4  ;;  %v5521_v37 = vmul.f32 %v5517_v4, %v4883_v19  ;;  %v7915_v4 = vld [vmem:[#allocation55_spill] sm:$0xff]  ;;  %vm7585_vm11 = vcmask 1014784  }
 0x34a   : > { %v5431_v38 = vpop.permute.xlu0 %1358  ;;  %v5545_v22 = vmul.f32 %v7915_v4, %v4886_v6  ;;  %v7919_v4 = vld [vmem:[#allocation25_spill] sm:$0xff] }
 0x34b   : > { %771 = vrot.lane.b32.xlu1 %v7502_v57, %s7854_s15  ;;  %7911 = vst [vmem:[#allocation154_spill] sm:$0xff] %v5521_v37 }
 0x34c   : > { %1184 = vrot.lane.b32.xlu0 %v7499_v53, %s7548_s17  ;;  %v7510_v53 = vrot.slane %v5423_v11, 6 }
 0x34d   : > { %v5458_v57 = vpop.permute.xlu1 %2699 }
 0x34e   : > { %v5456_v21 = vpop.permute.xlu0 %1362 }
 0x34f   : > { %832 = vrot.lane.b32.xlu1 %v7510_v53, %s7863_s20 }
 0x350   : > { %1188 = vrot.lane.b32.xlu0 %v7507_v16, %s7548_s17  ;;  %v7519_v16 = vrot.slane %v5448_v45, 4  ;;  %v7530_v45 = vrot.slane %v5473_v51, 4  ;;  %v5541_v51 = vsel %vm1219_vm3, %v7899_v9, %v7904_v61  ;;  %v5573_v61 = vmul.f32 %v7919_v4, %v4891_v30 }
 0x351   : > { %v5483_v53 = vpop.permute.xlu1 %2695  ;;  %7914 = vst [vmem:[#allocation156_spill] sm:$0xff] %v5541_v51  ;;  %v5549_v62 = vmul.f32 %v5541_v51, %v4883_v19  ;;  %v7557_v9 = vrot.slane %v5545_v22, 2  ;;  %vm1526_vm3 = vcmask 146432  }
 0x352   : > { %v5481_v11 = vpop.permute.xlu0 %1885  ;;  %7920 = vst [vmem:[#allocation160_spill] sm:$0xff] %v5573_v61 }
 0x353   : > { %943 = vrot.lane.b32.xlu1 %v7521_v33, %s7872_s18  ;;  %7916 = vst [vmem:[#allocation157_spill] sm:$0xff] %v5549_v62 }
 0x354   : > { %1245 = vrot.lane.b32.xlu0 %v7519_v16, %s7590_s30  ;;  %v7527_v16 = vrot.slane %v5477_v55, 4  ;;  %v7538_v55 = vrot.slane %v5497_v3, 6  ;;  %v7550_v3 = vrot.slane %v5521_v37, 2 }
 0x355   : > { %v5507_v33 = vpop.permute.xlu1 %2106 }
 0x356   : > { %v5505_v25 = vpop.permute.xlu0 %2218 }
 0x357   : > { %1002 = vrot.lane.b32.xlu1 %v7530_v45, %s7881_s19 }
 0x358   : > { %1249 = vrot.lane.b32.xlu0 %v7527_v16, %s7590_s30  ;;  %v7540_v16 = vrot.slane %v5501_v40, 6  ;;  %v5565_v40 = vsel %vm1280_vm12, %v7907_v15, %v7912_v0  ;;  %v7561_v0 = vrot.slane %v5573_v61, 2  ;;  %v7929_v61 = vld [vmem:[#allocation28_spill] sm:$0xff]  ;;  %vm1943_vm12 = vcmask 891904  }
 0x359   : > { %v5531_v45 = vpop.permute.xlu1 %1604  ;;  %7917 = vst [vmem:[#allocation158_spill] sm:$0xff] %v5565_v40  ;;  %v5569_v51 = vmul.f32 %v5565_v40, %v4883_v19 }
 0x35a   : > { %v5529_v43 = vpop.permute.xlu0 %2214 }
 0x35b   : > { %1073 = vrot.lane.b32.xlu1 %v7540_v16, %s7601_s26  ;;  %7918 = vst [vmem:[#allocation159_spill] sm:$0xff] %v5569_v51  ;;  %v7560_v4 = vrot.slane %v5569_v51, 6  ;;  %v7927_v51 = vrot.slane %v4973_v18, 2  ;;  %s7956_s26 = smov 46  }
 0x35c   : > { %1306 = vrot.lane.b32.xlu0 %v7538_v55, %s7562_s28  ;;  %v7545_v55 = vrot.slane %v5525_v47, 6 }
 0x35d   : > { %v5555_v16 = vpop.permute.xlu1 %1977 }
 0x35e   : > { %v5553_v5 = vpop.permute.xlu0 %2449 }
 0x35f   : > { %1186 = vrot.lane.b32.xlu1 %v7550_v3, %s7548_s17  ;;  %s7578_s17 = smov 31   ;;  %v7921_v3 = vld [vmem:[#allocation57_spill] sm:$0xff] }
 0x360   : > { %1310 = vrot.lane.b32.xlu0 %v7545_v55, %s7562_s28  ;;  %v7558_v55 = vrot.slane %v5549_v62, 4  ;;  %v5589_v40 = vmul.f32 %v7921_v3, %v4886_v6 }
 0x361   : > { %v5579_v37 = vpop.permute.xlu1 %2934 }
 0x362   : > { %v5577_v47 = vpop.permute.xlu0 %1935  ;;  %7922 = vst [vmem:[#allocation57_spill] sm:$0xff] %v5589_v40 }
 0x363   : > { %1247 = vrot.lane.b32.xlu1 %v7558_v55, %s7590_s30  ;;  %v7923_v55 = vld [vmem:[#allocation26_spill] sm:$0xff]  ;;  %s7625_s30 = smov 108  }
 0x364   : > { %1419 = vrot.lane.b32.xlu0 %v7557_v9, %s7578_s17  ;;  %v5605_v62 = vsel %vm1465_vm14, %v7921_v3, %v7923_v55  ;;  %vm1897_vm14 = vcmask 1022976  }
 0x365   : > { %v885_v63 = vpop.permute.xlu1 %884  ;;  %7924 = vst [vmem:[#allocation161_spill] sm:$0xff] %v5605_v62 }
 0x366   : > { %v1932_v15 = vpop.permute.xlu0 %1931  ;;  %v894_v60 = vsel %vm865_vm9, %v5323_v48, %v885_v63  ;;  %v895_v9 = vsel %vm865_vm9, %v885_v63, %v5347_v10  ;;  %v5609_v48 = vmul.f32 %v5605_v62, %v4883_v19  ;;  %v7568_v63 = vrot.slane %v5589_v40, 4  ;;  %v7928_v62 = vld [vmem:[#allocation59_spill] sm:$0xff] }
 0x367   : > { %902 = vst [vmem:[#allocation3 + $0x230] sm:$0xff] %v894_v60  ;;  %903 = vst [vmem:[#allocation3 + $0x238] sm:$0xff] %v895_v9  ;;  %1308 = vrot.lane.b32.xlu1 %v7560_v4, %s7562_s28  ;;  %v5613_v60 = vmul.f32 %v7923_v55, %v4891_v30  ;;  %s7572_s28 = smov 126   ;;  %v5630_v55 = vsel %vm2791_vm0, %v7929_v61, %v7928_v62  ;;  %vm7586_vm0 = vcmask 367616  }
 0x368   : > { %1423 = vrot.lane.b32.xlu0 %v7561_v0, %s7578_s17  ;;  %7925 = vst [vmem:[#allocation162_spill] sm:$0xff] %v5609_v48  ;;  %7930 = vst [vmem:[#allocation59_spill] sm:$0xff] %v5630_v55 }
 0x369   : > { %7926 = vst [vmem:[#allocation163_spill] sm:$0xff] %v5613_v60  ;;  %v1126_v10 = vpop.permute.xlu1 %1125 }
 0x36a   : > { %v5616_v9 = vpop.permute.xlu0 %2110  ;;  %v1136_v4 = vsel %vm1135_vm15, %v5381_v1, %v1126_v10  ;;  %v1137_v0 = vsel %vm1135_vm15, %v1126_v10, %v5406_v17  ;;  %v5634_v1 = vmul.f32 %v5630_v55, %v4883_v19  ;;  %v7571_v17 = vrot.slane %v5613_v60, 4  ;;  %v7932_v55 = vld [vmem:[#allocation61_spill] sm:$0xff] }
 0x36b   : > { %1144 = vst [vmem:[#allocation3 + $0xa0] sm:$0xff] %v1136_v4  ;;  %1145 = vst [vmem:[#allocation3 + $0xa8] sm:$0xff] %v1137_v0  ;;  %1421 = vrot.lane.b32.xlu1 %v7927_v51, %s7578_s17  ;;  %v5638_v4 = vmul.f32 %v7928_v62, %v4891_v30  ;;  %v7574_v0 = vrot.slane %v5609_v48, 4  ;;  %v5656_v40 = vmul.f32 %v7932_v55, %v4891_v30  ;;  %s7595_s17 = smov 74  }
 0x36c   : > { %1491 = vrot.lane.b32.xlu0 %v7568_v63, %s7572_s28  ;;  %7931 = vst [vmem:[#allocation28_spill] sm:$0xff] %v5634_v1 }
 0x36d   : > { %v1361_v18 = vpop.permute.xlu1 %1360 }
 0x36e   : > { %v5642_v10 = vpop.permute.xlu0 %1608  ;;  %v1371_v51 = vsel %vm7593_vm10, %v5431_v38, %v1361_v18  ;;  %v1372_v63 = vsel %vm7593_vm10, %v1361_v18, %v5456_v21  ;;  %v7576_v38 = vrot.slane %v5634_v1, 4  ;;  %v7577_v21 = vrot.slane %v5638_v4, 4  ;;  %v7938_v1 = vld [vmem:[#allocation29_spill] sm:$0xff] }
 0x36f   : > { %1379 = vst [vmem:[#allocation3 + $0x2d0] sm:$0xff] %v1371_v51  ;;  %1380 = vst [vmem:[#allocation3 + $0x2d8] sm:$0xff] %v1372_v63  ;;  %1493 = vrot.lane.b32.xlu1 %v7574_v0, %s7572_s28  ;;  %v7933_v0 = vld [vmem:[#allocation64_spill] sm:$0xff]  ;;  %vm2310_vm10 = vcmask 293888  }
 0x370   : > { %1495 = vrot.lane.b32.xlu0 %v7571_v17, %s7572_s28  ;;  %s7597_s28 = smov 75   ;;  %v5674_v48 = vsel %vm1526_vm3, %v7850_v41, %v7933_v0  ;;  %vm3272_vm3 = vcmask 572416  }
 0x371   : > { %v2217_v63 = vpop.permute.xlu1 %2216  ;;  %7934 = vst [vmem:[#allocation61_spill] sm:$0xff] %v5674_v48 }
 0x372   : > { %v5660_v18 = vpop.permute.xlu0 %1981  ;;  %v2227_v51 = vsel %vm7585_vm11, %v5529_v43, %v2217_v63  ;;  %v2228_v17 = vsel %vm7585_vm11, %v2217_v63, %v5505_v25  ;;  %v5678_v43 = vmul.f32 %v7929_v61, %v4886_v6  ;;  %v5682_v25 = vmul.f32 %v5674_v48, %v4883_v19 }
 0x373   : > { %2235 = vst [vmem:[#allocation3 + $0x50] sm:$0xff] %v2227_v51  ;;  %2236 = vst [vmem:[#allocation3 + $0x58] sm:$0xff] %v2228_v17  ;;  %2819 = vrot.lane.b32.xlu1 %v7576_v38, %s7597_s28  ;;  %v7582_v17 = vrot.slane %v5656_v40, 2  ;;  %v7937_v48 = vrot.slane %v4982_v56, 2  ;;  %vm1616_vm11 = vcmask 769024  }
 0x374   : > { %2821 = vrot.lane.b32.xlu0 %v7577_v21, %s7597_s28  ;;  %7935 = vst [vmem:[#allocation64_spill] sm:$0xff] %v5678_v43  ;;  %7936 = vst [vmem:[#allocation164_spill] sm:$0xff] %v5682_v25 }
 0x375   : > { %v1934_v51 = vpop.permute.xlu1 %1933 }
 0x376   : > { %v5685_v63 = vpop.permute.xlu0 %2930  ;;  %v1944_v38 = vsel %vm1943_vm12, %v1932_v15, %v1934_v51  ;;  %v1945_v21 = vsel %vm1943_vm12, %v1934_v51, %v5577_v47  ;;  %v5698_v15 = vmul.f32 %v7938_v1, %v4886_v6  ;;  %v7588_v47 = vrot.slane %v5678_v43, 4  ;;  %v2184_v1 = vld [vmem:[#allocation2 + $0x28] sm:$0x3] }
 0x377   : > { %1952 = vst [vmem:[#allocation3 + $0xc0] sm:$0xf0] %v1944_v38  ;;  %1953 = vst [vmem:[#allocation3 + $0xc8] sm:$0xf0] %v1945_v21  ;;  %3239 = vrot.lane.b32.xlu1 %v7937_v48, %s7595_s17  ;;  %v7587_v38 = vrot.slane %v5682_v25, 6 }
 0x378   : > { %3241 = vrot.lane.b32.xlu0 %v7582_v17, %s7595_s17  ;;  %7939 = vst [vmem:[#allocation165_spill] sm:$0xff] %v5698_v15 }
 0x379   : > { %v2109_v51 = vpop.permute.xlu1 %2108 }
 0x37a   : > { %v1888_v21 = vpop.permute.xlu0 %1887  ;;  %v2119_v48 = vsel %vm7586_vm0, %v5507_v33, %v2109_v51  ;;  %v2120_v41 = vsel %vm7586_vm0, %v2109_v51, %v5616_v9  ;;  %vm1761_vm0 = vcmask 670720   ;;  %v7943_v9 = vld [vmem:[#allocation32_spill] sm:$0xff] }
 0x37b   : > { %v1898_v17 = vsel %vm1897_vm14, %v5481_v11, %v1888_v21  ;;  %v1899_v56 = vsel %vm1897_vm14, %v1888_v21, %v5349_v26  ;;  %2127 = vst [vmem:[#allocation3 + $0x2f0] sm:$0xf0] %v2119_v48  ;;  %2128 = vst [vmem:[#allocation3 + $0x2f8] sm:$0xf0] %v2120_v41  ;;  %1554 = vrot.lane.b32.xlu1 %v7587_v38, %s7603_s16  ;;  %v7940_v26 = vld [vmem:[#allocation67_spill] sm:$0xff]  ;;  %v7941_v11 = vld [vmem:[#allocation37_spill] sm:$0xff] }
 0x37c   : > { %1906 = vst [vmem:[#allocation3 + $0x30] sm:$0xc0] %v1898_v17  ;;  %1907 = vst [vmem:[#allocation3 + $0x38] sm:$0xc0] %v1899_v56  ;;  %2817 = vrot.lane.b32.xlu0 %v7588_v47, %s7597_s28  ;;  %v5719_v33 = vsel %vm3272_vm3, %v7941_v11, %v7940_v26  ;;  %v5723_v17 = vmul.f32 %v7943_v9, %v4886_v6  ;;  %v7594_v41 = vrot.slane %v5698_v15, 2  ;;  %vm2461_vm3 = vcmask 490496  }
 0x37d   : > { %7942 = vst [vmem:[#allocation67_spill] sm:$0xff] %v5719_v33  ;;  %v5728_v21 = vmul.f32 %v5719_v33, %v4883_v19  ;;  %v1607_v56 = vpop.permute.xlu1 %1606  ;;  %s7605_s28 = smov 58  }
 0x37e   : > { %v2063_v51 = vpop.permute.xlu0 %2062  ;;  %v1617_v47 = vsel %vm1616_vm11, %v5531_v45, %v1607_v56  ;;  %v1618_v25 = vsel %vm1616_vm11, %v1607_v56, %v5642_v10  ;;  %v5751_v10 = vmul.f32 %v7933_v0, %v4891_v30 }
 0x37f   : > { %7944 = vst [vmem:[#allocation32_spill] sm:$0xff] %v5728_v21  ;;  %v2073_v48 = vsel %vm7592_vm5, %v5408_v44, %v2063_v51  ;;  %v2074_v38 = vsel %vm7592_vm5, %v2063_v51, %v5383_v24  ;;  %1625 = vst [vmem:[#allocation3 + $0x140] sm:$0xff] %v1617_v47  ;;  %v7945_v44 = vrot.slane %v4990_v59, 2  ;;  %vm1989_vm5 = vcmask 760832   ;;  %v7946_v24 = vld [vmem:[#allocation69_spill] sm:$0xff] }
 0x380   : > { %2081 = vst [vmem:[#allocation3 + $0x260] sm:$0xc0] %v2073_v48  ;;  %2082 = vst [vmem:[#allocation3 + $0x268] sm:$0xc0] %v2074_v38  ;;  %3237 = vrot.lane.b32.xlu0 %v7594_v41, %s7595_s17  ;;  %v5747_v45 = vsel %vm1761_vm0, %v7868_v42, %v7946_v24  ;;  %v7599_v59 = vrot.slane %v5728_v21, 4  ;;  %s7949_s17 = smov 62  }
 0x381   : > { %1626 = vst [vmem:[#allocation3 + $0x148] sm:$0xff] %v1618_v25  ;;  %2277 = vrot.lane.b32.xlu1 %v7945_v44, %s7625_s30  ;;  %7947 = vst [vmem:[#allocation69_spill] sm:$0xff] %v5747_v45  ;;  %v7600_v25 = vrot.slane %v5723_v17, 4  ;;  %v5756_v47 = vmul.f32 %v5747_v45, %v4883_v19  ;;  %v1980_v51 = vpop.permute.xlu1 %1979  ;;  %vm7637_vm0 = vcmask 875520  }
 0x382   : > { %v2452_v38 = vpop.permute.xlu0 %2451  ;;  %v1990_v44 = vsel %vm1989_vm5, %v5555_v16, %v1980_v51  ;;  %v1991_v41 = vsel %vm1989_vm5, %v1980_v51, %v5660_v18  ;;  %v7953_v18 = vld [vmem:[#allocation34_spill] sm:$0xff]  ;;  %v7608_v51 = vrot.slane %v5751_v10, 6 }
 0x383   : > { %7948 = vst [vmem:[#allocation166_spill] sm:$0xff] %v5756_v47  ;;  %v2462_v56 = vsel %vm2461_vm3, %v5553_v5, %v2452_v38  ;;  %v2463_v48 = vsel %vm2461_vm3, %v2452_v38, %v5433_v32  ;;  %1998 = vst [vmem:[#allocation3 + $0x150] sm:$0xfc] %v1990_v44  ;;  %v7950_v5 = vld [vmem:[#allocation73_spill] sm:$0xff]  ;;  %v5780_v38 = vmul.f32 %v7953_v18, %v4886_v6 }
 0x384   : > { %2470 = vst [vmem:[#allocation3 + $0x280] sm:$0xff] %v2462_v56  ;;  %2471 = vst [vmem:[#allocation3 + $0x288] sm:$0xff] %v2463_v48  ;;  %1726 = vrot.lane.b32.xlu0 %v7600_v25, %s7949_s17  ;;  %v7951_v32 = vld [vmem:[#allocation49_spill] sm:$0xff]  ;;  %v7607_v56 = vrot.slane %v5756_v47, 6 }
 0x385   : > { %1999 = vst [vmem:[#allocation3 + $0x158] sm:$0xfc] %v1991_v41  ;;  %3300 = vrot.lane.b32.xlu1 %v7599_v59, %s7605_s28  ;;  %v5776_v16 = vsel %vm2310_vm10, %v7951_v32, %v7950_v5  ;;  %7954 = vst [vmem:[#allocation168_spill] sm:$0xff] %v5780_v38  ;;  %v5788_v44 = vpop.permute.xlu1 %2647  ;;  %vm7633_vm10 = vcmask 351232   ;;  %s7621_s28 = smov 92  }
 0x386   : > { %7952 = vst [vmem:[#allocation167_spill] sm:$0xff] %v5776_v16  ;;  %v5784_v41 = vmul.f32 %v5776_v16, %v4883_v19  ;;  %v2698_v48 = vpop.permute.xlu0 %2697  ;;  %v7957_v19 = vld [vmem:[#allocation66_spill] sm:$0xff] }
 0x387   : > { %v2708_v59 = vsel %vm7637_vm0, %v5483_v53, %v2698_v48  ;;  %v2709_v25 = vsel %vm7637_vm0, %v2698_v48, %v5458_v57  ;;  %v5802_v6 = vmul.f32 %v7957_v19, %v4891_v30  ;;  %v7612_v53 = vrot.slane %v5780_v38, 6  ;;  %v1101_v19 = vld [vmem:[#allocation2 + $0x28] sm:$0x3] }
 0x388   : > { %7955 = vst [vmem:[#allocation169_spill] sm:$0xff] %v5784_v41  ;;  %2716 = vst [vmem:[#allocation3 + $0xf0] sm:$0xff] %v2708_v59  ;;  %1556 = vrot.lane.b32.xlu0 %v7608_v51, %s7603_s16  ;;  %v7611_v32 = vrot.slane %v5784_v41, 4  ;;  %s7959_s16 = smov 59   ;;  %v7960_v51 = vld [vmem:[#allocation35_spill] sm:$0xff]  ;;  %v1116_v15 = vmul.f32 %v4693_v50, %v1101_v19  ;;  %vm3037_vm0 = vcmask 48128  }
 0x389   : > { %2717 = vst [vmem:[#allocation3 + $0xf8] sm:$0xff] %v2709_v25  ;;  %1789 = vrot.lane.b32.xlu1 %v7607_v56, %s7956_s26  ;;  %7958 = vst [vmem:[#allocation170_spill] sm:$0xff] %v5802_v6  ;;  %v5806_v59 = vpop.permute.xlu1 %3067  ;;  %v4211_v56 = vld [vmem:[#allocation2] sm:$0xff] }
 0x38a   : > { %v2933_v57 = vpop.permute.xlu0 %2932  ;;  %v5819_v47 = vmul.f32 %v4211_v56, %v7960_v51 }
 0x38b   : > { %v2943_v25 = vsel %vm7633_vm10, %v5685_v63, %v2933_v57  ;;  %v2944_v48 = vsel %vm7633_vm10, %v2933_v57, %v5579_v37  ;;  %v7616_v63 = vrot.slane %v5802_v6, 2  ;;  %v858_v57 = vld [vmem:[#allocation2 + $0x18] sm:$0x3]  ;;  %vm2617_vm10 = vcmask 39936  }
 0x38c   : > { %2951 = vst [vmem:[#allocation3 + $0x320] sm:$0xff] %v2943_v25  ;;  %2952 = vst [vmem:[#allocation3 + $0x328] sm:$0xff] %v2944_v48  ;;  %2878 = vrot.lane.b32.xlu0 %v7612_v53, %s7959_s16  ;;  %v7961_v25 = vrot.slane %v5005_v27, 2  ;;  %v7623_v48 = vrot.slane %v5819_v47, 2  ;;  %v873_v41 = vmul.f32 %v4761_v28, %v858_v57  ;;  %v5849_v27 = vmul.f32 %v4211_v56, %v7941_v11  ;;  %v1099_v57 = vld [vmem:[#allocation2 + $0x18] sm:$0x3] }
 0x38d   : > { %2338 = vrot.lane.b32.xlu1 %v7611_v32, %s7621_s28  ;;  %v5824_v37 = vpop.permute.xlu1 %2643  ;;  %v5833_v32 = vld [vmem:[#allocation2 + $0x10] sm:$0xff]  ;;  %s7964_s28 = smov 58   ;;  %v1114_v38 = vmul.f32 %v4777_v36, %v1099_v57  ;;  %v1334_v57 = vld [vmem:[#allocation2 + $0x18] sm:$0x3] }
 0x38e   : > { %v5822_v21 = vpop.permute.xlu0 %708  ;;  %v5837_v53 = vmul.f32 %v5833_v32, %v7940_v26  ;;  %7963 = vst [vmem:[#allocation35_spill] sm:$0xff] %v5849_v27 }
 0x390   : > { %2279 = vrot.lane.b32.xlu0 %v7616_v63, %s7625_s30  ;;  %v860_v63 = vld [vmem:[#allocation2 + $0x28] sm:$0x3] }
 0x391   : > { %2758 = vrot.lane.b32.xlu1 %v7961_v25, %s7617_s0  ;;  %v5842_v45 = vpop.permute.xlu1 %3063  ;;  %s7962_s0 = smov 64   ;;  %v7627_v25 = vrot.slane %v5837_v53, 4  ;;  %v875_v33 = vmul.f32 %v4677_v46, %v860_v63 }
 0x392   : > { %v5840_v16 = vpop.permute.xlu0 %712 }
 0x394   : > { %2275 = vrot.lane.b32.xlu0 %v7623_v48, %s7625_s30  ;;  %v7631_v48 = vrot.slane %v5849_v27, 4  ;;  %s7966_s30 = smov 111   ;;  %v1336_v27 = vld [vmem:[#allocation2 + $0x28] sm:$0x3] }
 0x395   : > { %888 = vrot.lane.b32.xlu1 %v873_v41, %s7962_s0  ;;  %v5855_v28 = vpop.permute.xlu1 %1730  ;;  %v5863_v41 = vmul.f32 %v5833_v32, %v7946_v24 }
 0x396   : > { %v5853_v6 = vpop.permute.xlu0 %769 }
 0x397   : > { %7965 = vst [vmem:[#allocation171_spill] sm:$0xff] %v5863_v41  ;;  %v7634_v11 = vrot.slane %v5863_v41, 6 }
 0x398   : > { %3302 = vrot.lane.b32.xlu0 %v7627_v25, %s7964_s28 }
 0x399   : > { %892 = vrot.lane.b32.xlu1 %v875_v33, %s7962_s0  ;;  %v5869_v63 = vpop.permute.xlu1 %1552  ;;  %v7967_v33 = vld [vmem:[#allocation48_spill] sm:$0xff] }
 0x39a   : > { %v5867_v46 = vpop.permute.xlu0 %773  ;;  %v5876_v25 = vmul.f32 %v4211_v56, %v7967_v33 }
 0x39c   : > { %3298 = vrot.lane.b32.xlu0 %v7631_v48, %s7964_s28  ;;  %7968 = vst [vmem:[#allocation172_spill] sm:$0xff] %v5876_v25  ;;  %v7638_v56 = vrot.slane %v5876_v25, 6  ;;  %v1349_v48 = vmul.f32 %v4793_v7, %v1334_v57  ;;  %v1351_v7 = vmul.f32 %v4705_v54, %v1336_v27  ;;  %v2207_v25 = vmul.f32 %v4817_v35, %v2184_v1 }
 0x39d   : > { %1129 = vrot.lane.b32.xlu1 %v1114_v38, %s7966_s30  ;;  %v5882_v36 = vpop.permute.xlu1 %2882  ;;  %v5890_v38 = vmul.f32 %v5833_v32, %v7950_v5 }
 0x39e   : > { %v5880_v43 = vpop.permute.xlu0 %830 }
 0x39f   : > { %7969 = vst [vmem:[#allocation173_spill] sm:$0xff] %v5890_v38  ;;  %v7640_v5 = vrot.slane %v5890_v38, 4  ;;  %v5938_v38 = vsel %vm3037_vm0, %v7842_v31, %v4825_v34  ;;  %vm2852_vm0 = vcmask 564224  }
 0x3a0   : > { %1791 = vrot.lane.b32.xlu0 %v7634_v11, %s7956_s26  ;;  %7979 = vst [vmem:[#allocation177_spill] sm:$0xff] %v5938_v38 }
 0x3a1   : > { %1133 = vrot.lane.b32.xlu1 %v1116_v15, %s7966_s30  ;;  %v5896_v19 = vpop.permute.xlu1 %3128  ;;  %v7972_v15 = vld [vmem:[#allocation74_spill] sm:$0xff] }
 0x3a2   : > { %v5894_v50 = vpop.permute.xlu0 %834  ;;  %v5904_v11 = vmul.f32 %v5833_v32, %v7972_v15 }
 0x3a4   : > { %3359 = vrot.lane.b32.xlu0 %v7638_v56, %s7970_s1  ;;  %7973 = vst [vmem:[#allocation174_spill] sm:$0xff] %v5904_v11  ;;  %v5920_v56 = vld [vmem:[#allocation2 + $0x8] sm:$0xff]  ;;  %v7645_v27 = vrot.slane %v5904_v11, 2 }
 0x3a5   : > { %1364 = vrot.lane.b32.xlu1 %v1349_v48, %s7971_s2  ;;  %v5910_v41 = vpop.permute.xlu1 %3124  ;;  %v5918_v48 = vsel %vm2617_vm10, %v4733_v12, %v4823_v23  ;;  %vm1700_vm10 = vcmask 539648  }
 0x3a6   : > { %v5908_v57 = vpop.permute.xlu0 %941  ;;  %7975 = vst [vmem:[#allocation175_spill] sm:$0xff] %v5918_v48  ;;  %v5924_v54 = vmul.f32 %v5920_v56, %v5918_v48  ;;  %v5942_v48 = vmul.f32 %v5920_v56, %v5938_v38 }
 0x3a8   : > { %2340 = vrot.lane.b32.xlu0 %v7640_v5, %s7974_s3  ;;  %7976 = vst [vmem:[#allocation176_spill] sm:$0xff] %v5924_v54  ;;  %7980 = vst [vmem:[#allocation178_spill] sm:$0xff] %v5942_v48  ;;  %v7649_v35 = vrot.slane %v5924_v54, 6 }
 0x3a9   : > { %1368 = vrot.lane.b32.xlu1 %v1351_v7, %s7971_s2  ;;  %v5930_v5 = vpop.permute.xlu1 %1787  ;;  %v2427_v7 = vld [vmem:[#allocation2 + $0x28] sm:$0x3] }
 0x3aa   : > { %v5928_v15 = vpop.permute.xlu0 %945  ;;  %v2442_v1 = vmul.f32 %v4835_v52, %v2427_v7  ;;  %v7655_v7 = vrot.slane %v5942_v48, 4 }
 0x3ac   : > { %2760 = vrot.lane.b32.xlu0 %v7645_v27, %s7977_s4  ;;  %v2425_v27 = vld [vmem:[#allocation2 + $0x18] sm:$0x3] }
 0x3ad   : > { %2224 = vrot.lane.b32.xlu1 %v2207_v25, %s7978_s5  ;;  %v5948_v60 = vpop.permute.xlu1 %2514  ;;  %v5956_v25 = vsel %vm1700_vm10, %v7943_v9, %v7848_v39  ;;  %v2440_v52 = vmul.f32 %v4747_v20, %v2425_v27  ;;  %vm3098_vm10 = vcmask 179200  }
 0x3ae   : > { %v5946_v23 = vpop.permute.xlu0 %1000  ;;  %7982 = vst [vmem:[#allocation179_spill] sm:$0xff] %v5956_v25  ;;  %v5960_v11 = vmul.f32 %v5920_v56, %v5956_v25 }
 0x3b0   : > { %2645 = vrot.lane.b32.xlu0 %v7649_v35, %s7981_s6  ;;  %7983 = vst [vmem:[#allocation180_spill] sm:$0xff] %v5960_v11  ;;  %v2673_v35 = vld [vmem:[#allocation2 + $0x28] sm:$0x3]  ;;  %v7660_v27 = vrot.slane %v5960_v11, 4  ;;  %v2906_v11 = vld [vmem:[#allocation2 + $0x18] sm:$0x3] }
 0x3b1   : > { %2459 = vrot.lane.b32.xlu1 %v2442_v1, %s7835_s29  ;;  %v5966_v31 = vpop.permute.xlu1 %2510  ;;  %v5974_v1 = vsel %vm2852_vm0, %v7953_v18, %v7857_v49  ;;  %v2688_v54 = vmul.f32 %v4839_v14, %v2673_v35  ;;  %vm720_vm0 = vcmask 916480  }
 0x3b2   : > { %v5964_v38 = vpop.permute.xlu0 %1004  ;;  %7985 = vst [vmem:[#allocation181_spill] sm:$0xff] %v5974_v1  ;;  %v5978_v20 = vmul.f32 %v5920_v56, %v5974_v1 }
 0x3b4   : > { %3065 = vrot.lane.b32.xlu0 %v7655_v7, %s7984_s27  ;;  %v2908_v7 = vld [vmem:[#allocation2 + $0x28] sm:$0x3]  ;;  %v7668_v14 = vrot.slane %v5978_v20, 6 }
 0x3b5   : > { %2455 = vrot.lane.b32.xlu1 %v2440_v52, %s7835_s29  ;;  %v5984_v39 = vpop.permute.xlu1 %3363  ;;  %v5992_v52 = vsel %vm3098_vm10, %v7866_v13, %v7861_v58  ;;  %v2923_v35 = vmul.f32 %v4855_v29, %v2908_v7  ;;  %vm3333_vm10 = vcmask 703488   ;;  %v2921_v29 = vmul.f32 %v4787_v2, %v2906_v11  ;;  %v2044_v2 = vld [vmem:[#allocation2 + $0x28] sm:$0x3] }
 0x3b6   : > { %v5982_v25 = vpop.permute.xlu0 %1071  ;;  %7986 = vst [vmem:[#allocation182_spill] sm:$0xff] %v5992_v52  ;;  %v5996_v48 = vmul.f32 %v5920_v56, %v5992_v52  ;;  %v1867_v52 = vld [vmem:[#allocation2 + $0x18] sm:$0x3]  ;;  %v6024_v11 = vsel %vm3333_vm10, %v7967_v33, %v7884_v8  ;;  %vm7681_vm10 = vcmask 1039360  }
 0x3b7   : > { %7990 = vst [vmem:[#allocation184_spill] sm:$0xff] %v6024_v11  ;;  %v2182_v8 = vld [vmem:[#allocation2 + $0x18] sm:$0x3] }
 0x3b8   : > { %1728 = vrot.lane.b32.xlu0 %v7660_v27, %s7949_s17  ;;  %7987 = vst [vmem:[#allocation183_spill] sm:$0xff] %v5996_v48  ;;  %v7666_v7 = vrot.slane %v5996_v48, 6  ;;  %v2671_v48 = vld [vmem:[#allocation2 + $0x18] sm:$0x3] }
 0x3b9   : > { %2705 = vrot.lane.b32.xlu1 %v2688_v54, %s7838_s23  ;;  %v711_v18 = vpop.permute.xlu1 %710 }
 0x3ba   : > { %v6000_v1 = vpop.permute.xlu0 %1075  ;;  %v721_v54 = vsel %vm720_vm0, %v5822_v21, %v711_v18  ;;  %v722_v27 = vsel %vm720_vm0, %v711_v18, %v5840_v16 }
 0x3bb   : > { %729 = vst [vmem:[#allocation3 + $0x80] sm:$0xc0] %v721_v54  ;;  %730 = vst [vmem:[#allocation3 + $0x88] sm:$0xc0] %v722_v27  ;;  %v1879_v27 = vrot.slane %v1867_v52, 2 }
 0x3bc   : > { %2880 = vrot.lane.b32.xlu0 %v7668_v14, %s7959_s16 }
 0x3bd   : > { %2940 = vrot.lane.b32.xlu1 %v2923_v35, %s7988_s14  ;;  %v772_v21 = vpop.permute.xlu1 %771 }
 0x3be   : > { %v6012_v58 = vpop.permute.xlu0 %1184  ;;  %v782_v16 = vsel %vm781_vm8, %v5853_v6, %v772_v21  ;;  %v783_v18 = vsel %vm781_vm8, %v772_v21, %v5867_v46  ;;  %v6028_v6 = vmul.f32 %v5920_v56, %v6024_v11  ;;  %v7992_v21 = vld [vmem:[#allocation84_spill] sm:$0xff]  ;;  %v1913_v56 = vld [vmem:[#allocation2 + $0x18] sm:$0x3] }
 0x3bf   : > { %790 = vst [vmem:[#allocation3 + $0x110] sm:$0xf0] %v782_v16  ;;  %791 = vst [vmem:[#allocation3 + $0x118] sm:$0xf0] %v783_v18  ;;  %v2058_v16 = vrot.slane %v2044_v2, 2  ;;  %v7994_v18 = vld [vmem:[#allocation91_spill] sm:$0xff] }
 0x3c0   : > { %3126 = vrot.lane.b32.xlu0 %v7666_v7, %s7989_s21  ;;  %7991 = vst [vmem:[#allocation185_spill] sm:$0xff] %v6028_v6  ;;  %v7995_v7 = vrot.slane %v7994_v18, 2  ;;  %v7679_v14 = vrot.slane %v6028_v6, 6  ;;  %v7997_v2 = vld [vmem:[#allocation81_spill] sm:$0xff]  ;;  %v1100_v6 = vld [vmem:[#allocation2 + $0x20] sm:$0x3] }
 0x3c1   : > { %2936 = vrot.lane.b32.xlu1 %v2921_v29, %s7988_s14  ;;  %v833_v46 = vpop.permute.xlu1 %832  ;;  %v1880_v29 = vsel %vm698_vm13, %v7992_v21, %v1879_v27 }
 0x3c2   : > { %v1189_v35 = vpop.permute.xlu0 %1188  ;;  %v843_v52 = vsel %vm842_vm7, %v5880_v43, %v833_v46  ;;  %v844_v54 = vsel %vm842_vm7, %v833_v46, %v5894_v50  ;;  %v7998_v46 = vrot.slane %v7997_v2, 2 }
 0x3c3   : > { %851 = vst [vmem:[#allocation3 + $0x1a0] sm:$0xfc] %v843_v52  ;;  %852 = vst [vmem:[#allocation3 + $0x1a8] sm:$0xfc] %v844_v54  ;;  %v1925_v54 = vrot.slane %v1913_v56, 4  ;;  %v8001_v56 = vld [vmem:[#allocation87_spill] sm:$0xff] }
 0x3c4   : > { %2512 = vrot.lane.b32.xlu0 %v7995_v7, %s7993_s24  ;;  %v2059_v52 = vsel %vm698_vm13, %v7998_v46, %v2058_v16  ;;  %v2090_v7 = vld [vmem:[#allocation2 + $0x28] sm:$0x3] }
 0x3c5   : > { %1891 = vrot.lane.b32.xlu1 %v1880_v29, %s7996_s12  ;;  %v944_v43 = vpop.permute.xlu1 %943  ;;  %v8000_v29 = vld [vmem:[#allocation30_spill] sm:$0xff] }
 0x3c6   : > { %v1246_v33 = vpop.permute.xlu0 %1245  ;;  %v953_v50 = vsel %vm7689_vm4, %v5908_v57, %v944_v43  ;;  %v954_v27 = vsel %vm7689_vm4, %v944_v43, %v5928_v15  ;;  %v2205_v18 = vmul.f32 %v8000_v29, %v2182_v8  ;;  %v1926_v43 = vsel %vm436_vm2, %v8001_v56, %v1925_v54  ;;  %v8003_v8 = vld [vmem:[#allocation39_spill] sm:$0xff]  ;;  %v1581_v29 = vld [vmem:[#allocation2 + $0x20] sm:$0x3] }
 0x3c7   : > { %961 = vst [vmem:[#allocation3 + $0x2b0] sm:$0xc0] %v953_v50  ;;  %962 = vst [vmem:[#allocation3 + $0x2b8] sm:$0xc0] %v954_v27  ;;  %v2104_v50 = vrot.slane %v2090_v7, 4  ;;  %v2686_v27 = vmul.f32 %v8003_v8, %v2671_v48  ;;  %v8004_v54 = vld [vmem:[#allocation98_spill] sm:$0xff] }
 0x3c8   : > { %3361 = vrot.lane.b32.xlu0 %v7679_v14, %s7970_s1  ;;  %v1959_v48 = vld [vmem:[#allocation2 + $0x18] sm:$0x3]  ;;  %vm7691_vm4 = vcmask 900096  }
 0x3c9   : > { %2070 = vrot.lane.b32.xlu1 %v2059_v52, %s7999_s13  ;;  %v1003_v11 = vpop.permute.xlu1 %1002  ;;  %v2105_v7 = vsel %vm436_vm2, %v8004_v54, %v2104_v50  ;;  %v1580_v14 = vld [vmem:[#allocation2 + $0x18] sm:$0x3] }
 0x3ca   : > { %v1250_v57 = vpop.permute.xlu0 %1249  ;;  %v1012_v15 = vsel %vm7678_vm1, %v5946_v23, %v1003_v11  ;;  %v1013_v16 = vsel %vm7678_vm1, %v1003_v11, %v5964_v38  ;;  %v1582_v23 = vld [vmem:[#allocation2 + $0x28] sm:$0x3]  ;;  %vm7683_vm1 = vcmask 777216  }
 0x3cb   : > { %1020 = vst [vmem:[#allocation3 + $0x340] sm:$0xf0] %v1012_v15  ;;  %1021 = vst [vmem:[#allocation3 + $0x348] sm:$0xf0] %v1013_v16  ;;  %v8007_v16 = vld [vmem:[#allocation71_spill] sm:$0xff] }
 0x3cc   : > { %2220 = vrot.lane.b32.xlu0 %v2205_v18, %s7978_s5  ;;  %v8006_v18 = vld [vmem:[#allocation110_spill] sm:$0xff] }
 0x3cd   : > { %1937 = vrot.lane.b32.xlu1 %v1926_v43, %s8002_s25  ;;  %v1074_v52 = vpop.permute.xlu1 %1073  ;;  %v1596_v15 = vmul.f32 %v8006_v18, %v1581_v29  ;;  %v1597_v43 = vmul.f32 %v8007_v16, %v1582_v23  ;;  %v8009_v29 = vld [vmem:[#allocation46_spill] sm:$0xff] }
 0x3ce   : > { %v1307_v46 = vpop.permute.xlu0 %1306  ;;  %v1084_v38 = vsel %vm7681_vm10, %v5982_v25, %v1074_v52  ;;  %v1085_v11 = vsel %vm7681_vm10, %v1074_v52, %v6000_v1  ;;  %v1971_v52 = vrot.slane %v1959_v48, 6  ;;  %vm7685_vm10 = vcmask 646144   ;;  %v8010_v16 = vld [vmem:[#allocation82_spill] sm:$0xff] }
 0x3cf   : > { %1092 = vst [vmem:[#allocation3 + $0x10] sm:$0xfc] %v1084_v38  ;;  %1093 = vst [vmem:[#allocation3 + $0x18] sm:$0xfc] %v1085_v11  ;;  %v1595_v38 = vmul.f32 %v8009_v29, %v1580_v14  ;;  %v4214_v14 = vld [vmem:[#allocation3 + $0x8] sm:$0xff] }
 0x3d0   : > { %2701 = vrot.lane.b32.xlu0 %v2686_v27, %s7838_s23  ;;  %v1868_v27 = vld [vmem:[#allocation2 + $0x20] sm:$0x3] }
 0x3d1   : > { %2116 = vrot.lane.b32.xlu1 %v2105_v7, %s8005_s22  ;;  %v1187_v25 = vpop.permute.xlu1 %1186  ;;  %v859_v7 = vld [vmem:[#allocation2 + $0x20] sm:$0x3] }
 0x3d2   : > { %v1311_v8 = vpop.permute.xlu0 %1310  ;;  %v1197_v1 = vsel %vm7683_vm1, %v6012_v58, %v1187_v25  ;;  %v1198_v50 = vsel %vm7683_vm1, %v1187_v25, %v1189_v35  ;;  %v8011_v35 = vrot.slane %v8010_v16, 6  ;;  %vm7686_vm1 = vcmask 515072   ;;  %v1914_v29 = vld [vmem:[#allocation2 + $0x20] sm:$0x3] }
 0x3d3   : > { %1205 = vst [vmem:[#allocation3 + $0x120] sm:$0xc0] %v1197_v1  ;;  %1206 = vst [vmem:[#allocation3 + $0x128] sm:$0xc0] %v1198_v50  ;;  %v4215_v50 = vld [vmem:[#allocation3] sm:$0xff] }
 0x3d4   : > { %1614 = vrot.lane.b32.xlu0 %v1597_v43, %s8008_s11  ;;  %v1972_v48 = vsel %vm527_vm6, %v8011_v35, %v1971_v52  ;;  %v1881_v43 = vrot.slane %v1868_v27, 2  ;;  %v674_v35 = vld [vmem:[#allocation2 + $0x18] sm:$0x3] }
 0x3d5   : > { %1612 = vrot.lane.b32.xlu1 %v1596_v15, %s8008_s11  ;;  %v1248_v11 = vpop.permute.xlu1 %1247 }
 0x3d6   : > { %v1420_v23 = vpop.permute.xlu0 %1419  ;;  %v1258_v18 = vsel %vm7685_vm10, %v1246_v33, %v1248_v11  ;;  %v1259_v58 = vsel %vm7685_vm10, %v1248_v11, %v1250_v57  ;;  %v3446_v25 = vld [vmem:[#allocation3 + $0x18] sm:$0xff]  ;;  %v3445_v1 = vld [vmem:[#allocation3 + $0x10] sm:$0xff]  ;;  %vm7687_vm10 = vcmask 252928  }
 0x3d7   : > { %1266 = vst [vmem:[#allocation3 + $0x1b0] sm:$0xf0] %v1258_v18  ;;  %1267 = vst [vmem:[#allocation3 + $0x1b8] sm:$0xf0] %v1259_v58  ;;  %v3938_v15 = vpack.c.bf16 %v3446_v25, %v4214_v14  ;;  %v3940_v33 = vpack.c.bf16 %v3445_v1, %v4215_v50  ;;  %v8013_v57 = vld [vmem:[#allocation102_spill] sm:$0xff]  ;;  %v8015_v25 = vld [vmem:[#allocation36_spill] sm:$0xff] }
 0x3d8   : > { %1610 = vrot.lane.b32.xlu0 %v1595_v38, %s8008_s11  ;;  %v874_v11 = vmul.f32 %v8013_v57, %v859_v7  ;;  %v8014_v38 = vld [vmem:[#allocation85_spill] sm:$0xff]  ;;  %v1960_v7 = vld [vmem:[#allocation2 + $0x20] sm:$0x3]  ;;  %v689_v1 = vmul.f32 %v8015_v25, %v674_v35  ;;  %s8075_s11 = smov 95  }
 0x3d9   : > { %1983 = vrot.lane.b32.xlu1 %v1972_v48, %s8012_s10  ;;  %3939 = vmatprep.subr.bf16.mxu1 %v3938_v15  ;;  %v1309_v52 = vpop.permute.xlu1 %1308  ;;  %v1882_v58 = vsel %vm698_vm13, %v8014_v38, %v1881_v43  ;;  %v1927_v48 = vrot.slane %v1914_v29, 4  ;;  %v8016_v14 = vld [vmem:[#allocation106_spill] sm:$0xff]  ;;  %v8017_v29 = vld [vmem:[#allocation109_spill] sm:$0xff]  ;;  %v8019_v38 = vld [vmem:[#allocation107_spill] sm:$0xff] }
 0x3da   : > { %v1424_v16 = vpop.permute.xlu0 %1423  ;;  %v1319_v27 = vsel %vm7686_vm1, %v1307_v46, %v1309_v52  ;;  %v1320_v18 = vsel %vm7686_vm1, %v1309_v52, %v1311_v8  ;;  %3941 = vmatpush1.bf16.msra.mxu1 %v3940_v33  ;;  %v1115_v15 = vmul.f32 %v8016_v14, %v1100_v6  ;;  %v676_v8 = vld [vmem:[#allocation2 + $0x28] sm:$0x3]  ;;  %v1335_v33 = vld [vmem:[#allocation2 + $0x20] sm:$0x3]  ;;  %vm7688_vm1 = vcmask 1031168  }
 0x3db   : > { %1327 = vst [vmem:[#allocation3 + $0x240] sm:$0xfc] %v1319_v27  ;;  %1328 = vst [vmem:[#allocation3 + $0x248] sm:$0xfc] %v1320_v18  ;;  %v1928_v52 = vsel %vm436_vm2, %v8017_v29, %v1927_v48  ;;  %v1869_v6 = vld [vmem:[#allocation2 + $0x28] sm:$0x3] }
 0x3dc   : > { %890 = vrot.lane.b32.xlu0 %v874_v11, %s7962_s0  ;;  %v1973_v11 = vrot.slane %v1960_v7, 6  ;;  %v702_v35 = vrot.slane %v689_v1, 2  ;;  %v8018_v27 = vld [vmem:[#allocation16_spill] sm:$0xff]  ;;  %v8020_v7 = vld [vmem:[#allocation83_spill] sm:$0xff]  ;;  %v8022_v1 = vld [vmem:[#allocation38_spill] sm:$0xff]  ;;  %s8026_s0 = smov 112  }
 0x3dd   : > { %1893 = vrot.lane.b32.xlu1 %v1882_v58, %s7996_s12  ;;  %v1422_v50 = vpop.permute.xlu1 %1421  ;;  %v691_v18 = vmul.f32 %v8018_v27, %v676_v8  ;;  %v1350_v58 = vmul.f32 %v8019_v38, %v1335_v33 }
 0x3de   : > { %v1492_v46 = vpop.permute.xlu0 %1491  ;;  %v1432_v57 = vsel %vm7687_vm10, %v1420_v23, %v1422_v50  ;;  %v1433_v43 = vsel %vm7687_vm10, %v1422_v50, %v1424_v16  ;;  %v736_v16 = vld [vmem:[#allocation2 + $0x18] sm:$0x3]  ;;  %v8021_v50 = vrot.slane %v8020_v7, 6  ;;  %vm7692_vm10 = vcmask 613376  }
 0x3df   : > { %1440 = vst [vmem:[#allocation3 + $0x350] sm:$0xc0] %v1432_v57  ;;  %1441 = vst [vmem:[#allocation3 + $0x358] sm:$0xc0] %v1433_v43  ;;  %v1883_v57 = vrot.slane %v1869_v6, 2  ;;  %v751_v8 = vmul.f32 %v8022_v1, %v736_v16  ;;  %v706_v27 = vrot.slane %v691_v18, 2 }
 0x3e0   : > { %1131 = vrot.lane.b32.xlu0 %v1115_v15, %s7966_s30  ;;  %v1974_v15 = vsel %vm527_vm6, %v8021_v50, %v1973_v11  ;;  %v8024_v6 = vld [vmem:[#allocation116_spill] sm:$0xff]  ;;  %v2042_v16 = vld [vmem:[#allocation2 + $0x18] sm:$0x3]  ;;  %s8114_s30 = smov 108  }
 0x3e1   : > { %1939 = vrot.lane.b32.xlu1 %v1928_v52, %s8002_s25  ;;  %v1494_v25 = vpop.permute.xlu1 %1493  ;;  %v738_v52 = vld [vmem:[#allocation2 + $0x28] sm:$0x3]  ;;  %v8028_v18 = vld [vmem:[#allocation108_spill] sm:$0xff]  ;;  %v763_v1 = vrot.slane %v751_v8, 4 }
 0x3e2   : > { %v1496_v23 = vpop.permute.xlu0 %1495  ;;  %v1504_v14 = vsel %vm7688_vm1, %v1492_v46, %v1494_v25  ;;  %v2183_v46 = vld [vmem:[#allocation2 + $0x20] sm:$0x3] }
 0x3e3   : > { %v1505_v48 = vsel %vm7688_vm1, %v1494_v25, %v1496_v23  ;;  %1512 = vst [vmem:[#allocation3 + $0x20] sm:$0xf0] %v1504_v14  ;;  %v8023_v23 = vrot.slane %v4891_v30, 2  ;;  %v8025_v25 = vrot.slane %v8024_v6, 2  ;;  %vm7690_vm1 = vcmask 605184   ;;  %v8027_v14 = vld [vmem:[#allocation17_spill] sm:$0xff] }
 0x3e4   : > { %1513 = vst [vmem:[#allocation3 + $0x28] sm:$0xf0] %v1505_v48  ;;  %1366 = vrot.lane.b32.xlu0 %v1350_v58, %s7971_s2  ;;  %v753_v48 = vmul.f32 %v8027_v14, %v738_v52  ;;  %v2206_v7 = vmul.f32 %v8028_v18, %v2183_v46  ;;  %v797_v30 = vld [vmem:[#allocation2 + $0x18] sm:$0x3]  ;;  %v8031_v52 = vld [vmem:[#allocation40_spill] sm:$0xff]  ;;  %s8066_s2 = smov 127  }
 0x3e5   : > { %1985 = vrot.lane.b32.xlu1 %v1974_v15, %s8012_s10  ;;  %v2820_v43 = vpop.permute.xlu1 %2819  ;;  %v1884_v11 = vsel %vm698_vm13, %v8023_v23, %v1883_v57  ;;  %v703_v58 = vsel %vm698_vm13, %v8025_v25, %v702_v35 }
 0x3e6   : > { %v2822_v33 = vpop.permute.xlu0 %2821  ;;  %v767_v46 = vrot.slane %v753_v48, 4  ;;  %v1915_v48 = vld [vmem:[#allocation2 + $0x28] sm:$0x3] }
 0x3e7   : > { %v2831_v38 = vsel %vm7692_vm10, %v2820_v43, %v2822_v33  ;;  %v8029_v33 = vld [vmem:[#allocation119_spill] sm:$0xff] }
 0x3e8   : > { %2839 = vst [vmem:[#allocation3 + $0x208] sm:$0xf0] %v2831_v38  ;;  %1895 = vrot.lane.b32.xlu0 %v1884_v11, %s7996_s12  ;;  %v8030_v23 = vrot.slane %v8029_v33, 2  ;;  %v2054_v38 = vrot.slane %v2042_v16, 2  ;;  %v812_v11 = vmul.f32 %v8031_v52, %v797_v30  ;;  %v8032_v16 = vld [vmem:[#allocation120_spill] sm:$0xff]  ;;  %s8080_s12 = smov 74  }
 0x3e9   : > { %714 = vrot.lane.b32.xlu1 %v703_v58, %s8026_s0  ;;  %v3240_v15 = vpop.permute.xlu1 %3239  ;;  %v2426_v58 = vld [vmem:[#allocation2 + $0x20] sm:$0x3]  ;;  %v8033_v18 = vrot.slane %v8032_v16, 4  ;;  %v911_v16 = vld [vmem:[#allocation2 + $0x28] sm:$0x3] }
 0x3ea   : > { %v3242_v50 = vpop.permute.xlu0 %3241  ;;  %v707_v35 = vsel %vm698_vm13, %v8030_v23, %v706_v27  ;;  %v2055_v27 = vsel %vm698_vm13, %v7992_v21, %v2054_v38  ;;  %v824_v30 = vrot.slane %v812_v11, 6  ;;  %v909_v23 = vld [vmem:[#allocation2 + $0x18] sm:$0x3]  ;;  %v8035_v21 = vld [vmem:[#allocation18_spill] sm:$0xff]  ;;  %v8038_v11 = vld [vmem:[#allocation43_spill] sm:$0xff] }
 0x3eb   : > { %v3251_v57 = vsel %vm7690_vm1, %v3240_v15, %v3242_v50  ;;  %v799_v50 = vld [vmem:[#allocation2 + $0x28] sm:$0x3] }
 0x3ec   : > { %3259 = vst [vmem:[#allocation3 + $0x218] sm:$0xc0] %v3251_v57  ;;  %2222 = vrot.lane.b32.xlu0 %v2206_v7, %s7978_s5  ;;  %v764_v7 = vsel %vm436_vm2, %v8033_v18, %v763_v1  ;;  %v8036_v1 = vld [vmem:[#allocation123_spill] sm:$0xff]  ;;  %v2672_v18 = vld [vmem:[#allocation2 + $0x20] sm:$0x3]  ;;  %s4363_s5 = smov 76  }
 0x3ed   : > { %718 = vrot.lane.b32.xlu1 %v707_v35, %s8026_s0  ;;  %v1555_v25 = vpop.permute.xlu1 %1554  ;;  %v814_v35 = vmul.f32 %v8035_v21, %v799_v50  ;;  %v8037_v52 = vrot.slane %v8036_v1, 4  ;;  %v8039_v50 = vld [vmem:[#allocation124_spill] sm:$0xff]  ;;  %v8042_v21 = vld [vmem:[#allocation113_spill] sm:$0xff] }
 0x3ee   : > { %v2818_v6 = vpop.permute.xlu0 %2817  ;;  %v1565_v14 = vsel %vm7691_vm4, %v5869_v63, %v1555_v25 }
 0x3ef   : > { %v2830_v8 = vsel %vm7692_vm10, %v2818_v6, %v2820_v43  ;;  %1573 = vst [vmem:[#allocation3 + $0xb0] sm:$0xfc] %v1565_v14  ;;  %v8034_v43 = vld [vmem:[#allocation111_spill] sm:$0xff]  ;;  %v768_v6 = vsel %vm436_vm2, %v8037_v52, %v767_v46  ;;  %v8040_v46 = vrot.slane %v8039_v50, 6  ;;  %v968_v52 = vld [vmem:[#allocation2 + $0x18] sm:$0x3] }
 0x3f0   : > { %2838 = vst [vmem:[#allocation3 + $0x200] sm:$0xf0] %v2830_v8  ;;  %2066 = vrot.lane.b32.xlu0 %v2055_v27, %s7999_s13  ;;  %v2441_v57 = vmul.f32 %v8034_v43, %v2426_v58  ;;  %v1929_v8 = vrot.slane %v1915_v48, 4  ;;  %v923_v58 = vmul.f32 %v8038_v11, %v909_v23  ;;  %v2088_v43 = vld [vmem:[#allocation2 + $0x18] sm:$0x3]  ;;  %vm7694_vm10 = vcmask 474112  }
 0x3f1   : > { %775 = vrot.lane.b32.xlu1 %v764_v7, %s7854_s15  ;;  %v828_v7 = vrot.slane %v814_v35, 6  ;;  %v825_v48 = vsel %vm527_vm6, %v8040_v46, %v824_v30  ;;  %v2907_v50 = vld [vmem:[#allocation2 + $0x20] sm:$0x3] }
 0x3f2   : > { %v3238_v33 = vpop.permute.xlu0 %3237 }
 0x3f3   : > { %v6139_v63 = vpop.permute.xlu1 %2277  ;;  %v3250_v38 = vsel %vm7690_vm1, %v3238_v33, %v3240_v15  ;;  %v1930_v15 = vsel %vm436_vm2, %v8004_v54, %v1929_v8  ;;  %vm7693_vm1 = vcmask 375808   ;;  %v8041_v33 = vld [vmem:[#allocation19_spill] sm:$0xff] }
 0x3f4   : > { %3258 = vst [vmem:[#allocation3 + $0x210] sm:$0xc0] %v3250_v38  ;;  %2457 = vrot.lane.b32.xlu0 %v2441_v57, %s7835_s29  ;;  %v935_v57 = vrot.slane %v923_v58, 2  ;;  %v925_v23 = vmul.f32 %v8041_v33, %v911_v16  ;;  %v2687_v38 = vmul.f32 %v8042_v21, %v2672_v18  ;;  %v8045_v58 = vld [vmem:[#allocation45_spill] sm:$0xff]  ;;  %v970_v33 = vld [vmem:[#allocation2 + $0x28] sm:$0x3] }
 0x3f5   : > { %779 = vrot.lane.b32.xlu1 %v768_v6, %s7854_s15  ;;  %v8043_v6 = vld [vmem:[#allocation125_spill] sm:$0xff]  ;;  %v982_v16 = vmul.f32 %v8045_v58, %v968_v52  ;;  %v1961_v21 = vld [vmem:[#allocation2 + $0x28] sm:$0x3]  ;;  %s8115_s29 = smov 126  }
 0x3f6   : > { %v6149_v14 = vpop.permute.xlu0 %1726  ;;  %v8044_v8 = vrot.slane %v8043_v6, 6  ;;  %v939_v46 = vrot.slane %v925_v23, 2  ;;  %v1029_v23 = vld [vmem:[#allocation2 + $0x18] sm:$0x3]  ;;  %v8051_v6 = vld [vmem:[#allocation20_spill] sm:$0xff]  ;;  %v1975_v58 = vrot.slane %v1961_v21, 6 }
 0x3f7   : > { %v6151_v27 = vpop.permute.xlu1 %3300  ;;  %v8056_v21 = vld [vmem:[#allocation129_spill] sm:$0xff] }
 0x3f8   : > { %1941 = vrot.lane.b32.xlu0 %v1930_v15, %s8002_s25  ;;  %v829_v11 = vsel %vm527_vm6, %v8044_v8, %v828_v7  ;;  %v2100_v15 = vrot.slane %v2088_v43, 4  ;;  %s8096_s25 = smov 63  }
 0x3f9   : > { %836 = vrot.lane.b32.xlu1 %v825_v48, %s7863_s20  ;;  %v8047_v48 = vld [vmem:[#allocation127_spill] sm:$0xff] }
 0x3fa   : > { %v1557_v1 = vpop.permute.xlu0 %1556  ;;  %v8048_v7 = vrot.slane %v8047_v48, 2 }
 0x3fb   : > { %v6162_v35 = vpop.permute.xlu1 %1789  ;;  %v1566_v54 = vsel %vm7691_vm4, %v1555_v25, %v1557_v1  ;;  %vm7697_vm4 = vcmask 883712   ;;  %v8049_v1 = vld [vmem:[#allocation115_spill] sm:$0xff] }
 0x3fc   : > { %v1800_v30 = vsel %vm7693_vm1, %v5930_v5, %v6162_v35  ;;  %1574 = vst [vmem:[#allocation3 + $0xb8] sm:$0xfc] %v1566_v54  ;;  %2703 = vrot.lane.b32.xlu0 %v2687_v38, %s7838_s23  ;;  %v2101_v5 = vsel %vm436_vm2, %v8001_v56, %v2100_v15  ;;  %v936_v43 = vsel %vm698_vm13, %v8048_v7, %v935_v57  ;;  %v994_v38 = vrot.slane %v982_v16, 4  ;;  %v8052_v57 = vld [vmem:[#allocation128_spill] sm:$0xff]  ;;  %v8054_v16 = vld [vmem:[#allocation47_spill] sm:$0xff] }
 0x3fd   : > { %1808 = vst [vmem:[#allocation3 + $0x2e0] sm:$0xfc] %v1800_v30  ;;  %840 = vrot.lane.b32.xlu1 %v829_v11, %s7863_s20  ;;  %v2922_v52 = vmul.f32 %v8049_v1, %v2907_v50  ;;  %v984_v56 = vmul.f32 %v8051_v6, %v970_v33  ;;  %v8053_v11 = vrot.slane %v8052_v57, 2  ;;  %v1053_v50 = vmul.f32 %v8054_v16, %v1029_v23  ;;  %v1031_v7 = vld [vmem:[#allocation2 + $0x28] sm:$0x3] }
 0x3fe   : > { %v6174_v18 = vpop.permute.xlu0 %2878  ;;  %v8055_v1 = vrot.slane %v7997_v2, 6  ;;  %v2366_v6 = vld [vmem:[#allocation2 + $0x28] sm:$0x3]  ;;  %v2089_v23 = vld [vmem:[#allocation2 + $0x20] sm:$0x3] }
 0x3ff   : > { %v6176_v25 = vpop.permute.xlu1 %2338  ;;  %v940_v15 = vsel %vm698_vm13, %v8053_v11, %v939_v46  ;;  %v1151_v2 = vld [vmem:[#allocation2 + $0x18] sm:$0x3] }
 0x400   : > { %8046 = vst [vmem:[#allocation84_spill] sm:$0xff] %v6176_v25  ;;  %2112 = vrot.lane.b32.xlu0 %v2101_v5, %s8005_s22  ;;  %v1976_v46 = vsel %vm527_vm6, %v8055_v1, %v1975_v58  ;;  %v8059_v58 = vld [vmem:[#allocation58_spill] sm:$0xff] }
 0x401   : > { %947 = vrot.lane.b32.xlu1 %v936_v43, %s7872_s18  ;;  %v998_v43 = vrot.slane %v984_v56, 4  ;;  %v1065_v56 = vrot.slane %v1053_v50, 6  ;;  %v2381_v16 = vmul.f32 %v8059_v58, %v2366_v6  ;;  %v8062_v50 = vld [vmem:[#allocation86_spill] sm:$0xff] }
 0x402   : > { %v2280_v54 = vpop.permute.xlu0 %2279 }
 0x403   : > { %v6186_v30 = vpop.permute.xlu1 %2758  ;;  %v2289_v8 = vsel %vm7697_vm4, %v6139_v63, %v2280_v54  ;;  %v8057_v54 = vrot.slane %v8056_v21, 4  ;;  %v8063_v21 = vld [vmem:[#allocation50_spill] sm:$0xff] }
 0x404   : > { %8050 = vst [vmem:[#allocation91_spill] sm:$0xff] %v6186_v30  ;;  %2297 = vst [vmem:[#allocation3 + $0xd8] sm:$0xc0] %v2289_v8  ;;  %2938 = vrot.lane.b32.xlu0 %v2922_v52, %s7988_s14  ;;  %v8058_v8 = vld [vmem:[#allocation21_spill] sm:$0xff]  ;;  %s8105_s14 = smov 31  }
 0x405   : > { %951 = vrot.lane.b32.xlu1 %v940_v15, %s7872_s18  ;;  %v995_v52 = vsel %vm436_vm2, %v8057_v54, %v994_v38  ;;  %v1055_v57 = vmul.f32 %v8058_v8, %v1031_v7  ;;  %v2786_v15 = vld [vmem:[#allocation2 + $0x28] sm:$0x3]  ;;  %v6223_v7 = vmul.f32 %v5833_v32, %v8059_v58  ;;  %v1166_v54 = vmul.f32 %v8063_v21, %v1151_v2  ;;  %v8067_v2 = vld [vmem:[#allocation22_spill] sm:$0xff] }
 0x406   : > { %v2276_v5 = vpop.permute.xlu0 %2275 }
 0x407   : > { %v6197_v48 = vpop.permute.xlu1 %888  ;;  %v2288_v33 = vsel %vm7697_vm4, %v2276_v5, %v6139_v63  ;;  %v8060_v5 = vld [vmem:[#allocation132_spill] sm:$0xff]  ;;  %v1069_v6 = vrot.slane %v1055_v57, 6  ;;  %v1178_v57 = vrot.slane %v1166_v54, 2  ;;  %vm7699_vm4 = vcmask 506880  }
 0x408   : > { %2296 = vst [vmem:[#allocation3 + $0xd0] sm:$0xc0] %v2288_v33  ;;  %1987 = vrot.lane.b32.xlu0 %v1976_v46, %s8012_s10  ;;  %v8061_v33 = vrot.slane %v8060_v5, 4  ;;  %v2102_v46 = vrot.slane %v2089_v23, 4  ;;  %v3206_v23 = vld [vmem:[#allocation2 + $0x28] sm:$0x3] }
 0x409   : > { %1006 = vrot.lane.b32.xlu1 %v995_v52, %s7881_s19  ;;  %v2801_v52 = vmul.f32 %v7928_v62, %v2786_v15  ;;  %v7704_v62 = vrot.slane %v6223_v7, 6  ;;  %s8074_s10 = smov 75  }
 0x40a   : > { %v3303_v63 = vpop.permute.xlu0 %3302  ;;  %v999_v1 = vsel %vm436_vm2, %v8061_v33, %v998_v43  ;;  %v1153_v43 = vld [vmem:[#allocation2 + $0x28] sm:$0x3]  ;;  %v2103_v33 = vsel %vm436_vm2, %v8017_v29, %v2102_v46  ;;  %v1212_v29 = vld [vmem:[#allocation2 + $0x18] sm:$0x3] }
 0x40b   : > { %v6210_v11 = vpop.permute.xlu1 %892  ;;  %v3312_v38 = vsel %vm7694_vm10, %v6151_v27, %v3303_v63  ;;  %v1168_v15 = vmul.f32 %v8067_v2, %v1153_v43  ;;  %v2601_v46 = vld [vmem:[#allocation2 + $0x18] sm:$0x3]  ;;  %v8071_v2 = vrot.slane %v5638_v4, 4 }
 0x40c   : > { %3320 = vst [vmem:[#allocation3 + $0x2a8] sm:$0xf0] %v3312_v38  ;;  %2068 = vrot.lane.b32.xlu0 %v8062_v50, %s7999_s13  ;;  %v2395_v38 = vrot.slane %v2381_v16, 6  ;;  %v3221_v16 = vmul.f32 %v7932_v55, %v3206_v23  ;;  %v8070_v55 = vld [vmem:[#allocation51_spill] sm:$0xff]  ;;  %v1273_v4 = vld [vmem:[#allocation2 + $0x18] sm:$0x3] }
 0x40d   : > { %1010 = vrot.lane.b32.xlu1 %v999_v1, %s7881_s19  ;;  %v8064_v1 = vld [vmem:[#allocation133_spill] sm:$0xff]  ;;  %v1227_v43 = vmul.f32 %v8070_v55, %v1212_v29  ;;  %v8077_v55 = vrot.slane %v5656_v40, 2  ;;  %v1275_v40 = vld [vmem:[#allocation2 + $0x28] sm:$0x3]  ;;  %s8101_s13 = smov 110  }
 0x40e   : > { %v3299_v8 = vpop.permute.xlu0 %3298  ;;  %v8065_v32 = vrot.slane %v8064_v1, 6 }
 0x40f   : > { %v6227_v63 = vpop.permute.xlu1 %1129  ;;  %v3311_v5 = vsel %vm7694_vm10, %v3299_v8, %v6151_v27  ;;  %v2815_v8 = vrot.slane %v2801_v52, 4  ;;  %v2625_v52 = vmul.f32 %v4733_v12, %v2601_v46  ;;  %v1239_v12 = vrot.slane %v1227_v43, 4  ;;  %v8076_v46 = vld [vmem:[#allocation23_spill] sm:$0xff] }
 0x410   : > { %v1066_v50 = vsel %vm527_vm6, %v8065_v32, %v1065_v56  ;;  %3319 = vst [vmem:[#allocation3 + $0x2a0] sm:$0xf0] %v3311_v5  ;;  %2114 = vrot.lane.b32.xlu0 %v2103_v33, %s8005_s22  ;;  %v2396_v5 = vsel %vm527_vm6, %v7704_v62, %v2395_v38  ;;  %v8068_v33 = vld [vmem:[#allocation137_spill] sm:$0xff]  ;;  %v1214_v32 = vld [vmem:[#allocation2 + $0x28] sm:$0x3]  ;;  %v1182_v38 = vrot.slane %v1168_v15, 2 }
 0x411   : > { %1077 = vrot.lane.b32.xlu1 %v1066_v50, %s8066_s2  ;;  %v8069_v1 = vrot.slane %v8068_v33, 6  ;;  %v3235_v50 = vrot.slane %v3221_v16, 2  ;;  %v3023_v33 = vld [vmem:[#allocation2 + $0x28] sm:$0x3]  ;;  %v2637_v29 = vrot.slane %v2625_v52, 6  ;;  %vm7696_vm10 = vcmask 744448  }
 0x412   : > { %v1792_v27 = vpop.permute.xlu0 %1791  ;;  %v8081_v52 = vld [vmem:[#allocation52_spill] sm:$0xff]  ;;  %s8086_s22 = smov 79  }
 0x413   : > { %v6241_v21 = vpop.permute.xlu1 %1133  ;;  %v1801_v56 = vsel %vm7693_vm1, %v6162_v35, %v1792_v27  ;;  %v1070_v54 = vsel %vm527_vm6, %v8069_v1, %v1069_v6  ;;  %v2816_v6 = vsel %vm436_vm2, %v8071_v2, %v2815_v8  ;;  %v8072_v27 = vld [vmem:[#allocation139_spill] sm:$0xff]  ;;  %vm7695_vm1 = vcmask 752640  }
 0x414   : > { %1809 = vst [vmem:[#allocation3 + $0x2e8] sm:$0xfc] %v1801_v56  ;;  %2407 = vrot.lane.b32.xlu0 %v2396_v5, %s4363_s5  ;;  %v8073_v56 = vrot.slane %v8072_v27, 2  ;;  %v1229_v1 = vmul.f32 %v8076_v46, %v1214_v32  ;;  %v3047_v8 = vmul.f32 %v4825_v34, %v3023_v33  ;;  %v3236_v2 = vsel %vm698_vm13, %v8077_v55, %v3235_v50  ;;  %v1521_v50 = vld [vmem:[#allocation2 + $0x28] sm:$0x3] }
 0x415   : > { %1081 = vrot.lane.b32.xlu1 %v1070_v54, %s8066_s2  ;;  %v1693_v54 = vld [vmem:[#allocation2 + $0x18] sm:$0x3]  ;;  %v1288_v32 = vmul.f32 %v8081_v52, %v1273_v4 }
 0x416   : > { %v6255_v23 = vpop.permute.xlu0 %3359  ;;  %v1179_v5 = vsel %vm698_vm13, %v8073_v56, %v1178_v57  ;;  %v1708_v34 = vmul.f32 %v7943_v9, %v1693_v54  ;;  %v1243_v56 = vrot.slane %v1229_v1, 4  ;;  %v3061_v46 = vrot.slane %v3047_v8, 4  ;;  %v8087_v54 = vld [vmem:[#allocation24_spill] sm:$0xff] }
 0x417   : > { %v6257_v35 = vpop.permute.xlu1 %1364  ;;  %v1300_v9 = vrot.slane %v1288_v32, 6  ;;  %v1290_v8 = vmul.f32 %v8087_v54, %v1275_v40  ;;  %v3267_v54 = vld [vmem:[#allocation2 + $0x28] sm:$0x3] }
 0x418   : > { %2827 = vrot.lane.b32.xlu0 %v2816_v6, %s8074_s10  ;;  %v8078_v6 = vld [vmem:[#allocation143_spill] sm:$0xff]  ;;  %v1720_v1 = vrot.slane %v1708_v34, 4  ;;  %v8090_v34 = vld [vmem:[#allocation149_spill] sm:$0xff] }
 0x419   : > { %1190 = vrot.lane.b32.xlu1 %v1179_v5, %s8075_s11  ;;  %v8079_v27 = vrot.slane %v8078_v6, 2 }
 0x41a   : > { %v2341_v15 = vpop.permute.xlu0 %2340 }
 0x41b   : > { %v6268_v16 = vpop.permute.xlu1 %1368  ;;  %v2350_v57 = vsel %vm7695_vm1, %v6176_v25, %v2341_v15  ;;  %v1183_v43 = vsel %vm698_vm13, %v8079_v27, %v1182_v38  ;;  %v8082_v15 = vld [vmem:[#allocation117_spill] sm:$0xff]  ;;  %vm2655_vm1 = vcmask 1006592   ;;  %v1536_v27 = vmul.f32 %v7933_v0, %v1521_v50  ;;  %v8092_v0 = vld [vmem:[#allocation55_spill] sm:$0xff] }
 0x41c   : > { %2358 = vst [vmem:[#allocation3 + $0x168] sm:$0xf0] %v2350_v57  ;;  %3247 = vrot.lane.b32.xlu0 %v3236_v2, %s8080_s12  ;;  %v8083_v57 = vrot.slane %v8082_v15, 6  ;;  %v8084_v2 = vld [vmem:[#allocation145_spill] sm:$0xff]  ;;  %v8088_v15 = vld [vmem:[#allocation114_spill] sm:$0xff] }
 0x41d   : > { %1194 = vrot.lane.b32.xlu1 %v1183_v43, %s8075_s11  ;;  %v8085_v6 = vrot.slane %v8084_v2, 4  ;;  %v1550_v2 = vrot.slane %v1536_v27, 6 }
 0x41e   : > { %v2761_v5 = vpop.permute.xlu0 %2760  ;;  %v2638_v55 = vsel %vm527_vm6, %v8083_v57, %v2637_v29  ;;  %v1386_v29 = vld [vmem:[#allocation2 + $0x18] sm:$0x3]  ;;  %v8089_v57 = vrot.slane %v8088_v15, 4 }
 0x41f   : > { %v6283_v33 = vpop.permute.xlu1 %2224  ;;  %v2770_v38 = vsel %vm7696_vm10, %v6186_v30, %v2761_v5  ;;  %v1240_v4 = vsel %vm436_vm2, %v8085_v6, %v1239_v12  ;;  %v2847_v5 = vld [vmem:[#allocation2 + $0x28] sm:$0x3]  ;;  %vm7698_vm10 = vcmask 998400  }
 0x420   : > { %2778 = vst [vmem:[#allocation3 + $0x178] sm:$0xc0] %v2770_v38  ;;  %2649 = vrot.lane.b32.xlu0 %v2638_v55, %s7981_s6  ;;  %v3062_v32 = vsel %vm436_vm2, %v8089_v57, %v3061_v46  ;;  %v8091_v55 = vrot.slane %v8090_v34, 4  ;;  %v2862_v50 = vmul.f32 %v7857_v49, %v2847_v5  ;;  %v1388_v46 = vld [vmem:[#allocation2 + $0x28] sm:$0x3] }
 0x421   : > { %1251 = vrot.lane.b32.xlu1 %v1240_v4, %s8086_s22 }
 0x422   : > { %v2646_v43 = vpop.permute.xlu0 %2645  ;;  %v1244_v40 = vsel %vm436_vm2, %v8091_v55, %v1243_v56  ;;  %v2876_v5 = vrot.slane %v2862_v50, 6  ;;  %v8098_v55 = vrot.slane %v5751_v10, 6 }
 0x423   : > { %v6297_v52 = vpop.permute.xlu1 %2459  ;;  %v2656_v12 = vsel %vm2655_vm1, %v5824_v37, %v2646_v43  ;;  %v2657_v38 = vsel %vm2655_vm1, %v2646_v43, %v5788_v44  ;;  %v1401_v37 = vmul.f32 %v8092_v0, %v1386_v29  ;;  %v1304_v44 = vrot.slane %v1290_v8, 6  ;;  %v8094_v29 = vld [vmem:[#allocation151_spill] sm:$0xff] }
 0x424   : > { %2664 = vst [vmem:[#allocation3 + $0x60] sm:$0xfc] %v2656_v12  ;;  %2665 = vst [vmem:[#allocation3 + $0x68] sm:$0xfc] %v2657_v38  ;;  %3073 = vrot.lane.b32.xlu0 %v3062_v32, %s7984_s27  ;;  %v8093_v12 = vrot.slane %v5723_v17, 4  ;;  %v8095_v15 = vrot.slane %v8094_v29, 6 }
 0x425   : > { %1255 = vrot.lane.b32.xlu1 %v1244_v40, %s8086_s22  ;;  %v1413_v8 = vrot.slane %v1401_v37, 2  ;;  %v2242_v32 = vld [vmem:[#allocation2 + $0x18] sm:$0x3]  ;;  %v1551_v40 = vsel %vm527_vm6, %v8098_v55, %v1550_v2  ;;  %v8099_v0 = vld [vmem:[#allocation155_spill] sm:$0xff] }
 0x426   : > { %v3066_v6 = vpop.permute.xlu0 %3065  ;;  %v1721_v38 = vsel %vm436_vm2, %v8093_v12, %v1720_v1  ;;  %v1301_v49 = vsel %vm527_vm6, %v8095_v15, %v1300_v9  ;;  %v1449_v1 = vld [vmem:[#allocation2 + $0x18] sm:$0x3]  ;;  %v8100_v37 = vrot.slane %v8099_v0, 6  ;;  %v2257_v50 = vmul.f32 %v7960_v51, %v2242_v32 }
 0x427   : > { %v6313_v4 = vpop.permute.xlu1 %2455  ;;  %v3076_v56 = vsel %vm7698_vm10, %v5842_v45, %v3066_v6  ;;  %v3077_v43 = vsel %vm7698_vm10, %v3066_v6, %v5806_v59  ;;  %v8097_v45 = vld [vmem:[#allocation25_spill] sm:$0xff]  ;;  %v3282_v59 = vmul.f32 %v7940_v26, %v3267_v54  ;;  %vm7700_vm10 = vcmask 482304   ;;  %v1451_v54 = vld [vmem:[#allocation2 + $0x28] sm:$0x3] }
 0x428   : > { %3084 = vst [vmem:[#allocation3 + $0x70] sm:$0xf0] %v3076_v56  ;;  %3085 = vst [vmem:[#allocation3 + $0x78] sm:$0xf0] %v3077_v43  ;;  %1732 = vrot.lane.b32.xlu0 %v1721_v38, %s7949_s17  ;;  %v1403_v27 = vmul.f32 %v8097_v45, %v1388_v46  ;;  %v1305_v26 = vsel %vm527_vm6, %v8100_v37, %v1304_v44  ;;  %v3091_v2 = vld [vmem:[#allocation2 + $0x18] sm:$0x3] }
 0x429   : > { %1312 = vrot.lane.b32.xlu1 %v1301_v49, %s8096_s25  ;;  %v3296_v6 = vrot.slane %v3282_v59, 4  ;;  %v8102_v43 = vld [vmem:[#allocation65_spill] sm:$0xff]  ;;  %v2269_v15 = vrot.slane %v2257_v50, 2 }
 0x42a   : > { %v1729_v17 = vpop.permute.xlu0 %1728  ;;  %v8103_v12 = vrot.slane %v8102_v43, 6  ;;  %v2364_v59 = vld [vmem:[#allocation2 + $0x18] sm:$0x3] }
 0x42b   : > { %v6329_v57 = vpop.permute.xlu1 %2705  ;;  %v1739_v9 = vsel %vm7699_vm4, %v6149_v14, %v1729_v17  ;;  %v1740_v34 = vsel %vm7699_vm4, %v1729_v17, %v5855_v28  ;;  %v1473_v14 = vmul.f32 %v7921_v3, %v1449_v1  ;;  %v1417_v28 = vrot.slane %v1403_v27, 2  ;;  %v1754_v37 = vld [vmem:[#allocation2 + $0x18] sm:$0x3] }
 0x42c   : > { %1747 = vst [vmem:[#allocation3 + $0x250] sm:$0xf0] %v1739_v9  ;;  %1748 = vst [vmem:[#allocation3 + $0x258] sm:$0xf0] %v1740_v34  ;;  %1562 = vrot.lane.b32.xlu0 %v1551_v40, %s8101_s13  ;;  %v2877_v38 = vsel %vm527_vm6, %v8103_v12, %v2876_v5  ;;  %v8104_v3 = vrot.slane %v5545_v22, 2  ;;  %vm7701_vm4 = vcmask 867328  }
 0x42d   : > { %1316 = vrot.lane.b32.xlu1 %v1305_v26, %s8096_s25  ;;  %v1485_v29 = vrot.slane %v1473_v14, 4  ;;  %v1756_v22 = vld [vmem:[#allocation2 + $0x28] sm:$0x3]  ;;  %v8107_v17 = vrot.slane %v5837_v53, 4  ;;  %v2784_v26 = vld [vmem:[#allocation2 + $0x18] sm:$0x3] }
 0x42e   : > { %v2881_v10 = vpop.permute.xlu0 %2880  ;;  %v1414_v51 = vsel %vm698_vm13, %v8104_v3, %v1413_v8  ;;  %v8110_v34 = vld [vmem:[#allocation27_spill] sm:$0xff]  ;;  %v3204_v3 = vld [vmem:[#allocation2 + $0x18] sm:$0x3] }
 0x42f   : > { %v6345_v46 = vpop.permute.xlu1 %2940  ;;  %v2891_v44 = vsel %vm7700_vm10, %v6174_v18, %v2881_v10  ;;  %v2892_v56 = vsel %vm7700_vm10, %v2881_v10, %v5882_v36  ;;  %v3106_v18 = vmul.f32 %v7866_v13, %v3091_v2  ;;  %v8106_v36 = vld [vmem:[#allocation26_spill] sm:$0xff]  ;;  %v3297_v1 = vsel %vm436_vm2, %v8107_v17, %v3296_v6  ;;  %v8108_v13 = vld [vmem:[#allocation160_spill] sm:$0xff]  ;;  %v8112_v10 = vld [vmem:[#allocation57_spill] sm:$0xff] }
 0x430   : > { %2899 = vst [vmem:[#allocation3 + $0x290] sm:$0xfc] %v2891_v44  ;;  %2900 = vst [vmem:[#allocation3 + $0x298] sm:$0xfc] %v2892_v56  ;;  %2888 = vrot.lane.b32.xlu0 %v2877_v38, %s7959_s16  ;;  %v1475_v49 = vmul.f32 %v8106_v36, %v1451_v54  ;;  %v8109_v32 = vrot.slane %v8108_v13, 2  ;;  %vm2522_vm10 = vcmask 359424  }
 0x431   : > { %1425 = vrot.lane.b32.xlu1 %v1414_v51, %s8105_s14  ;;  %v3118_v55 = vrot.slane %v3106_v18, 6  ;;  %v8113_v2 = vrot.slane %v8112_v10, 4  ;;  %v6391_v54 = vld [vmem:[#allocation2] sm:$0xff]  ;;  %v2477_v38 = vld [vmem:[#allocation2 + $0x18] sm:$0x3] }
 0x432   : > { %v3127_v45 = vpop.permute.xlu0 %3126  ;;  %v1418_v9 = vsel %vm698_vm13, %v8109_v32, %v1417_v28  ;;  %v1489_v40 = vrot.slane %v1475_v49, 4  ;;  %v8111_v28 = vrot.slane %v5819_v47, 2  ;;  %v2799_v47 = vmul.f32 %v7929_v61, %v2784_v26  ;;  %v8123_v32 = vld [vmem:[#allocation171_spill] sm:$0xff]  ;;  %v8126_v10 = vld [vmem:[#allocation62_spill] sm:$0xff] }
 0x433   : > { %v6361_v27 = vpop.permute.xlu1 %2936  ;;  %v3137_v8 = vsel %vm7701_vm4, %v5910_v41, %v3127_v45  ;;  %v3138_v5 = vsel %vm7701_vm4, %v3127_v45, %v5896_v19  ;;  %v2379_v41 = vmul.f32 %v8110_v34, %v2364_v59  ;;  %v1771_v19 = vmul.f32 %v7946_v24, %v1756_v22  ;;  %v8122_v22 = vld [vmem:[#allocation29_spill] sm:$0xff] }
 0x434   : > { %3145 = vst [vmem:[#allocation3 + $0x100] sm:$0xfc] %v3137_v8  ;;  %3146 = vst [vmem:[#allocation3 + $0x108] sm:$0xfc] %v3138_v5  ;;  %3308 = vrot.lane.b32.xlu0 %v3297_v1, %s7964_s28  ;;  %v2270_v6 = vsel %vm698_vm13, %v8111_v28, %v2269_v15  ;;  %v1486_v24 = vsel %vm436_vm2, %v8113_v2, %v1485_v29  ;;  %vm3371_vm4 = vcmask 343040   ;;  %v8117_v29 = vld [vmem:[#allocation41_spill] sm:$0xff] }
 0x435   : > { %1429 = vrot.lane.b32.xlu1 %v1418_v9, %s8105_s14  ;;  %v2391_v44 = vrot.slane %v2379_v41, 6  ;;  %v1785_v56 = vrot.slane %v1771_v19, 6  ;;  %v8118_v15 = vrot.slane %v8117_v29, 6  ;;  %v2305_v1 = vld [vmem:[#allocation2 + $0x28] sm:$0x3]  ;;  %v2811_v13 = vrot.slane %v2799_v47, 4 }
 0x436   : > { %v2513_v53 = vpop.permute.xlu0 %2512  ;;  %v8124_v9 = vrot.slane %v8123_v32, 6  ;;  %v2603_v19 = vld [vmem:[#allocation2 + $0x28] sm:$0x3]  ;;  %v675_v28 = vld [vmem:[#allocation2 + $0x20] sm:$0x3] }
 0x437   : > { %v6377_v0 = vpop.permute.xlu1 %1891  ;;  %v2523_v14 = vsel %vm2522_vm10, %v5966_v31, %v2513_v53  ;;  %v2524_v50 = vsel %vm2522_vm10, %v2513_v53, %v5948_v60  ;;  %v6395_v31 = vmul.f32 %v6391_v54, %v8110_v34  ;;  %v1769_v60 = vmul.f32 %v7868_v42, %v1754_v37  ;;  %v8119_v42 = vld [vmem:[#allocation163_spill] sm:$0xff]  ;;  %v8125_v53 = vld [vmem:[#allocation73_spill] sm:$0xff] }
 0x438   : > { %2531 = vst [vmem:[#allocation3 + $0x300] sm:$0xc0] %v2523_v14  ;;  %2532 = vst [vmem:[#allocation3 + $0x308] sm:$0xc0] %v2524_v50  ;;  %2281 = vrot.lane.b32.xlu0 %v2270_v6, %s8114_s30  ;;  %v3119_v36 = vsel %vm527_vm6, %v8118_v15, %v3118_v55  ;;  %v8120_v49 = vrot.slane %v8119_v42, 4  ;;  %v1786_v41 = vsel %vm527_vm6, %v8124_v9, %v1785_v56  ;;  %v8137_v9 = vld [vmem:[#allocation138_spill] sm:$0xff] }
 0x439   : > { %1497 = vrot.lane.b32.xlu1 %v1486_v24, %s8115_s29  ;;  %8116 = vst [vmem:[#allocation81_spill] sm:$0xff] %v6395_v31  ;;  %v7702_v45 = vrot.slane %v6395_v31, 6  ;;  %v1781_v17 = vrot.slane %v1769_v60, 6  ;;  %v2320_v37 = vmul.f32 %v8125_v53, %v2305_v1  ;;  %v3021_v50 = vld [vmem:[#allocation2 + $0x18] sm:$0x3]  ;;  %v2627_v2 = vmul.f32 %v8126_v10, %v2603_v19  ;;  %v8127_v24 = vld [vmem:[#allocation42_spill] sm:$0xff] }
 0x43a   : > { %v3362_v43 = vpop.permute.xlu0 %3361  ;;  %v1490_v61 = vsel %vm436_vm2, %v8120_v49, %v1489_v40  ;;  %v8128_v60 = vrot.slane %v8127_v24, 6  ;;  %v737_v42 = vld [vmem:[#allocation2 + $0x20] sm:$0x3]  ;;  %v1695_v49 = vld [vmem:[#allocation2 + $0x28] sm:$0x3] }
 0x43b   : > { %v6399_v12 = vpop.permute.xlu1 %2070  ;;  %v3372_v51 = vsel %vm3371_vm4, %v6255_v23, %v3362_v43  ;;  %v3373_v18 = vsel %vm3371_vm4, %v3362_v43, %v5984_v39  ;;  %v8121_v23 = vld [vmem:[#allocation44_spill] sm:$0xff]  ;;  %v3219_v39 = vmul.f32 %v8122_v22, %v3204_v3  ;;  %v2392_v55 = vsel %vm527_vm6, %v7702_v45, %v2391_v44  ;;  %v1519_v32 = vld [vmem:[#allocation2 + $0x18] sm:$0x3] }
 0x43c   : > { %3380 = vst [vmem:[#allocation3 + $0x330] sm:$0xfc] %v3372_v51  ;;  %3381 = vst [vmem:[#allocation3 + $0x338] sm:$0xfc] %v3373_v18  ;;  %3130 = vrot.lane.b32.xlu0 %v3119_v36, %s7989_s21  ;;  %v2492_v59 = vmul.f32 %v8121_v23, %v2477_v38  ;;  %v1782_v47 = vsel %vm527_vm6, %v8128_v60, %v1781_v17  ;;  %v8129_v44 = vld [vmem:[#allocation64_spill] sm:$0xff]  ;;  %v8131_v38 = vld [vmem:[#allocation31_spill] sm:$0xff] }
 0x43d   : > { %1501 = vrot.lane.b32.xlu1 %v1490_v61, %s8115_s29  ;;  %v3231_v6 = vrot.slane %v3219_v39, 2  ;;  %v8130_v56 = vrot.slane %v8129_v44, 4  ;;  %v3045_v3 = vmul.f32 %v8131_v38, %v3021_v50  ;;  %v8132_v51 = vld [vmem:[#allocation135_spill] sm:$0xff]  ;;  %v2334_v29 = vrot.slane %v2320_v37, 4  ;;  %v8135_v17 = vld [vmem:[#allocation165_spill] sm:$0xff]  ;;  %v8141_v60 = vld [vmem:[#allocation112_spill] sm:$0xff] }
 0x43e   : > { %v6416_v8 = vpop.permute.xlu0 %2220  ;;  %v2504_v40 = vrot.slane %v2492_v59, 2  ;;  %v690_v18 = vmul.f32 %v8132_v51, %v675_v28  ;;  %v2641_v61 = vrot.slane %v2627_v2, 6  ;;  %v8133_v59 = vld [vmem:[#allocation131_spill] sm:$0xff]  ;;  %v8136_v1 = vrot.slane %v8135_v17, 2  ;;  %v798_v28 = vld [vmem:[#allocation2 + $0x20] sm:$0x3] }
 0x43f   : > { %v6418_v5 = vpop.permute.xlu1 %1937  ;;  %v2812_v43 = vsel %vm436_vm2, %v8130_v56, %v2811_v13  ;;  %v8134_v22 = vrot.slane %v8133_v59, 2  ;;  %v3057_v10 = vrot.slane %v3045_v3, 4  ;;  %v8139_v2 = vld [vmem:[#allocation173_spill] sm:$0xff]  ;;  %v910_v59 = vld [vmem:[#allocation2 + $0x20] sm:$0x3] }
 0x440   : > { %1797 = vrot.lane.b32.xlu0 %v1786_v41, %s7956_s26  ;;  %v3232_v13 = vsel %vm698_vm13, %v8136_v1, %v3231_v6  ;;  %v752_v41 = vmul.f32 %v8137_v9, %v737_v42  ;;  %v704_v53 = vrot.slane %v690_v18, 2  ;;  %v8140_v24 = vrot.slane %v8139_v2, 4  ;;  %v8143_v56 = vld [vmem:[#allocation33_spill] sm:$0xff]  ;;  %v8147_v17 = vld [vmem:[#allocation118_spill] sm:$0xff] }
 0x441   : > { %2403 = vrot.lane.b32.xlu1 %v2392_v55, %s4363_s5  ;;  %v2505_v39 = vsel %vm698_vm13, %v8134_v22, %v2504_v40  ;;  %v8138_v55 = vld [vmem:[#allocation63_spill] sm:$0xff]  ;;  %v2845_v38 = vld [vmem:[#allocation2 + $0x18] sm:$0x3]  ;;  %v8148_v1 = vrot.slane %v8147_v17, 4 }
 0x442   : > { %v6429_v26 = vpop.permute.xlu0 %2701  ;;  %v1710_v19 = vmul.f32 %v8138_v55, %v1695_v49  ;;  %v2335_v6 = vsel %vm436_vm2, %v8140_v24, %v2334_v29  ;;  %v8144_v51 = vld [vmem:[#allocation141_spill] sm:$0xff]  ;;  %v765_v18 = vrot.slane %v752_v41, 4  ;;  %v8145_v49 = vld [vmem:[#allocation136_spill] sm:$0xff] }
 0x443   : > { %v6431_v14 = vpop.permute.xlu1 %2116  ;;  %v813_v3 = vmul.f32 %v8144_v51, %v798_v28  ;;  %v8146_v29 = vrot.slane %v8145_v49, 2  ;;  %v8150_v55 = vld [vmem:[#allocation144_spill] sm:$0xff]  ;;  %v1030_v49 = vld [vmem:[#allocation2 + $0x20] sm:$0x3] }
 0x444   : > { %1793 = vrot.lane.b32.xlu0 %v1782_v47, %s7956_s26  ;;  %v8142_v47 = vrot.slane %v8141_v60, 6  ;;  %v8153_v60 = vld [vmem:[#allocation121_spill] sm:$0xff] }
 0x445   : > { %2823 = vrot.lane.b32.xlu1 %v2812_v43, %s8074_s10  ;;  %v1534_v43 = vmul.f32 %v8143_v56, %v1519_v32  ;;  %v8149_v32 = vld [vmem:[#allocation34_spill] sm:$0xff]  ;;  %v8155_v56 = vld [vmem:[#allocation37_spill] sm:$0xff] }
 0x446   : > { %v1615_v15 = vpop.permute.xlu0 %1614  ;;  %v2642_v44 = vsel %vm527_vm6, %v8142_v47, %v2641_v61  ;;  %v2860_v9 = vmul.f32 %v8149_v32, %v2845_v38  ;;  %v8154_v47 = vrot.slane %v8153_v60, 4  ;;  %v8156_v38 = vld [vmem:[#allocation147_spill] sm:$0xff]  ;;  %v8164_v32 = vld [vmem:[#allocation66_spill] sm:$0xff] }
 0x447   : > { %v1613_v36 = vpop.permute.xlu1 %1612  ;;  %v1546_v41 = vrot.slane %v1534_v43, 6 }
 0x448   : > { %v1620_v23 = vsel %vm1616_vm11, %v1613_v36, %v1615_v15  ;;  %2516 = vrot.lane.b32.xlu0 %v2505_v39, %s7993_s24  ;;  %v1724_v15 = vrot.slane %v1710_v19, 4  ;;  %v826_v19 = vrot.slane %v813_v3, 6  ;;  %v2872_v43 = vrot.slane %v2860_v9, 6 }
 0x449   : > { %1628 = vst [vmem:[#allocation3 + $0x158] sm:$0x3] %v1620_v23  ;;  %3243 = vrot.lane.b32.xlu1 %v3232_v13, %s8080_s12  ;;  %v705_v23 = vsel %vm698_vm13, %v8146_v29, %v704_v53  ;;  %v3058_v13 = vsel %vm436_vm2, %v8148_v1, %v3057_v10  ;;  %v2244_v29 = vld [vmem:[#allocation2 + $0x28] sm:$0x3] }
 0x44a   : > { %v1611_v37 = vpop.permute.xlu0 %1610  ;;  %v2259_v9 = vmul.f32 %v8164_v32, %v2244_v29  ;;  %v8177_v29 = vld [vmem:[#allocation156_spill] sm:$0xff] }
 0x44b   : > { %v1984_v50 = vpop.permute.xlu1 %1983  ;;  %v1619_v40 = vsel %vm1616_vm11, %v1611_v37, %v1613_v36  ;;  %v8151_v37 = vld [vmem:[#allocation140_spill] sm:$0xff]  ;;  %vm8171_vm11 = vcmask 1014784  }
 0x44c   : > { %1627 = vst [vmem:[#allocation3 + $0x150] sm:$0x3] %v1619_v40  ;;  %2346 = vrot.lane.b32.xlu0 %v2335_v6, %s7974_s3  ;;  %v8152_v28 = vrot.slane %v8151_v37, 4  ;;  %v969_v40 = vld [vmem:[#allocation2 + $0x20] sm:$0x3] }
 0x44d   : > { %2653 = vrot.lane.b32.xlu1 %v2642_v44, %s7981_s6  ;;  %v1725_v44 = vsel %vm436_vm2, %v8154_v47, %v1724_v15 }
 0x44e   : > { %v891_v36 = vpop.permute.xlu0 %890  ;;  %v766_v10 = vsel %vm436_vm2, %v8152_v28, %v765_v18  ;;  %v8167_v28 = vld [vmem:[#allocation168_spill] sm:$0xff] }
 0x44f   : > { %v1894_v42 = vpop.permute.xlu1 %1893  ;;  %v896_v61 = vsel %vm865_vm9, %v6197_v48, %v891_v36  ;;  %v897_v22 = vsel %vm865_vm9, %v891_v36, %v6210_v11  ;;  %v3265_v48 = vld [vmem:[#allocation2 + $0x18] sm:$0x3]  ;;  %v924_v11 = vmul.f32 %v8150_v55, %v910_v59  ;;  %vm8159_vm9 = vcmask 384000   ;;  %v3093_v55 = vld [vmem:[#allocation2 + $0x28] sm:$0x3] }
 0x450   : > { %v1900_v39 = vsel %vm1897_vm14, %v6377_v0, %v1894_v42  ;;  %904 = vst [vmem:[#allocation3 + $0x240] sm:$0x3] %v896_v61  ;;  %905 = vst [vmem:[#allocation3 + $0x248] sm:$0x3] %v897_v22  ;;  %716 = vrot.lane.b32.xlu0 %v705_v23, %s8026_s0  ;;  %v8161_v22 = vld [vmem:[#allocation122_spill] sm:$0xff] }
 0x451   : > { %1908 = vst [vmem:[#allocation3 + $0x40] sm:$0xff] %v1900_v39  ;;  %3069 = vrot.lane.b32.xlu1 %v3058_v13, %s7984_s27  ;;  %v937_v51 = vrot.slane %v924_v11, 2  ;;  %v8162_v39 = vrot.slane %v8161_v22, 6  ;;  %v8163_v13 = vld [vmem:[#allocation150_spill] sm:$0xff] }
 0x452   : > { %v1132_v53 = vpop.permute.xlu0 %1131  ;;  %v1274_v22 = vld [vmem:[#allocation2 + $0x20] sm:$0x3] }
 0x453   : > { %v6482_v0 = vpop.permute.xlu1 %1939  ;;  %v1138_v2 = vsel %vm1135_vm15, %v6227_v63, %v1132_v53  ;;  %v1139_v24 = vsel %vm1135_vm15, %v1132_v53, %v6241_v21  ;;  %v3280_v63 = vmul.f32 %v8155_v56, %v3265_v48  ;;  %v983_v21 = vmul.f32 %v8156_v38, %v969_v40  ;;  %vm8160_vm15 = vmmov %vm8159_vm9  ;;  %v2479_v38 = vld [vmem:[#allocation2 + $0x28] sm:$0x3] }
 0x454   : > { %v1946_v6 = vsel %vm1943_vm12, %v6418_v5, %v6482_v0  ;;  %1146 = vst [vmem:[#allocation3 + $0xb0] sm:$0x3] %v1138_v2  ;;  %1147 = vst [vmem:[#allocation3 + $0xb8] sm:$0x3] %v1139_v24  ;;  %777 = vrot.lane.b32.xlu0 %v766_v10, %s7854_s15  ;;  %v8157_v5 = vld [vmem:[#allocation142_spill] sm:$0xff]  ;;  %v1547_v17 = vsel %vm527_vm6, %v8162_v39, %v1546_v41  ;;  %v8168_v10 = vrot.slane %v8167_v28, 6 }
 0x455   : > { %1954 = vst [vmem:[#allocation3 + $0xd0] sm:$0x3f] %v1946_v6  ;;  %1736 = vrot.lane.b32.xlu1 %v1725_v44, %s7949_s17  ;;  %v8158_v36 = vrot.slane %v8157_v5, 6  ;;  %v3292_v1 = vrot.slane %v3280_v63, 4  ;;  %v996_v11 = vrot.slane %v983_v21, 4  ;;  %v8169_v2 = vld [vmem:[#allocation153_spill] sm:$0xff] }
 0x456   : > { %v1367_v3 = vpop.permute.xlu0 %1366  ;;  %v2873_v40 = vsel %vm527_vm6, %v8168_v10, %v2872_v43  ;;  %v8170_v6 = vld [vmem:[#allocation68_spill] sm:$0xff]  ;;  %v2273_v44 = vrot.slane %v2259_v9, 2  ;;  %v1213_v63 = vld [vmem:[#allocation2 + $0x20] sm:$0x3] }
 0x457   : > { %v6501_v18 = vpop.permute.xlu1 %1985  ;;  %v827_v15 = vsel %vm527_vm6, %v8158_v36, %v826_v19  ;;  %v1373_v23 = vsel %vm8159_vm9, %v6257_v35, %v1367_v3  ;;  %v1374_v59 = vsel %vm8160_vm15, %v1367_v3, %v6268_v16  ;;  %v1054_v35 = vmul.f32 %v8163_v13, %v1030_v49  ;;  %v8165_v19 = vld [vmem:[#allocation146_spill] sm:$0xff]  ;;  %v8175_v36 = vld [vmem:[#allocation35_spill] sm:$0xff] }
 0x458   : > { %v1992_v61 = vsel %vm1989_vm5, %v1984_v50, %v6501_v18  ;;  %1381 = vst [vmem:[#allocation3 + $0x2e0] sm:$0x3] %v1373_v23  ;;  %1382 = vst [vmem:[#allocation3 + $0x2e8] sm:$0x3] %v1374_v59  ;;  %838 = vrot.lane.b32.xlu0 %v827_v15, %s7863_s20  ;;  %v1152_v50 = vld [vmem:[#allocation2 + $0x20] sm:$0x3]  ;;  %v3108_v60 = vmul.f32 %v8170_v6, %v3093_v55 }
 0x459   : > { %2000 = vst [vmem:[#allocation3 + $0x160] sm:$0xf] %v1992_v61  ;;  %1558 = vrot.lane.b32.xlu1 %v1547_v17, %s8101_s13  ;;  %v8166_v53 = vrot.slane %v8165_v19, 2  ;;  %v1167_v24 = vmul.f32 %v8169_v2, %v1152_v50  ;;  %v1067_v47 = vrot.slane %v1054_v35, 6  ;;  %v8176_v15 = vrot.slane %v8175_v36, 4  ;;  %v8178_v23 = vld [vmem:[#allocation70_spill] sm:$0xff] }
 0x45a   : > { %v1896_v16 = vpop.permute.xlu0 %1895  ;;  %vm2371_vm9 = vcmask 424960   ;;  %v2494_v59 = vmul.f32 %v8178_v23, %v2479_v38  ;;  %v2365_v39 = vld [vmem:[#allocation2 + $0x20] sm:$0x3]  ;;  %v3122_v13 = vrot.slane %v3108_v60, 6  ;;  %vm8205_vm15 = vcmask 351232  }
 0x45b   : > { %v6519_v48 = vpop.permute.xlu1 %714  ;;  %v6522_v41 = vsel %vm1897_vm14, %v1894_v42, %v1896_v16  ;;  %v938_v37 = vsel %vm698_vm13, %v8166_v53, %v937_v51  ;;  %vm8172_vm14 = vmmov %vm8171_vm11  ;;  %v8173_v51 = vld [vmem:[#allocation148_spill] sm:$0xff]  ;;  %v3293_v49 = vsel %vm436_vm2, %v8176_v15, %v3292_v1  ;;  %v1180_v17 = vrot.slane %v1167_v24, 2  ;;  %v8181_v9 = vld [vmem:[#allocation170_spill] sm:$0xff] }
 0x45c   : > { %949 = vrot.lane.b32.xlu0 %v938_v37, %s7872_s18  ;;  %v8174_v3 = vrot.slane %v8173_v51, 4  ;;  %v8179_v1 = vld [vmem:[#allocation152_spill] sm:$0xff]  ;;  %v8182_v16 = vrot.slane %v8181_v9, 2  ;;  %v2372_v55 = vsel %vm2371_vm9, %v8110_v34, %v8059_v58  ;;  %v2508_v28 = vrot.slane %v2494_v59, 2  ;;  %v2785_v2 = vld [vmem:[#allocation2 + $0x20] sm:$0x3] }
 0x45d   : > { %2884 = vrot.lane.b32.xlu1 %v2873_v40, %s7959_s16  ;;  %v8180_v35 = vrot.slane %v8179_v1, 6  ;;  %v2380_v53 = vmul.f32 %v2372_v55, %v2365_v39  ;;  %v8184_v60 = vld [vmem:[#allocation154_spill] sm:$0xff]  ;;  %v8189_v15 = vld [vmem:[#allocation157_spill] sm:$0xff]  ;;  %vm8226_vm9 = vcmask 367616  }
 0x45e   : > { %v2223_v42 = vpop.permute.xlu0 %2222  ;;  %v997_v5 = vsel %vm436_vm2, %v8174_v3, %v996_v11  ;;  %v2274_v50 = vsel %vm698_vm13, %v8182_v16, %v2273_v44  ;;  %v8183_v11 = vld [vmem:[#allocation158_spill] sm:$0xff]  ;;  %v8193_v39 = vld [vmem:[#allocation161_spill] sm:$0xff]  ;;  %v8196_v16 = vld [vmem:[#allocation159_spill] sm:$0xff] }
 0x45f   : > { %v6534_v56 = vpop.permute.xlu1 %718  ;;  %v2229_v21 = vsel %vm8171_vm11, %v6416_v8, %v2223_v42  ;;  %v2230_v43 = vsel %vm8172_vm14, %v2223_v42, %v6283_v33  ;;  %v1228_v8 = vmul.f32 %v8177_v29, %v1213_v63  ;;  %v1068_v32 = vsel %vm527_vm6, %v8180_v35, %v1067_v47  ;;  %v8186_v58 = vld [vmem:[#allocation126_spill] sm:$0xff]  ;;  %v6579_v63 = vld [vmem:[#allocation2 + $0x8] sm:$0xff]  ;;  %vm8206_vm11 = vmmov %vm8205_vm15 }
 0x460   : > { %2237 = vst [vmem:[#allocation3 + $0x60] sm:$0x3] %v2229_v21  ;;  %2238 = vst [vmem:[#allocation3 + $0x68] sm:$0x3] %v2230_v43  ;;  %1008 = vrot.lane.b32.xlu0 %v997_v5, %s7881_s19  ;;  %v1289_v19 = vmul.f32 %v8183_v11, %v1274_v22  ;;  %v8185_v47 = vrot.slane %v8184_v60, 2  ;;  %v8187_v34 = vrot.slane %v8186_v58, 6 }
 0x461   : > { %3304 = vrot.lane.b32.xlu1 %v3293_v49, %s7964_s28  ;;  %v1241_v37 = vrot.slane %v1228_v8, 4  ;;  %v1450_v3 = vld [vmem:[#allocation2 + $0x20] sm:$0x3]  ;;  %v2393_v5 = vrot.slane %v2380_v53, 6  ;;  %v8190_v49 = vrot.slane %v8189_v15, 4  ;;  %v8198_v53 = vld [vmem:[#allocation175_spill] sm:$0xff] }
 0x462   : > { %v6550_v33 = vpop.permute.xlu0 %2066  ;;  %v1181_v44 = vsel %vm698_vm13, %v8185_v47, %v1180_v17  ;;  %v3123_v42 = vsel %vm527_vm6, %v8187_v34, %v3122_v13  ;;  %v1302_v21 = vrot.slane %v1289_v19, 6  ;;  %v8191_v8 = vld [vmem:[#allocation130_spill] sm:$0xff]  ;;  %v1474_v17 = vmul.f32 %v8193_v39, %v1450_v3  ;;  %v8200_v60 = vld [vmem:[#allocation28_spill] sm:$0xff]  ;;  %v8203_v34 = vld [vmem:[#allocation61_spill] sm:$0xff] }
 0x463   : > { %v6552_v61 = vpop.permute.xlu1 %775  ;;  %v1242_v29 = vsel %vm436_vm2, %v8190_v49, %v1241_v37  ;;  %v8192_v23 = vrot.slane %v8191_v8, 2  ;;  %v2602_v35 = vld [vmem:[#allocation2 + $0x20] sm:$0x3]  ;;  %v8201_v47 = vrot.slane %v8200_v60, 4  ;;  %v8202_v58 = vld [vmem:[#allocation92_spill] sm:$0xff]  ;;  %v8210_v39 = vld [vmem:[#allocation181_spill] sm:$0xff] }
 0x464   : > { %1079 = vrot.lane.b32.xlu0 %v1068_v32, %s8066_s2  ;;  %v3022_v19 = vld [vmem:[#allocation2 + $0x20] sm:$0x3]  ;;  %s8350_s2 = sld [smem:[#allocation11_spill]] }
 0x465   : > { %2285 = vrot.lane.b32.xlu1 %v2274_v50, %s8114_s30  ;;  %v2509_v59 = vsel %vm698_vm13, %v8192_v23, %v2508_v28  ;;  %v8197_v50 = vrot.slane %v8196_v16, 6  ;;  %v8211_v16 = vld [vmem:[#allocation176_spill] sm:$0xff]  ;;  %v1755_v60 = vld [vmem:[#allocation2 + $0x20] sm:$0x3] }
 0x466   : > { %v2458_v10 = vpop.permute.xlu0 %2457 }
 0x467   : > { %v6565_v40 = vpop.permute.xlu1 %779  ;;  %v2464_v24 = vsel %vm2461_vm3, %v6313_v4, %v2458_v10  ;;  %v2465_v6 = vsel %vm2461_vm3, %v2458_v10, %v6297_v52  ;;  %v6582_v4 = vmul.f32 %v6579_v63, %v2372_v55  ;;  %v8188_v52 = vld [vmem:[#allocation59_spill] sm:$0xff]  ;;  %v1303_v55 = vsel %vm527_vm6, %v8197_v50, %v1302_v21  ;;  %v1694_v10 = vld [vmem:[#allocation2 + $0x20] sm:$0x3] }
 0x468   : > { %2472 = vst [vmem:[#allocation3 + $0x290] sm:$0x3] %v2464_v24  ;;  %2473 = vst [vmem:[#allocation3 + $0x298] sm:$0x3] %v2465_v6  ;;  %1192 = vrot.lane.b32.xlu0 %v1181_v44, %s8075_s11  ;;  %v2800_v38 = vmul.f32 %v8188_v52, %v2785_v2  ;;  %v8199_v2 = vld [vmem:[#allocation177_spill] sm:$0xff]  ;;  %v1487_v6 = vrot.slane %v1474_v17, 4 }
 0x469   : > { %3134 = vrot.lane.b32.xlu1 %v3123_v42, %s7989_s21  ;;  %v7703_v22 = vrot.slane %v6582_v4, 6  ;;  %v3046_v24 = vmul.f32 %v8199_v2, %v3022_v19  ;;  %v8204_v52 = vld [vmem:[#allocation179_spill] sm:$0xff]  ;;  %v8212_v50 = vrot.slane %v8211_v16, 6 }
 0x46a   : > { %v1942_v43 = vpop.permute.xlu0 %1941  ;;  %v2813_v13 = vrot.slane %v2800_v38, 4  ;;  %v1709_v38 = vmul.f32 %v8204_v52, %v1694_v10  ;;  %v8216_v10 = vld [vmem:[#allocation67_spill] sm:$0xff]  ;;  %v8223_v52 = vld [vmem:[#allocation164_spill] sm:$0xff] }
 0x46b   : > { %v6585_v51 = vpop.permute.xlu1 %836  ;;  %v1947_v36 = vsel %vm1943_vm12, %v6482_v0, %v1942_v43  ;;  %vm8194_vm12 = vcmask 875520   ;;  %v2394_v11 = vsel %vm527_vm6, %v7703_v22, %v2393_v5  ;;  %v2846_v5 = vld [vmem:[#allocation2 + $0x20] sm:$0x3] }
 0x46c   : > { %1955 = vst [vmem:[#allocation3 + $0xd8] sm:$0x3f] %v1947_v36  ;;  %1253 = vrot.lane.b32.xlu0 %v1242_v29, %s8086_s22  ;;  %vm8195_vm3 = vmmov %vm8194_vm12  ;;  %v2814_v44 = vsel %vm436_vm2, %v8201_v47, %v2813_v13  ;;  %v3059_v36 = vrot.slane %v3046_v24, 4  ;;  %v8207_v29 = vld [vmem:[#allocation162_spill] sm:$0xff]  ;;  %v2861_v17 = vmul.f32 %v8210_v39, %v2846_v5  ;;  %v8229_v39 = vld [vmem:[#allocation95_spill] sm:$0xff] }
 0x46d   : > { %2520 = vrot.lane.b32.xlu1 %v2509_v59, %s7993_s24  ;;  %v8208_v8 = vrot.slane %v8207_v29, 4  ;;  %v8209_v59 = vld [vmem:[#allocation94_spill] sm:$0xff] }
 0x46e   : > { %v2704_v1 = vpop.permute.xlu0 %2703  ;;  %v2874_v24 = vrot.slane %v2861_v17, 6 }
 0x46f   : > { %v6599_v0 = vpop.permute.xlu1 %840  ;;  %v2710_v32 = vsel %vm8194_vm12, %v6429_v26, %v2704_v1  ;;  %v2711_v9 = vsel %vm8195_vm3, %v2704_v1, %v6329_v57  ;;  %v2626_v26 = vmul.f32 %v8198_v53, %v2602_v35  ;;  %v1520_v57 = vld [vmem:[#allocation2 + $0x20] sm:$0x3]  ;;  %v1488_v23 = vsel %vm436_vm2, %v8208_v8, %v1487_v6  ;;  %vm8227_vm12 = vmmov %vm8226_vm9 }
 0x470   : > { %2718 = vst [vmem:[#allocation3 + $0x100] sm:$0x3] %v2710_v32  ;;  %2719 = vst [vmem:[#allocation3 + $0x108] sm:$0x3] %v2711_v9  ;;  %1314 = vrot.lane.b32.xlu0 %v1303_v55, %s8096_s25  ;;  %v1535_v42 = vmul.f32 %v8203_v34, %v1520_v57  ;;  %v3266_v32 = vld [vmem:[#allocation2 + $0x20] sm:$0x3] }
 0x471   : > { %2405 = vrot.lane.b32.xlu1 %v2394_v11, %s4363_s5  ;;  %v2639_v21 = vrot.slane %v2626_v26, 6  ;;  %v8213_v11 = vld [vmem:[#allocation178_spill] sm:$0xff]  ;;  %v3281_v2 = vmul.f32 %v8216_v10, %v3266_v32  ;;  %v8228_v8 = vrot.slane %v5978_v20, 6  ;;  %vm3159_vm3 = vcmask 310272  }
 0x472   : > { %v2113_v37 = vpop.permute.xlu0 %2112  ;;  %v1548_v13 = vrot.slane %v1535_v42, 6  ;;  %v8214_v19 = vrot.slane %v8213_v11, 4  ;;  %v8215_v26 = vld [vmem:[#allocation182_spill] sm:$0xff] }
 0x473   : > { %v6614_v28 = vpop.permute.xlu1 %947  ;;  %v2640_v55 = vsel %vm527_vm6, %v8212_v50, %v2639_v21  ;;  %v2303_v50 = vld [vmem:[#allocation2 + $0x18] sm:$0x3]  ;;  %v8236_v10 = vld [vmem:[#allocation166_spill] sm:$0xff] }
 0x474   : > { %1427 = vrot.lane.b32.xlu0 %v8202_v58, %s8105_s14  ;;  %v3060_v53 = vsel %vm436_vm2, %v8214_v19, %v3059_v36  ;;  %v8221_v58 = vld [vmem:[#allocation180_spill] sm:$0xff] }
 0x475   : > { %2825 = vrot.lane.b32.xlu1 %v2814_v44, %s8074_s10  ;;  %v8222_v34 = vrot.slane %v8221_v58, 4  ;;  %v8238_v58 = vld [vmem:[#allocation97_spill] sm:$0xff] }
 0x476   : > { %v2939_v43 = vpop.permute.xlu0 %2938 }
 0x477   : > { %v6625_v3 = vpop.permute.xlu1 %951  ;;  %v2945_v15 = vsel %vm8205_vm15, %v6361_v27, %v2939_v43  ;;  %v2946_v49 = vsel %vm8206_vm11, %v2939_v43, %v6345_v46  ;;  %v3092_v27 = vld [vmem:[#allocation2 + $0x20] sm:$0x3]  ;;  %v1722_v46 = vrot.slane %v1709_v38, 4  ;;  %v8224_v38 = vrot.slane %v8223_v52, 6  ;;  %v8225_v43 = vld [vmem:[#allocation69_spill] sm:$0xff] }
 0x478   : > { %2953 = vst [vmem:[#allocation3 + $0x330] sm:$0x3] %v2945_v15  ;;  %2954 = vst [vmem:[#allocation3 + $0x338] sm:$0x3] %v2946_v49  ;;  %1499 = vrot.lane.b32.xlu0 %v1488_v23, %s8115_s29  ;;  %v3107_v57 = vmul.f32 %v8215_v26, %v3092_v27  ;;  %v1770_v5 = vmul.f32 %v8225_v43, %v1755_v60  ;;  %v2875_v23 = vsel %vm527_vm6, %v8228_v8, %v2874_v24  ;;  %v3328_v60 = vld [vmem:[#allocation2 + $0x28] sm:$0x3] }
 0x479   : > { %3245 = vrot.lane.b32.xlu1 %v8209_v59, %s8080_s12  ;;  %v1723_v42 = vsel %vm436_vm2, %v8222_v34, %v1722_v46  ;;  %v1549_v21 = vsel %vm527_vm6, %v8224_v38, %v1548_v13  ;;  %v2304_v59 = vld [vmem:[#allocation2 + $0x20] sm:$0x3]  ;;  %v8233_v46 = vld [vmem:[#allocation32_spill] sm:$0xff]  ;;  %vm1822_vm15 = vcmask 801792   ;;  %vm2545_vm11 = vcmask 818176   ;;  %s3937_s12 = sshll.u32 %s8350_s2, 9 }
 0x47a   : > { %v1988_v1 = vpop.permute.xlu0 %1987  ;;  %v1783_v27 = vrot.slane %v1770_v5, 6  ;;  %v8240_v5 = vld [vmem:[#allocation72_spill] sm:$0xff] }
 0x47b   : > { %v6638_v35 = vpop.permute.xlu1 %1006  ;;  %v1993_v9 = vsel %vm1989_vm5, %v6501_v18, %v1988_v1  ;;  %vm8217_vm5 = vcmask 498688  }
 0x47c   : > { %2001 = vst [vmem:[#allocation3 + $0x168] sm:$0xf] %v1993_v9  ;;  %2651 = vrot.lane.b32.xlu0 %v2640_v55, %s7981_s6  ;;  %vm8219_vm14 = vmmov %vm8217_vm5  ;;  %v8234_v9 = vrot.slane %v8233_v46, 4  ;;  %v8235_v55 = vld [vmem:[#allocation49_spill] sm:$0xff]  ;;  %s4367_s6 = smov 28  }
 0x47d   : > { %3071 = vrot.lane.b32.xlu1 %v3060_v53, %s7984_s27  ;;  %v2315_v11 = vmul.f32 %v6391_v54, %v8235_v55  ;;  %v2318_v26 = vmul.f32 %v8235_v55, %v2303_v50  ;;  %v8246_v50 = vld [vmem:[#allocation74_spill] sm:$0xff]  ;;  %s4370_s27 = smov 77  }
 0x47e   : > { %v2069_v6 = vpop.permute.xlu0 %2068 }
 0x47f   : > { %v6652_v18 = vpop.permute.xlu1 %1010  ;;  %v6656_v47 = vsel %vm8217_vm5, %v6550_v33, %v2069_v6  ;;  %v6660_v44 = vsel %vm8219_vm14, %v2069_v6, %v6399_v12  ;;  %v3120_v33 = vrot.slane %v3107_v57, 6  ;;  %v3294_v12 = vrot.slane %v3281_v2, 4  ;;  %v3327_v6 = vld [vmem:[#allocation2 + $0x20] sm:$0x3] }
 0x480   : > { %8218 = vst [vmem:[#allocation30_spill] sm:$0xff] %v6656_v47  ;;  %8220 = vst [vmem:[#allocation87_spill] sm:$0xff] %v6660_v44  ;;  %1734 = vrot.lane.b32.xlu0 %v1723_v42, %s7949_s17  ;;  %v8237_v2 = vrot.slane %v8236_v10, 6  ;;  %v2327_v34 = vrot.slane %v2315_v11, 4  ;;  %v2330_v38 = vrot.slane %v2318_v26, 4  ;;  %v8247_v11 = vld [vmem:[#allocation134_spill] sm:$0xff] }
 0x481   : > { %1560 = vrot.lane.b32.xlu1 %v1549_v21, %s8101_s13  ;;  %v3295_v16 = vsel %vm436_vm2, %v8234_v9, %v3294_v12  ;;  %v8239_v21 = vld [vmem:[#allocation184_spill] sm:$0xff]  ;;  %v8248_v26 = vrot.slane %v8247_v11, 6  ;;  %v8249_v10 = vld [vmem:[#allocation185_spill] sm:$0xff]  ;;  %vm8279_vm14 = vcmask 1039360   ;;  %s8347_s17 = sld [smem:[#allocation194_spill]]  ;;  %s8352_s13 = sld [smem:[#allocation195_spill]] }
 0x482   : > { %v2115_v36 = vpop.permute.xlu0 %2114  ;;  %v1784_v24 = vsel %vm527_vm6, %v8237_v2, %v1783_v27  ;;  %v3342_v43 = vmul.f32 %v8239_v21, %v3327_v6  ;;  %v2331_v27 = vsel %vm436_vm2, %v2327_v34, %v2330_v38  ;;  %v8250_v2 = vrot.slane %v8249_v10, 6 }
 0x483   : > { %v6671_v15 = vpop.permute.xlu1 %1077  ;;  %v2121_v49 = vsel %vm8226_vm9, %v2113_v37, %v2115_v36  ;;  %v2122_v29 = vsel %vm8227_vm12, %v2115_v36, %v6431_v14  ;;  %v8230_v37 = vld [vmem:[#allocation167_spill] sm:$0xff]  ;;  %v8241_v36 = vld [vmem:[#allocation169_spill] sm:$0xff]  ;;  %vm8280_vm9 = vmmov %vm8279_vm14  ;;  %vm8284_vm12 = vcmask 777216  }
 0x484   : > { %2129 = vst [vmem:[#allocation3 + $0x300] sm:$0x3f] %v2121_v49  ;;  %2130 = vst [vmem:[#allocation3 + $0x308] sm:$0x3f] %v2122_v29  ;;  %2283 = vrot.lane.b32.xlu0 %v8229_v39, %s8114_s30  ;;  %v2319_v1 = vmul.f32 %v8230_v37, %v2304_v59  ;;  %v8231_v14 = vld [vmem:[#allocation183_spill] sm:$0xff]  ;;  %v8242_v12 = vrot.slane %v8241_v36, 4 }
 0x485   : > { %2886 = vrot.lane.b32.xlu1 %v2875_v23, %s7959_s16  ;;  %v8232_v32 = vrot.slane %v8231_v14, 6  ;;  %v3326_v29 = vld [vmem:[#allocation2 + $0x18] sm:$0x3]  ;;  %v8243_v59 = vld [vmem:[#allocation48_spill] sm:$0xff]  ;;  %v3355_v37 = vrot.slane %v3342_v43, 6  ;;  %v8253_v43 = vld [vmem:[#allocation99_spill] sm:$0xff] }
 0x486   : > { %v6682_v17 = vpop.permute.xlu0 %2407  ;;  %v2332_v57 = vrot.slane %v2319_v1, 4  ;;  %v3341_v39 = vmul.f32 %v8243_v59, %v3326_v29  ;;  %v2725_v14 = vld [vmem:[#allocation2 + $0x28] sm:$0x3]  ;;  %v8256_v59 = vld [vmem:[#allocation174_spill] sm:$0xff]  ;;  %s4371_s16 = smov 26  }
 0x487   : > { %v6684_v13 = vpop.permute.xlu1 %1081  ;;  %v3121_v20 = vsel %vm527_vm6, %v8232_v32, %v3120_v33  ;;  %v3343_v33 = vmul.f32 %v8240_v5, %v3328_v60  ;;  %v8244_v32 = vld [vmem:[#allocation89_spill] sm:$0xff]  ;;  %v2740_v55 = vmul.f32 %v8246_v50, %v2725_v14  ;;  %v8254_v5 = vld [vmem:[#allocation75_spill] sm:$0xff]  ;;  %v8260_v50 = vld [vmem:[#allocation54_spill] sm:$0xff]  ;;  %s7221_s14 = scalar_lea.hbm %s8352_s13, %s3937_s12 }
 0x488   : > { %3132 = vrot.lane.b32.xlu0 %v3121_v20, %s7989_s21  ;;  %v2333_v49 = vsel %vm436_vm2, %v8242_v12, %v2332_v57  ;;  %v8245_v20 = vrot.slane %v8244_v32, 2  ;;  %s4368_s21 = smov 78  }
 0x489   : > { %3306 = vrot.lane.b32.xlu1 %v3295_v16, %s7964_s28  ;;  %v3357_v1 = vrot.slane %v3343_v33, 6  ;;  %v3353_v16 = vrot.slane %v3341_v39, 6  ;;  %v8255_v33 = vld [vmem:[#allocation53_spill] sm:$0xff]  ;;  %v8257_v39 = vrot.slane %v8256_v59, 2 }
 0x48a   : > { %v6697_v19 = vpop.permute.xlu0 %2827  ;;  %v3160_v36 = vsel %vm3159_vm3, %v8255_v33, %v8254_v5  ;;  %v3164_v11 = vmul.f32 %v6391_v54, %v8255_v33  ;;  %vm8285_vm3 = vmmov %vm8284_vm12 }
 0x48b   : > { %v6699_v53 = vpop.permute.xlu1 %1190  ;;  %v3358_v57 = vsel %vm527_vm6, %v8248_v26, %v3357_v1  ;;  %v3165_v12 = vmul.f32 %v6579_v63, %v3160_v36  ;;  %v6764_v1 = vld [vmem:[#allocation2 + $0x10] sm:$0xff] }
 0x48c   : > { %2518 = vrot.lane.b32.xlu0 %v8238_v58, %s7993_s24  ;;  %v2754_v58 = vrot.slane %v2740_v55, 2  ;;  %s4369_s24 = smov 27  }
 0x48d   : > { %1795 = vrot.lane.b32.xlu1 %v1784_v24, %s7956_s26  ;;  %v3356_v24 = vsel %vm527_vm6, %v8250_v2, %v3355_v37  ;;  %v1827_v2 = vmul.f32 %v6391_v54, %v8260_v50  ;;  %s8349_s26 = sld [smem:[#allocation8_spill]] }
 0x48e   : > { %v6708_v42 = vpop.permute.xlu0 %3247  ;;  %v2755_v37 = vsel %vm698_vm13, %v8257_v39, %v2754_v58 }
 0x48f   : > { %v6710_v52 = vpop.permute.xlu1 %1194 }
 0x490   : > { %2336 = vrot.lane.b32.xlu0 %v2327_v34, %s7974_s3  ;;  %v8251_v34 = vld [vmem:[#allocation172_spill] sm:$0xff] }
 0x491   : > { %2344 = vrot.lane.b32.xlu1 %v2333_v49, %s7974_s3  ;;  %v8252_v38 = vrot.slane %v8251_v34, 6 }
 0x492   : > { %v6719_v8 = vpop.permute.xlu0 %2649 }
 0x493   : > { %v6721_v23 = vpop.permute.xlu1 %1251  ;;  %v3354_v21 = vsel %vm527_vm6, %v8252_v38, %v3353_v16  ;;  %v8259_v16 = vld [vmem:[#allocation76_spill] sm:$0xff]  ;;  %v3153_v38 = vld [vmem:[#allocation2 + $0x20] sm:$0x3]  ;;  %s404_s23 = sand.u32 1, %s8349_s26  }
 0x494   : > { %2756 = vrot.lane.b32.xlu0 %v8245_v20, %s7977_s4  ;;  %v8258_v20 = vld [vmem:[#allocation100_spill] sm:$0xff]  ;;  %v1823_v55 = vsel %vm1822_vm15, %v8260_v50, %v8259_v16  ;;  %vm8289_vm15 = vcmask 646144   ;;  %s3915_s0 = sshll.u32 %s404_s23, 5  ;;  %s7225_s30 = scalar_lea.sflag [#allocation5], %s404_s23 }
 0x495   : > { %2342 = vrot.lane.b32.xlu1 %v2331_v27, %s7974_s3  ;;  %s4364_s3 = smov 90   ;;  %v3166_v27 = vmul.f32 %v6764_v1, %v8254_v5  ;;  %v1828_v26 = vmul.f32 %v6579_v63, %v1823_v55 }
 0x496   : > { %v6729_v46 = vpop.permute.xlu0 %3073 }
 0x497   : > { %v6731_v9 = vpop.permute.xlu1 %1255 }
 0x498   : > { %3369 = vrot.lane.b32.xlu0 %v3358_v57, %s7970_s1 }
 0x499   : > { %3367 = vrot.lane.b32.xlu1 %v3356_v24, %s7970_s1  ;;  %v1829_v24 = vmul.f32 %v6764_v1, %v8259_v16 }
 0x49a   : > { %v6742_v6 = vpop.permute.xlu0 %1732 }
 0x49b   : > { %v6744_v60 = vpop.permute.xlu1 %1312 }
 0x49c   : > { %2764 = vrot.lane.b32.xlu0 %v8253_v43, %s7977_s4  ;;  %v3168_v43 = vmul.f32 %v3160_v36, %v3153_v38  ;;  %v1817_v36 = vld [vmem:[#allocation2 + $0x28] sm:$0x3] }
 0x49d   : > { %3365 = vrot.lane.b32.xlu1 %v3354_v21, %s7970_s1  ;;  %s4365_s1 = smov 30   ;;  %v3154_v21 = vld [vmem:[#allocation2 + $0x28] sm:$0x3]  ;;  %v1832_v38 = vmul.f32 %v8259_v16, %v1817_v36 }
 0x49e   : > { %v6755_v49 = vpop.permute.xlu0 %1562 }
 0x49f   : > { %v6757_v29 = vpop.permute.xlu1 %1316 }
 0x4a0   : > { %3178 = vrot.lane.b32.xlu0 %v3165_v12, %s4364_s3  ;;  %v3169_v12 = vmul.f32 %v8254_v5, %v3154_v21  ;;  %v2135_v5 = vld [vmem:[#allocation2 + $0x20] sm:$0x3] }
 0x4a1   : > { %2766 = vrot.lane.b32.xlu1 %v2755_v37, %s7977_s4  ;;  %v3152_v37 = vld [vmem:[#allocation2 + $0x18] sm:$0x3] }
 0x4a2   : > { %v6768_v14 = vpop.permute.xlu0 %2888 }
 0x4a3   : > { %v6770_v32 = vpop.permute.xlu1 %1425 }
 0x4a4   : > { %2762 = vrot.lane.b32.xlu0 %v8258_v20, %s7977_s4  ;;  %v3167_v20 = vmul.f32 %v8255_v33, %v3152_v37  ;;  %s4366_s4 = smov 29   ;;  %v2136_v37 = vld [vmem:[#allocation2 + $0x28] sm:$0x3] }
 0x4a5   : > { %3180 = vrot.lane.b32.xlu1 %v3166_v27, %s4364_s3  ;;  %v1816_v27 = vld [vmem:[#allocation2 + $0x20] sm:$0x3]  ;;  %v2150_v62 = vrot.slane %v2136_v37, 6 }
 0x4a6   : > { %v6780_v57 = vpop.permute.xlu0 %3308 }
 0x4a7   : > { %v6782_v10 = vpop.permute.xlu1 %1429 }
 0x4a8   : > { %1841 = vrot.lane.b32.xlu0 %v1828_v26, %s4365_s1 }
 0x4a9   : > { %3176 = vrot.lane.b32.xlu1 %v3164_v11, %s4364_s3  ;;  %v1831_v11 = vmul.f32 %v1823_v55, %v1816_v27  ;;  %v2148_v55 = vrot.slane %v2135_v5, 6  ;;  %v8263_v27 = vld [vmem:[#allocation77_spill] sm:$0xff] }
 0x4aa   : > { %v6790_v58 = vpop.permute.xlu0 %2281 }
 0x4ab   : > { %v6792_v34 = vpop.permute.xlu1 %1497 }
 0x4ac   : > { %1839 = vrot.lane.b32.xlu0 %v1827_v2, %s4365_s1 }
 0x4ad   : > { %1843 = vrot.lane.b32.xlu1 %v1829_v24, %s4365_s1  ;;  %v6808_v24 = vld [vmem:[#allocation2 + $0x8] sm:$0xff] }
 0x4ae   : > { %v6797_v59 = vpop.permute.xlu0 %3130  ;;  %v2144_v33 = vrot.slane %v6808_v24, 6 }
 0x4af   : > { %v6799_v39 = vpop.permute.xlu1 %1501 }
 0x4b0   : > { %3186 = vrot.lane.b32.xlu0 %v3169_v12, %s4364_s3  ;;  %v6818_v12 = vld [vmem:[#allocation2 + $0x10] sm:$0xff]  ;;  %v2149_v22 = vsel %vm527_vm6, %v2144_v33, %v2148_v55 }
 0x4b1   : > { %3184 = vrot.lane.b32.xlu1 %v3168_v43, %s4364_s3  ;;  %v2145_v5 = vrot.slane %v6818_v12, 6 }
 0x4b2   : > { %v6804_v26 = vpop.permute.xlu0 %1797 }
 0x4b3   : > { %8261 = vst [vmem:[#allocation39_spill] sm:$0xff] %v6804_v26  ;;  %v6806_v2 = vpop.permute.xlu1 %2403 }
 0x4b4   : > { %1847 = vrot.lane.b32.xlu0 %v1831_v11, %s4365_s1 }
 0x4b5   : > { %3182 = vrot.lane.b32.xlu1 %v3167_v20, %s4364_s3  ;;  %v8264_v20 = vld [vmem:[#allocation56_spill] sm:$0xff]  ;;  %s4373_s3 = smov [#allocation4]  }
 0x4b6   : > { %v6813_v21 = vpop.permute.xlu0 %1793  ;;  %v2546_v11 = vsel %vm2545_vm11, %v8264_v20, %v8263_v27  ;;  %vm8290_vm11 = vmmov %vm8289_vm15 }
 0x4b7   : > { %8262 = vst [vmem:[#allocation98_spill] sm:$0xff] %v6813_v21  ;;  %v6815_v43 = vpop.permute.xlu1 %2823  ;;  %v6825_v16 = vmul.f32 %v6579_v63, %v2546_v11  ;;  %v1815_v21 = vld [vmem:[#allocation2 + $0x18] sm:$0x3] }
 0x4b8   : > { %2154 = vrot.lane.b32.xlu0 %v2144_v33, %s4366_s4  ;;  %v1830_v33 = vmul.f32 %v8260_v50, %v1815_v21  ;;  %v6870_v21 = vmul.f32 %v6391_v54, %v8264_v20  ;;  %v8269_v54 = vld [vmem:[#allocation78_spill] sm:$0xff] }
 0x4b9   : > { %1849 = vrot.lane.b32.xlu1 %v1832_v38, %s4365_s1  ;;  %v6837_v38 = vmul.f32 %v6764_v1, %v8263_v27  ;;  %v7708_v30 = vrot.slane %v6825_v16, 4 }
 0x4ba   : > { %v6827_v36 = vpop.permute.xlu0 %2516 }
 0x4bb   : > { %8265 = vst [vmem:[#allocation110_spill] sm:$0xff] %v6827_v36  ;;  %v6829_v45 = vpop.permute.xlu1 %3243  ;;  %v2151_v36 = vsel %vm527_vm6, %v2145_v5, %v2150_v62  ;;  %v7709_v55 = vrot.slane %v6837_v38, 4 }
 0x4bc   : > { %2160 = vrot.lane.b32.xlu0 %v2149_v22, %s4366_s4  ;;  %v2134_v22 = vld [vmem:[#allocation2 + $0x18] sm:$0x3] }
 0x4bd   : > { %2156 = vrot.lane.b32.xlu1 %v2145_v5, %s4366_s4 }
 0x4be   : > { %v6840_v25 = vpop.permute.xlu0 %2346 }
 0x4bf   : > { %8266 = vst [vmem:[#allocation71_spill] sm:$0xff] %v6840_v25  ;;  %v6842_v26 = vpop.permute.xlu1 %2653  ;;  %v6853_v25 = vld [vmem:[#allocation2] sm:$0xff] }
 0x4c0   : > { %2573 = vrot.lane.b32.xlu0 %v7708_v30, %s4367_s6  ;;  %v2146_v30 = vrot.slane %v2134_v22, 6  ;;  %v2143_v50 = vrot.slane %v6853_v25, 6 }
 0x4c1   : > { %2162 = vrot.lane.b32.xlu1 %v2151_v36, %s4366_s4 }
 0x4c2   : > { %v717_v37 = vpop.permute.xlu0 %716 }
 0x4c3   : > { %v6851_v31 = vpop.permute.xlu1 %3069  ;;  %v6857_v62 = vsel %vm720_vm0, %v6519_v48, %v717_v37  ;;  %v6861_v5 = vsel %vm720_vm0, %v717_v37, %v6534_v56  ;;  %v1634_v37 = vld [vmem:[#allocation2 + $0x28] sm:$0x3]  ;;  %vm8275_vm0 = vcmask 261120  }
 0x4c4   : > { %8267 = vst [vmem:[#allocation46_spill] sm:$0xff] %v6857_v62  ;;  %8268 = vst [vmem:[#allocation82_spill] sm:$0xff] %v6861_v5  ;;  %1845 = vrot.lane.b32.xlu0 %v1830_v33, %s4365_s1  ;;  %v2147_v33 = vsel %vm527_vm6, %v2143_v50, %v2146_v30  ;;  %v2562_v62 = vrot.slane %v6870_v21, 4  ;;  %s4225_s1 = sshll.u32 %s4373_s3, 4  ;;  %s4226_s1 = int_to_ptr.vmem [resolvable:$false] %s4225_s1 }
 0x4c5   : > { %2575 = vrot.lane.b32.xlu1 %v7709_v55, %s4367_s6  ;;  %v1646_v55 = vmul.f32 %v6764_v1, %v8269_v54  ;;  %vm8276_vm5 = vmmov %vm8275_vm0 }
 0x4c6   : > { %v778_v36 = vpop.permute.xlu0 %777 }
 0x4c7   : > { %v6872_v48 = vpop.permute.xlu1 %1736  ;;  %v784_v56 = vsel %vm781_vm8, %v6552_v61, %v778_v36  ;;  %v785_v22 = vsel %vm781_vm8, %v778_v36, %v6565_v40  ;;  %v1649_v61 = vmul.f32 %v8269_v54, %v1634_v37  ;;  %v2539_v36 = vld [vmem:[#allocation2 + $0x20] sm:$0x3] }
 0x4c8   : > { %792 = vst [vmem:[#allocation3 + $0x120] sm:$0x3f] %v784_v56  ;;  %793 = vst [vmem:[#allocation3 + $0x128] sm:$0x3f] %v785_v22  ;;  %2158 = vrot.lane.b32.xlu0 %v2147_v33, %s4366_s4  ;;  %v1658_v22 = vrot.slane %v1646_v55, 2  ;;  %v2554_v54 = vmul.f32 %v2546_v11, %v2539_v36  ;;  %v8277_v36 = vld [vmem:[#allocation88_spill] sm:$0xff] }
 0x4c9   : > { %2152 = vrot.lane.b32.xlu1 %v2143_v50, %s4366_s4  ;;  %v8270_v50 = vld [vmem:[#allocation90_spill] sm:$0xff]  ;;  %v1663_v44 = vrot.slane %v1649_v61, 2  ;;  %s4227_s4 = scalar_lea.vmem %s4226_s1, 1024 }
 0x4ca   : > { %v839_v5 = vpop.permute.xlu0 %838  ;;  %v8271_v56 = vrot.slane %v8270_v50, 2  ;;  %v2567_v11 = vrot.slane %v2554_v54, 4  ;;  %v2960_v54 = vld [vmem:[#allocation2 + $0x28] sm:$0x3] }
 0x4cb   : > { %v6884_v47 = vpop.permute.xlu1 %1558  ;;  %v845_v30 = vsel %vm842_vm7, %v6585_v51, %v839_v5  ;;  %v846_v40 = vsel %vm842_vm7, %v839_v5, %v6599_v0  ;;  %v2540_v51 = vld [vmem:[#allocation2 + $0x28] sm:$0x3]  ;;  %vm8272_vm7 = vcmask 392192  }
 0x4cc   : > { %853 = vst [vmem:[#allocation3 + $0x1b0] sm:$0xf] %v845_v30  ;;  %854 = vst [vmem:[#allocation3 + $0x1b8] sm:$0xf] %v846_v40  ;;  %1667 = vrot.lane.b32.xlu0 %v8271_v56, %s4368_s21  ;;  %v8274_v30 = vld [vmem:[#allocation101_spill] sm:$0xff]  ;;  %v2555_v55 = vmul.f32 %v8263_v27, %v2540_v51  ;;  %v8278_v56 = vrot.slane %v8277_v36, 2 }
 0x4cd   : > { %2571 = vrot.lane.b32.xlu1 %v2562_v62, %s4367_s6  ;;  %vm8273_vm8 = vmmov %vm8272_vm7  ;;  %v2538_v51 = vld [vmem:[#allocation2 + $0x18] sm:$0x3]  ;;  %v8286_v36 = vrot.slane %v6837_v38, 4 }
 0x4ce   : > { %v950_v33 = vpop.permute.xlu0 %949 }
 0x4cf   : > { %v6897_v37 = vpop.permute.xlu1 %2884  ;;  %v6901_v0 = vsel %vm8272_vm7, %v6614_v28, %v950_v33  ;;  %v6905_v5 = vsel %vm8273_vm8, %v950_v33, %v6625_v3  ;;  %v1664_v3 = vsel %vm698_vm13, %v1658_v22, %v1663_v44  ;;  %v8281_v44 = vrot.slane %v6825_v16, 4 }
 0x4d0   : > { %1673 = vrot.lane.b32.xlu0 %v8274_v30, %s4368_s21  ;;  %v2569_v30 = vrot.slane %v2555_v55, 4  ;;  %vm2409_vm7 = vcmask 621568   ;;  %vm8292_vm8 = vcmask 515072  }
 0x4d1   : > { %1669 = vrot.lane.b32.xlu1 %v1658_v22, %s4368_s21  ;;  %v2568_v22 = vsel %vm436_vm2, %v8281_v44, %v2567_v11 }
 0x4d2   : > { %v1009_v40 = vpop.permute.xlu0 %1008 }
 0x4d3   : > { %v6911_v50 = vpop.permute.xlu1 %3304  ;;  %v1014_v61 = vsel %vm8275_vm0, %v6638_v35, %v1009_v40  ;;  %v1015_v28 = vsel %vm8276_vm5, %v1009_v40, %v6652_v18  ;;  %v8282_v40 = vld [vmem:[#allocation103_spill] sm:$0xff]  ;;  %vm8293_vm0 = vmmov %vm8292_vm8  ;;  %vm8296_vm5 = vcmask 613376  }
 0x4d4   : > { %1022 = vst [vmem:[#allocation3 + $0x350] sm:$0x3f] %v1014_v61  ;;  %1023 = vst [vmem:[#allocation3 + $0x358] sm:$0x3f] %v1015_v28  ;;  %1665 = vrot.lane.b32.xlu0 %v8278_v56, %s4368_s21  ;;  %v8283_v61 = vld [vmem:[#allocation79_spill] sm:$0xff]  ;;  %v2553_v28 = vmul.f32 %v8264_v20, %v2538_v51  ;;  %v2570_v56 = vsel %vm436_vm2, %v8286_v36, %v2569_v30  ;;  %v8287_v20 = vld [vmem:[#allocation93_spill] sm:$0xff] }
 0x4d5   : > { %1675 = vrot.lane.b32.xlu1 %v1664_v3, %s4368_s21  ;;  %v2972_v55 = vmul.f32 %v6764_v1, %v8283_v61  ;;  %v8291_v30 = vld [vmem:[#allocation104_spill] sm:$0xff] }
 0x4d6   : > { %v1080_v27 = vpop.permute.xlu0 %1079 }
 0x4d7   : > { %v6922_v33 = vpop.permute.xlu1 %2285  ;;  %v1086_v35 = vsel %vm8279_vm14, %v6671_v15, %v1080_v27  ;;  %v1087_v18 = vsel %vm8280_vm9, %v1080_v27, %v6684_v13  ;;  %v2975_v15 = vmul.f32 %v8283_v61, %v2960_v54  ;;  %v8288_v27 = vrot.slane %v8287_v20, 2  ;;  %vm8297_vm14 = vmmov %vm8296_vm5 }
 0x4d8   : > { %1094 = vst [vmem:[#allocation3 + $0x20] sm:$0xf] %v1086_v35  ;;  %1095 = vst [vmem:[#allocation3 + $0x28] sm:$0xf] %v1087_v18  ;;  %2579 = vrot.lane.b32.xlu0 %v2568_v22, %s4367_s6  ;;  %v2984_v51 = vrot.slane %v2972_v55, 2  ;;  %v2565_v54 = vrot.slane %v2553_v28, 4 }
 0x4d9   : > { %1671 = vrot.lane.b32.xlu1 %v8282_v40, %s4368_s21  ;;  %v2989_v35 = vrot.slane %v2975_v15, 2  ;;  %v8298_v15 = vld [vmem:[#allocation105_spill] sm:$0xff]  ;;  %vm8301_vm9 = vcmask 1031168  }
 0x4da   : > { %v1193_v3 = vpop.permute.xlu0 %1192  ;;  %v2566_v40 = vsel %vm436_vm2, %v2562_v62, %v2565_v54  ;;  %vm8294_vm2 = vcmask 252928  }
 0x4db   : > { %v6938_v13 = vpop.permute.xlu1 %3134  ;;  %v6942_v16 = vsel %vm8284_vm12, %v6699_v53, %v1193_v3  ;;  %v6946_v11 = vsel %vm8285_vm3, %v1193_v3, %v6710_v52  ;;  %v2990_v61 = vsel %vm698_vm13, %v2984_v51, %v2989_v35  ;;  %vm8295_vm13 = vmmov %vm8294_vm2  ;;  %v8299_v3 = vld [vmem:[#allocation96_spill] sm:$0xff]  ;;  %vm8303_vm3 = vcmask 605184  }
 0x4dc   : > { %2993 = vrot.lane.b32.xlu0 %v8288_v27, %s4369_s24  ;;  %v8300_v36 = vrot.slane %v8299_v3, 2  ;;  %vm8302_vm12 = vmmov %vm8301_vm9 }
 0x4dd   : > { %2581 = vrot.lane.b32.xlu1 %v2570_v56, %s4367_s6 }
 0x4de   : > { %v1254_v53 = vpop.permute.xlu0 %1253 }
 0x4df   : > { %v6955_v18 = vpop.permute.xlu1 %2520  ;;  %v1260_v52 = vsel %vm8289_vm15, %v6721_v23, %v1254_v53  ;;  %v1261_v38 = vsel %vm8290_vm11, %v1254_v53, %v6731_v9  ;;  %vm8304_vm15 = vmmov %vm8303_vm3  ;;  %vm8305_vm11 = vcmask 998400  }
 0x4e0   : > { %1268 = vst [vmem:[#allocation3 + $0x1c0] sm:$0x3f] %v1260_v52  ;;  %1269 = vst [vmem:[#allocation3 + $0x1c8] sm:$0x3f] %v1261_v38  ;;  %2999 = vrot.lane.b32.xlu0 %v8291_v30, %s4369_s24 }
 0x4e1   : > { %2995 = vrot.lane.b32.xlu1 %v2984_v51, %s4369_s24  ;;  %v2007_v51 = vld [vmem:[#allocation2 + $0x28] sm:$0x3] }
 0x4e2   : > { %v1315_v44 = vpop.permute.xlu0 %1314 }
 0x4e3   : > { %v2406_v22 = vpop.permute.xlu1 %2405  ;;  %v1321_v23 = vsel %vm8292_vm8, %v6744_v60, %v1315_v44  ;;  %v1322_v9 = vsel %vm8293_vm0, %v1315_v44, %v6757_v29  ;;  %vm8306_vm8 = vmmov %vm8305_vm11  ;;  %v3448_v44 = vld [vmem:[#allocation3 + $0x28] sm:$0xff] }
 0x4e4   : > { %v2412_v55 = vsel %vm2409_vm7, %v6806_v2, %v2406_v22  ;;  %v2413_v28 = vsel %vm2409_vm7, %v2406_v22, %v6682_v17  ;;  %1329 = vst [vmem:[#allocation3 + $0x250] sm:$0xf] %v1321_v23  ;;  %1330 = vst [vmem:[#allocation3 + $0x258] sm:$0xf] %v1322_v9  ;;  %2577 = vrot.lane.b32.xlu0 %v2566_v40, %s4367_s6 }
 0x4e5   : > { %2420 = vst [vmem:[#allocation3 + $0x200] sm:$0xf] %v2412_v55  ;;  %2421 = vst [vmem:[#allocation3 + $0x208] sm:$0xf] %v2413_v28  ;;  %3001 = vrot.lane.b32.xlu1 %v2990_v61, %s4369_s24  ;;  %v3447_v55 = vld [vmem:[#allocation3 + $0x20] sm:$0xff] }
 0x4e6   : > { %v1428_v62 = vpop.permute.xlu0 %1427 }
 0x4e7   : > { %v2826_v21 = vpop.permute.xlu1 %2825  ;;  %v6980_v60 = vsel %vm8294_vm2, %v6770_v32, %v1428_v62  ;;  %v6984_v29 = vsel %vm8295_vm13, %v1428_v62, %v6782_v10  ;;  %vm8309_vm2 = vcmask 900096  }
 0x4e8   : > { %v2832_v17 = vsel %vm8296_vm5, %v6815_v43, %v2826_v21  ;;  %v2833_v2 = vsel %vm8297_vm14, %v2826_v21, %v6697_v19  ;;  %2997 = vrot.lane.b32.xlu0 %v8298_v15, %s4369_s24  ;;  %vm8310_vm13 = vmmov %vm8309_vm2  ;;  %v3454_v21 = vld [vmem:[#allocation3 + $0x58] sm:$0xff]  ;;  %vm8313_vm5 = vcmask 883712  }
 0x4e9   : > { %2840 = vst [vmem:[#allocation3 + $0x210] sm:$0x3f] %v2832_v17  ;;  %2841 = vst [vmem:[#allocation3 + $0x218] sm:$0x3f] %v2833_v2  ;;  %2991 = vrot.lane.b32.xlu1 %v8300_v36, %s4369_s24  ;;  %v2005_v36 = vld [vmem:[#allocation2 + $0x18] sm:$0x3] }
 0x4ea   : > { %v1500_v32 = vpop.permute.xlu0 %1499  ;;  %vm8314_vm14 = vmmov %vm8313_vm5 }
 0x4eb   : > { %v3246_v56 = vpop.permute.xlu1 %3245  ;;  %v1506_v10 = vsel %vm8301_vm9, %v6792_v34, %v1500_v32  ;;  %v1507_v43 = vsel %vm8302_vm12, %v1500_v32, %v6799_v39  ;;  %v2006_v39 = vld [vmem:[#allocation2 + $0x20] sm:$0x3]  ;;  %v3518_v17 = vld [vmem:[#allocation3 + $0x258] sm:$0xff]  ;;  %v3946_v32 = vpack.c.bf16 %v3454_v21, %v6522_v41  ;;  %vm8315_vm9 = vcmask 482304  }
 0x4ec   : > { %v7001_v19 = vsel %vm8303_vm3, %v6829_v45, %v3246_v56  ;;  %v3253_v20 = vsel %vm8304_vm15, %v3246_v56, %v6708_v42  ;;  %1514 = vst [vmem:[#allocation3 + $0x30] sm:$0x3f] %v1506_v10  ;;  %1515 = vst [vmem:[#allocation3 + $0x38] sm:$0x3f] %v1507_v43  ;;  %2018 = vrot.lane.b32.xlu0 %v6818_v12, %s4370_s27  ;;  %v3508_v54 = vld [vmem:[#allocation3 + $0x208] sm:$0xff]  ;;  %v3507_v52 = vld [vmem:[#allocation3 + $0x200] sm:$0xff] }
 0x4ed   : > { %2016 = vrot.lane.b32.xlu1 %v6808_v24, %s4370_s27  ;;  %vm8316_vm12 = vmmov %vm8315_vm9  ;;  %v3516_v43 = vld [vmem:[#allocation3 + $0x248] sm:$0xff]  ;;  %vm8319_vm3 = vcmask 834560   ;;  %vm8320_vm15 = vcmask 867328  }
 0x4ee   : > { %v2652_v34 = vpop.permute.xlu0 %2651  ;;  %v4010_v41 = vpack.c.bf16 %v3518_v17, %v3516_v43  ;;  %v8330_v17 = vld [vmem:[#allocation98_spill] sm:$0xff] }
 0x4ef   : > { %v3072_v27 = vpop.permute.xlu1 %3071  ;;  %v2658_v45 = vsel %vm2655_vm1, %v6719_v8, %v2652_v34  ;;  %v2659_v42 = vsel %vm2655_vm1, %v2652_v34, %v6842_v26  ;;  %v3514_v26 = vld [vmem:[#allocation3 + $0x238] sm:$0xff]  ;;  %vm8307_vm1 = vcmask 506880   ;;  %v8317_v34 = vld [vmem:[#allocation80_spill] sm:$0xff] }
 0x4f0   : > { %v3078_v35 = vsel %vm8305_vm11, %v6851_v31, %v3072_v27  ;;  %v3079_v12 = vsel %vm8306_vm8, %v3072_v27, %v6729_v46  ;;  %v3510_v53 = vld [vmem:[#allocation3 + $0x218] sm:$0xff]  ;;  %v3509_v24 = vld [vmem:[#allocation3 + $0x210] sm:$0xff]  ;;  %2666 = vst [vmem:[#allocation3 + $0x70] sm:$0xf] %v2658_v45  ;;  %2667 = vst [vmem:[#allocation3 + $0x78] sm:$0xf] %v2659_v42  ;;  %2024 = vrot.lane.b32.xlu0 %v2007_v51, %s4370_s27  ;;  %v4006_v22 = vpack.c.bf16 %v3514_v26, %v3253_v20 }
 0x4f1   : > { %3086 = vst [vmem:[#allocation3 + $0x80] sm:$0x3f] %v3078_v35  ;;  %3087 = vst [vmem:[#allocation3 + $0x88] sm:$0x3f] %v3079_v12  ;;  %2022 = vrot.lane.b32.xlu1 %v2006_v39, %s4370_s27  ;;  %v4002_v8 = vpack.c.bf16 %v3510_v53, %v3508_v54  ;;  %v4004_v38 = vpack.c.bf16 %v3509_v24, %v3507_v52  ;;  %v3515_v51 = vld [vmem:[#allocation3 + $0x240] sm:$0xff]  ;;  %v3456_v39 = vld [vmem:[#allocation3 + $0x68] sm:$0xff] }
 0x4f2   : > { %v1735_v30 = vpop.permute.xlu0 %1734  ;;  %vm8308_vm0 = vmmov %vm8307_vm1  ;;  %v3388_v45 = vld [vmem:[#allocation2 + $0x20] sm:$0x3]  ;;  %vm8322_vm8 = vcmask 474112  }
 0x4f3   : > { %4003 = vmatprep.subr.bf16.mxu0 %v4002_v8  ;;  %v1561_v31 = vpop.permute.xlu1 %1560  ;;  %v1741_v46 = vsel %vm8307_vm1, %v6742_v6, %v1735_v30  ;;  %v1742_v40 = vsel %vm8308_vm0, %v1735_v30, %v6872_v48  ;;  %v3450_v9 = vld [vmem:[#allocation3 + $0x38] sm:$0xff]  ;;  %v3449_v28 = vld [vmem:[#allocation3 + $0x30] sm:$0xff]  ;;  %v8311_v6 = vrot.slane %v6223_v7, 6  ;;  %v8312_v48 = vrot.slane %v6582_v4, 6  ;;  %vm8321_vm11 = vmmov %vm8320_vm15 }
 0x4f4   : > { %v1567_v61 = vsel %vm8309_vm2, %v6884_v47, %v1561_v31  ;;  %v1568_v23 = vsel %vm8310_vm13, %v1561_v31, %v6755_v49  ;;  %4005 = vmatpush1.bf16.msra.mxu0 %v4004_v38  ;;  %1749 = vst [vmem:[#allocation3 + $0x260] sm:$0x3f] %v1741_v46  ;;  %1750 = vst [vmem:[#allocation3 + $0x268] sm:$0x3f] %v1742_v40  ;;  %v3942_v47 = vpack.c.bf16 %v3450_v9, %v3448_v44  ;;  %v3513_v49 = vld [vmem:[#allocation3 + $0x230] sm:$0xff]  ;;  %v3455_v31 = vld [vmem:[#allocation3 + $0x60] sm:$0xff] }
 0x4f5   : > { %1575 = vst [vmem:[#allocation3 + $0xc0] sm:$0xf] %v1567_v61  ;;  %1576 = vst [vmem:[#allocation3 + $0xc8] sm:$0xf] %v1568_v23  ;;  %2401 = vrot.lane.b32.xlu0 %v8311_v6, %s4363_s5  ;;  %2399 = vrot.lane.b32.xlu1 %v8312_v48, %s4363_s5  ;;  %v3944_v62 = vpack.c.bf16 %v3449_v28, %v3447_v55  ;;  %v4008_v3 = vpack.c.bf16 %v3513_v49, %v7001_v19  ;;  %v3517_v19 = vld [vmem:[#allocation3 + $0x250] sm:$0xff]  ;;  %v3526_v40 = vld [vmem:[#allocation3 + $0x298] sm:$0xff] }
 0x4f6   : > { %4007 = vmatprep.subr.bf16.mxu0 %v4006_v22  ;;  %v2284_v2 = vpop.permute.xlu0 %2283  ;;  %3943 = vmatprep.subr.bf16.mxu1 %v3942_v47  ;;  %v4012_v12 = vpack.c.bf16 %v3517_v19, %v3515_v51  ;;  %vm8323_vm1 = vmmov %vm8322_vm8  ;;  %v8325_v44 = vld [vmem:[#allocation30_spill] sm:$0xff]  ;;  %v8326_v22 = vld [vmem:[#allocation81_spill] sm:$0xff]  ;;  %v3400_v23 = vmul.f32 %v6764_v1, %v8317_v34  ;;  %vm8331_vm0 = vcmask 375808  }
 0x4f7   : > { %v2887_v15 = vpop.permute.xlu1 %2886  ;;  %v7037_v7 = vsel %vm8313_vm5, %v6790_v58, %v2284_v2  ;;  %v7041_v4 = vsel %vm8314_vm14, %v2284_v2, %v6922_v33  ;;  %3945 = vmatpush1.bf16.msra.mxu1 %v3944_v62  ;;  %v3458_v20 = vld [vmem:[#allocation3 + $0x78] sm:$0xff]  ;;  %v3453_v58 = vld [vmem:[#allocation3 + $0x50] sm:$0xff]  ;;  %v8318_v33 = vld [vmem:[#allocation60_spill] sm:$0xff]  ;;  %vm8340_vm5 = vcmask 744448  }
 0x4f8   : > { %v2893_v56 = vsel %vm8315_vm9, %v6897_v37, %v2887_v15  ;;  %v2894_v10 = vsel %vm8316_vm12, %v2887_v15, %v6768_v14  ;;  %4009 = vmatpush1.bf16.msra.mxu0 %v4008_v3  ;;  %v3394_v27 = vsel %vm8319_vm3, %v8318_v33, %v8317_v34  ;;  %3947 = vmatprep.subr.bf16.mxu1 %v3946_v32  ;;  %v4219_v14 = vld [vmem:[#allocation3 + $0x40] sm:$0xff]  ;;  %v3457_v52 = vld [vmem:[#allocation3 + $0x70] sm:$0xff]  ;;  %v3460_v30 = vld [vmem:[#allocation3 + $0x88] sm:$0xff]  ;;  %vm3188_vm12 = vcmask 736256  }
 0x4f9   : > { %2901 = vst [vmem:[#allocation3 + $0x2a0] sm:$0xf] %v2893_v56  ;;  %2902 = vst [vmem:[#allocation3 + $0x2a8] sm:$0xf] %v2894_v10  ;;  %2020 = vrot.lane.b32.xlu0 %v2005_v36, %s4370_s27  ;;  %2014 = vrot.lane.b32.xlu1 %v6853_v25, %s4370_s27  ;;  %v3948_v37 = vpack.c.bf16 %v3453_v58, %v4219_v14  ;;  %v3399_v54 = vmul.f32 %v6579_v63, %v3394_v27  ;;  %v3436_v61 = vld [vmem:[%s7274_s7 + $0x8] sm:$0xff]  ;;  %v8328_v6 = vld [vmem:[#allocation82_spill] sm:$0xff] }
 0x4fa   : > { %4011 = vmatprep.subr.bf16.mxu0 %v4010_v41  ;;  %v3133_v42 = vpop.permute.xlu0 %3132  ;;  %v3950_v53 = vpack.c.bf16 %v3458_v20, %v3456_v39  ;;  %v3952_v46 = vpack.c.bf16 %v3457_v52, %v3455_v31  ;;  %v3402_v9 = vmul.f32 %v3394_v27, %v3388_v45  ;;  %v3954_v48 = vpack.c.bf16 %v8328_v6, %v3460_v30  ;;  %v3459_v47 = vld [vmem:[#allocation3 + $0x80] sm:$0xff]  ;;  %v8329_v62 = vld [vmem:[#allocation110_spill] sm:$0xff]  ;;  %v8332_v1 = vld [vmem:[#allocation39_spill] sm:$0xff]  ;;  %s8346_s27 = sld [smem:[#allocation193_spill]] }
 0x4fb   : > { %v3307_v35 = vpop.permute.xlu1 %3306  ;;  %v3139_v24 = vsel %vm8320_vm15, %v6797_v59, %v3133_v42  ;;  %v3140_v25 = vsel %vm8321_vm11, %v3133_v42, %v6938_v13  ;;  %3949 = vmatpush1.bf16.msra.mxu1 %v3948_v37  ;;  %v3520_v63 = vld [vmem:[#allocation3 + $0x268] sm:$0xff]  ;;  %v3519_v26 = vld [vmem:[#allocation3 + $0x260] sm:$0xff]  ;;  %v8324_v59 = vld [vmem:[#allocation87_spill] sm:$0xff]  ;;  %3655 = vmatprep.mubr.f32.mxu1 %v3436_v61  ;;  %vm1851_vm15 = vcmask 244736  }
 0x4fc   : > { %v3313_v8 = vsel %vm8322_vm8, %v6911_v50, %v3307_v35  ;;  %v3314_v38 = vsel %vm8323_vm1, %v3307_v35, %v6780_v57  ;;  %3147 = vst [vmem:[#allocation3 + $0x110] sm:$0xf] %v3139_v24  ;;  %3148 = vst [vmem:[#allocation3 + $0x118] sm:$0xf] %v3140_v25  ;;  %4013 = vmatpush1.bf16.msra.mxu0 %v4012_v12  ;;  %v4014_v13 = vpack.c.bf16 %v8324_v59, %v3520_v63  ;;  %v3524_v3 = vld [vmem:[#allocation3 + $0x288] sm:$0xff]  ;;  %v3525_v36 = vld [vmem:[#allocation3 + $0x290] sm:$0xff] }
 0x4fd   : > { %3321 = vst [vmem:[#allocation3 + $0x2b0] sm:$0x3f] %v3313_v8  ;;  %3322 = vst [vmem:[#allocation3 + $0x2b8] sm:$0x3f] %v3314_v38  ;;  %3412 = vrot.lane.b32.xlu0 %v3399_v54, %s4371_s16  ;;  %v4016_v50 = vpack.c.bf16 %v8325_v44, %v3519_v26  ;;  %v8327_v57 = vrot.slane %v8326_v22, 6  ;;  %3951 = vmatprep.subr.bf16.mxu1 %v3950_v53  ;;  %v4018_v56 = vpack.c.bf16 %v3526_v40, %v3524_v3  ;;  %v3466_v10 = vld [vmem:[#allocation3 + $0xb8] sm:$0xff] }
 0x4fe   : > { %v2519_v55 = vpop.permute.xlu0 %2518  ;;  %4015 = vmatprep.subr.bf16.mxu0 %v4014_v13  ;;  %vm8333_vm2 = vmmov %vm8331_vm0  ;;  %v3389_v32 = vld [vmem:[#allocation2 + $0x28] sm:$0x3]  ;;  %v3523_v19 = vld [vmem:[#allocation3 + $0x280] sm:$0xff]  ;;  %vm2583_vm8 = vcmask 228352   ;;  %vm1677_vm1 = vcmask 637952  }
 0x4ff   : > { %2397 = vrot.lane.b32.xlu1 %v8327_v57, %s4363_s5  ;;  %v1796_v28 = vpop.permute.xlu1 %1795  ;;  %v7076_v49 = vsel %vm2522_vm10, %v8329_v62, %v2519_v55  ;;  %v7080_v21 = vsel %vm2522_vm10, %v2519_v55, %v6955_v18  ;;  %3953 = vmatpush1.bf16.msra.mxu1 %v3952_v46  ;;  %v8334_v18 = vld [vmem:[#allocation46_spill] sm:$0xff]  ;;  %v4020_v14 = vpack.c.bf16 %v3525_v36, %v3523_v19  ;;  %v3464_v37 = vld [vmem:[#allocation3 + $0xa8] sm:$0xff]  ;;  %v8335_v45 = vld [vmem:[#allocation84_spill] sm:$0xff]  ;;  %vm8336_vm10 = vcmask 752640   ;;  %s406_s5 = scalar_lea.vmem [#allocation4], %s3915_s0 }
 0x500   : > { %v1802_v2 = vsel %vm8331_vm0, %v8330_v17, %v1796_v28  ;;  %v1803_v15 = vsel %vm8333_vm2, %v1796_v28, %v8332_v1  ;;  %4017 = vmatpush1.bf16.msra.mxu0 %v4016_v50  ;;  %3955 = vmatprep.subr.bf16.mxu1 %v3954_v48  ;;  %v3956_v43 = vpack.c.bf16 %v8334_v18, %v3459_v47  ;;  %v4220_v20 = vld [vmem:[#allocation2] sm:$0xff]  ;;  %v3528_v51 = vld [vmem:[#allocation3 + $0x2a8] sm:$0xff]  ;;  %v8337_v35 = vld [vmem:[#allocation71_spill] sm:$0xff]  ;;  %vm3003_vm0 = vcmask 220160   ;;  %s3849_s10 = sshll.u32 %s406_s5, 4  ;;  %s7216_s10 = int_to_ptr.vmem [resolvable:$true] %s3849_s10 }
 0x501   : > { %1810 = vst [vmem:[#allocation3 + $0x2f0] sm:$0xf] %v1802_v2  ;;  %1811 = vst [vmem:[#allocation3 + $0x2f8] sm:$0xf] %v1803_v15  ;;  %3418 = vrot.lane.b32.xlu0 %v3402_v9, %s4371_s16  ;;  %v3398_v41 = vmul.f32 %v4220_v20, %v8318_v33  ;;  %4019 = vmatprep.subr.bf16.mxu0 %v4018_v56  ;;  %v3465_v39 = vld [vmem:[#allocation3 + $0xb0] sm:$0xff]  ;;  %v3403_v54 = vmul.f32 %v8317_v34, %v3389_v32  ;;  %v3527_v24 = vld [vmem:[#allocation3 + $0x2a0] sm:$0xff]  ;;  %p4228_p0 = scmp.lt.s32.totalorder %s7216_s10, %s4226_s1 }
 0x502   : > { %v2337_v58 = vpop.permute.xlu0 %2336  ;;  %vm8338_vm13 = vmmov %vm8336_vm10  ;;  %v3958_v53 = vpack.c.bf16 %v3466_v10, %v3464_v37  ;;  %v3387_v8 = vld [vmem:[#allocation2 + $0x18] sm:$0x3]  ;;  %v3463_v63 = vld [vmem:[#allocation3 + $0xa0] sm:$0xff]  ;;  %vm2026_vm2 = vcmask 629760   ;;  %s4221_s29 = scalar_lea.vmem %s7216_s10, 512 }
 0x503   : > { %3414 = vrot.lane.b32.xlu1 %v3400_v23, %s4371_s16  ;;  %v2345_v27 = vpop.permute.xlu1 %2344  ;;  %v2349_v42 = vsel %vm8336_vm10, %v2337_v58, %v8335_v45  ;;  %3957 = vmatpush1.bf16.msra.mxu1 %v3956_v43  ;;  %v3468_v26 = vld [vmem:[#allocation3 + $0xc8] sm:$0xff]  ;;  %v3960_v30 = vpack.c.bf16 %v3465_v39, %v3463_v63  ;;  %v3567_v59 = vld [vmem:[%s7275_s8] sm:$0xff]  ;;  %v3470_v44 = vld [vmem:[#allocation3 + $0xd8] sm:$0xff]  ;;  %v3401_v22 = vmul.f32 %v8318_v33, %v3387_v8  ;;  %p4222_p11 = scmp.ne.s32.totalorder %s7216_s10, %s4221_s29  ;;  %p4229_p1 = scmp.lt.s32.totalorder %s4227_s4, %s4221_s29 }
 0x504   : > { %v2352_v12 = vsel %vm8338_vm13, %v2345_v27, %v8337_v35  ;;  %v3530_v52 = vld [vmem:[#allocation3 + $0x2b8] sm:$0xff]  ;;  %v3529_v25 = vld [vmem:[#allocation3 + $0x2b0] sm:$0xff]  ;;  %2357 = vst [vmem:[#allocation3 + $0x160] sm:$0xf0] %v2349_v42  ;;  %4021 = vmatpush1.bf16.msra.mxu0 %v4020_v14  ;;  %3959 = vmatprep.subr.bf16.mxu1 %v3958_v53  ;;  %v3467_v50 = vld [vmem:[#allocation3 + $0xc0] sm:$0xff]  ;;  %v3962_v61 = vpack.c.bf16 %v3470_v44, %v3468_v26 }
 0x505   : > { %2360 = vst [vmem:[#allocation3 + $0x178] sm:$0x3f] %v2352_v12  ;;  %3410 = vrot.lane.b32.xlu0 %v3398_v41, %s4371_s16  ;;  %v4022_v38 = vpack.c.bf16 %v3530_v52, %v3528_v51  ;;  %v4024_v34 = vpack.c.bf16 %v3529_v25, %v3527_v24  ;;  %v8339_v57 = vld [vmem:[#allocation91_spill] sm:$0xff]  ;;  %vm8341_vm14 = vmmov %vm8336_vm10  ;;  %v3438_v9 = vld [vmem:[%s7274_s7 + $0x18] sm:$0xff]  ;;  %vm3422_vm10 = vcmask 211968   ;;  %p4223_p12 = pnand %p4222_p11, %p4478_p5  ;;  %p4230_p2 = por %p4229_p1, %p4228_p0 }
 0x506   : > { %v2757_v13 = vpop.permute.xlu0 %2756  ;;  %v3534_v23 = vld [vmem:[#allocation3 + $0x2d8] sm:$0xff]  ;;  %v3469_v28 = vld [vmem:[#allocation3 + $0xd0] sm:$0xff]  ;;  %vm8342_vm9 = vmmov %vm8321_vm11  ;;  %vm2164_vm11 = vcmask 236544  }
 0x507   : > { %3420 = vrot.lane.b32.xlu1 %v3403_v54, %s4371_s16  ;;  %4023 = vmatprep.subr.bf16.mxu0 %v4022_v38  ;;  %v2343_v31 = vpop.permute.xlu1 %2342  ;;  %v2769_v46 = vsel %vm8340_vm5, %v2757_v13, %v8339_v57  ;;  %v4026_v55 = vpack.c.bf16 %v3534_v23, %v6905_v5  ;;  %v3964_v6 = vpack.c.bf16 %v3469_v28, %v3467_v50  ;;  %v3533_v48 = vld [vmem:[#allocation3 + $0x2d0] sm:$0xff]  ;;  %v3474_v47 = vld [vmem:[#allocation3 + $0xf8] sm:$0xff]  ;;  %v3536_v5 = vld [vmem:[#allocation3 + $0x2e8] sm:$0xff]  ;;  %p4224_p13 = pneg %p4223_p12 }
 0x508   : > { %v2351_v40 = vsel %vm8341_vm14, %v2343_v31, %v2345_v27  ;;  %3961 = vmatpush1.bf16.msra.mxu1 %v3960_v30  ;;  %2777 = vst [vmem:[#allocation3 + $0x170] sm:$0xc0] %v2769_v46  ;;  %4025 = vmatpush1.bf16.msra.mxu0 %v4024_v34  ;;  %v3538_v33 = vld [vmem:[#allocation3 + $0x2f8] sm:$0xff]  ;;  %v4028_v2 = vpack.c.bf16 %v3533_v48, %v6901_v0  ;;  %v3537_v32 = vld [vmem:[#allocation3 + $0x2f0] sm:$0xff]  ;;  %v3535_v18 = vld [vmem:[#allocation3 + $0x2e0] sm:$0xff] }
 0x509   : > { %2359 = vst [vmem:[#allocation3 + $0x170] sm:$0x3f] %v2351_v40  ;;  %3571 = vperm.xlu0 %4200, %v3567_v59   ;;  %3963 = vmatprep.subr.bf16.mxu1 %v3962_v61  ;;  %v3568_v1 = vld [vmem:[%s7275_s8 + $0x8] sm:$0xff]  ;;  %v3966_v15 = vpack.c.bf16 %v3474_v47, %v7041_v4  ;;  %v4030_v36 = vpack.c.bf16 %v3538_v33, %v3536_v5  ;;  %v3473_v10 = vld [vmem:[#allocation3 + $0xf0] sm:$0xff]  ;;  %v3476_v43 = vld [vmem:[#allocation3 + $0x108] sm:$0xff]  ;;  %p4231_p3 = pnand %p4230_p2, %p4224_p13 }
 0x50a   : > { %4027 = vmatprep.subr.bf16.mxu0 %v4026_v55  ;;  %v3370_v62 = vpop.permute.xlu0 %3369  ;;  %3929 = vmatprep.mubr.msk.f32.mxu0 %vm8342_vm9, %v3438_v9  ;;  %v3478_v56 = vld [vmem:[#allocation3 + $0x118] sm:$0xff]  ;;  %v3968_v0 = vpack.c.bf16 %v3473_v10, %v7037_v7  ;;  %v4032_v20 = vpack.c.bf16 %v3537_v32, %v3535_v18  ;;  %v3540_v58 = vld [vmem:[#allocation3 + $0x308] sm:$0xff]  ;;  %v3477_v27 = vld [vmem:[#allocation3 + $0x110] sm:$0xff] }
 0x50b   : > { %3416 = vrot.lane.b32.xlu1 %v3401_v22, %s4371_s16  ;;  %v3368_v17 = vpop.permute.xlu1 %3367  ;;  %v3970_v41 = vpack.c.bf16 %v3478_v56, %v3476_v43  ;;  %v4034_v37 = vpack.c.bf16 %v7080_v21, %v3540_v58  ;;  %v3475_v51 = vld [vmem:[#allocation3 + $0x100] sm:$0xff]  ;;  %v3546_v39 = vld [vmem:[#allocation3 + $0x338] sm:$0xff]  ;;  %v3480_v45 = vld [vmem:[#allocation3 + $0x128] sm:$0xff] }
 0x50c   : > { %v3375_v3 = vsel %vm3371_vm4, %v3368_v17, %v3370_v62  ;;  %3965 = vmatpush1.bf16.msra.mxu1 %v3964_v6  ;;  %4029 = vmatpush1.bf16.msra.mxu0 %v4028_v2  ;;  %v3972_v7 = vpack.c.bf16 %v3477_v27, %v3475_v51  ;;  %v3539_v54 = vld [vmem:[#allocation3 + $0x300] sm:$0xff]  ;;  %v3974_v53 = vpack.c.bf16 %v6946_v11, %v3480_v45  ;;  %v3544_v52 = vld [vmem:[#allocation3 + $0x328] sm:$0xff]  ;;  %v3545_v25 = vld [vmem:[#allocation3 + $0x330] sm:$0xff] }
 0x50d   : > { %3383 = vst [vmem:[#allocation3 + $0x348] sm:$0xf] %v3375_v3  ;;  %3967 = vmatprep.subr.bf16.mxu1 %v3966_v15  ;;  %4031 = vmatprep.subr.bf16.mxu0 %v4030_v36  ;;  %v4036_v12 = vpack.c.bf16 %v7076_v49, %v3539_v54  ;;  %v4038_v21 = vpack.c.bf16 %v3546_v39, %v3544_v52  ;;  %v3486_v8 = vld [vmem:[#allocation3 + $0x158] sm:$0xff]  ;;  %v3479_v38 = vld [vmem:[#allocation3 + $0x120] sm:$0xff]  ;;  %v3484_v30 = vld [vmem:[#allocation3 + $0x148] sm:$0xff] }
 0x50e   : > { %v2765_v4 = vpop.permute.xlu0 %2764  ;;  %v3976_v34 = vpack.c.bf16 %v6942_v16, %v3479_v38  ;;  %v3543_v26 = vld [vmem:[#allocation3 + $0x320] sm:$0xff]  ;;  %v3978_v13 = vpack.c.bf16 %v3486_v8, %v3484_v30  ;;  %v3550_v31 = vld [vmem:[#allocation3 + $0x358] sm:$0xff]  ;;  %v3485_v44 = vld [vmem:[#allocation3 + $0x150] sm:$0xff] }
 0x50f   : > { %3576 = vperm.xlu1 %4201, %v3568_v1   ;;  %v3366_v19 = vpop.permute.xlu1 %3365  ;;  %v4040_v11 = vpack.c.bf16 %v3545_v25, %v3543_v26  ;;  %v3549_v40 = vld [vmem:[#allocation3 + $0x350] sm:$0xff]  ;;  %v3490_v61 = vld [vmem:[#allocation3 + $0x178] sm:$0xff]  ;;  %v3483_v16 = vld [vmem:[#allocation3 + $0x140] sm:$0xff] }
 0x510   : > { %v3374_v14 = vsel %vm3371_vm4, %v3366_v19, %v3368_v17  ;;  %3969 = vmatpush1.bf16.msra.mxu1 %v3968_v0  ;;  %4033 = vmatpush1.bf16.msra.mxu0 %v4032_v20  ;;  %vm8343_vm4 = vmmov %vm8340_vm5  ;;  %v3980_v9 = vpack.c.bf16 %v3485_v44, %v3483_v16  ;;  %v3488_v55 = vld [vmem:[#allocation3 + $0x168] sm:$0xff]  ;;  %v3489_v48 = vld [vmem:[#allocation3 + $0x170] sm:$0xff] }
 0x511   : > { %3382 = vst [vmem:[#allocation3 + $0x340] sm:$0xf] %v3374_v14  ;;  %3971 = vmatprep.subr.bf16.mxu1 %v3970_v41  ;;  %4035 = vmatprep.subr.bf16.mxu0 %v4034_v37  ;;  %vm8344_vm3 = vmmov %vm8343_vm4  ;;  %v3982_v6 = vpack.c.bf16 %v3490_v61, %v3488_v55  ;;  %v3487_v62 = vld [vmem:[#allocation3 + $0x160] sm:$0xff] }
 0x512   : > { %v3179_v42 = vpop.permute.xlu0 %3178  ;;  %v3984_v17 = vpack.c.bf16 %v3489_v48, %v3487_v62  ;;  %vm8345_vm5 = vmmov %vm8342_vm9 }
 0x513   : > { %v2767_v35 = vpop.permute.xlu1 %2766 }
 0x514   : > { %v2772_v24 = vsel %vm8343_vm4, %v2765_v4, %v2767_v35  ;;  %3973 = vmatpush1.bf16.msra.mxu1 %v3972_v7  ;;  %4037 = vmatpush1.bf16.msra.mxu0 %v4036_v12  ;;  %v3548_v63 = vld [vmem:[#allocation3 + $0x348] sm:$0xff]  ;;  %v3497_v7 = vld [vmem:[#allocation3 + $0x1b0] sm:$0xff] }
 0x515   : > { %3975 = vmatprep.subr.bf16.mxu1 %v3974_v53  ;;  %4039 = vmatprep.subr.bf16.mxu0 %v4038_v21  ;;  %v4042_v57 = vpack.c.bf16 %v3550_v31, %v3548_v63 }
 0x516   : > { %v2763_v49 = vpop.permute.xlu0 %2762 }
 0x517   : > { %v3181_v59 = vpop.permute.xlu1 %3180  ;;  %v2771_v50 = vsel %vm8344_vm3, %v2763_v49, %v2765_v4 }
 0x518   : > { %v3190_v22 = vsel %vm3188_vm12, %v3179_v42, %v3181_v59  ;;  %3977 = vmatpush1.bf16.msra.mxu1 %v3976_v34  ;;  %v3547_v46 = vld [vmem:[#allocation3 + $0x340] sm:$0xff]  ;;  %4041 = vmatpush1.bf16.msra.mxu0 %v4040_v11 }
 0x519   : > { %3979 = vmatprep.subr.bf16.mxu1 %v3978_v13  ;;  %v4044_v23 = vpack.c.bf16 %v3549_v40, %v3547_v46  ;;  %4043 = vmatprep.subr.bf16.mxu0 %v4042_v57  ;;  %v3986_v15 = vpack.c.bf16 %v3190_v22, %v2772_v24 }
 0x51a   : > { %v1842_v28 = vpop.permute.xlu0 %1841 }
 0x51b   : > { %v3177_v33 = vpop.permute.xlu1 %3176 }
 0x51c   : > { %v3189_v47 = vsel %vm3188_vm12, %v3177_v33, %v3179_v42  ;;  %3981 = vmatpush1.bf16.msra.mxu1 %v3980_v9  ;;  %4045 = vmatpush1.bf16.msra.mxu0 %v4044_v23 }
 0x51d   : > { %3983 = vmatprep.subr.bf16.mxu1 %v3982_v6  ;;  %v3988_v56 = vpack.c.bf16 %v3189_v47, %v2771_v50 }
 0x51e   : > { %v1840_v2 = vpop.permute.xlu0 %1839 }
 0x51f   : > { %v1844_v1 = vpop.permute.xlu1 %1843  ;;  %v1852_v5 = vsel %vm1851_vm15, %v1840_v2, %v1842_v28 }
 0x520   : > { %v1853_v3 = vsel %vm1851_vm15, %v1842_v28, %v1844_v1  ;;  %3985 = vmatpush1.bf16.msra.mxu1 %v3984_v17  ;;  %v4048_v32 = vpack.c.bf16 %v1852_v5, %v6980_v60  ;;  %v3498_v60 = vld [vmem:[#allocation3 + $0x1b8] sm:$0xff] }
 0x521   : > { %3987 = vmatprep.subr.bf16.mxu1 %v3986_v15  ;;  %v4046_v36 = vpack.c.bf16 %v1853_v3, %v6984_v29 }
 0x522   : > { %v3187_v10 = vpop.permute.xlu0 %3186 }
 0x523   : > { %v3185_v0 = vpop.permute.xlu1 %3184  ;;  %4047 = vmatprep.subr.bf16.mxu0 %v4046_v36 }
 0x524   : > { %v3192_v18 = vsel %vm3188_vm12, %v3185_v0, %v3187_v10  ;;  %3989 = vmatpush1.bf16.msra.mxu1 %v3988_v56  ;;  %4049 = vmatpush1.bf16.msra.mxu0 %v4048_v32 }
 0x525   : > { %3200 = vst [vmem:[#allocation3 + $0x1a8] sm:$0x3] %v3192_v18 }
 0x526   : > { %v1848_v43 = vpop.permute.xlu0 %1847 }
 0x527   : > { %v3183_v4 = vpop.permute.xlu1 %3182 }
 0x528   : > { %v3191_v19 = vsel %vm3188_vm12, %v3183_v4, %v3185_v0 }
 0x529   : > { %3199 = vst [vmem:[#allocation3 + $0x1a0] sm:$0x3] %v3191_v19 }
 0x52a   : > { %v2155_v20 = vpop.permute.xlu0 %2154 }
 0x52b   : > { %v1850_v41 = vpop.permute.xlu1 %1849 }
 0x52c   : > { %v1855_v29 = vsel %vm1851_vm15, %v1848_v43, %v1850_v41  ;;  %v3496_v58 = vld [vmem:[#allocation3 + $0x1a8] sm:$0xff] }
 0x52d   : > { %1863 = vst [vmem:[#allocation3 + $0x388] sm:$0x3] %v1855_v29  ;;  %v3990_v27 = vpack.c.bf16 %v3498_v60, %v3496_v58 }
 0x52e   : > { %v2161_v14 = vpop.permute.xlu0 %2160 }
 0x52f   : > { %3991 = vmatprep.subr.bf16.mxu1 %v3990_v27  ;;  %v2157_v37 = vpop.permute.xlu1 %2156 }
 0x530   : > { %v2166_v51 = vsel %vm2164_vm11, %v2155_v20, %v2157_v37  ;;  %v3495_v39 = vld [vmem:[#allocation3 + $0x1a0] sm:$0xff] }
 0x531   : > { %2174 = vst [vmem:[#allocation3 + $0x388] sm:$0xfc] %v2166_v51  ;;  %v3992_v54 = vpack.c.bf16 %v3497_v7, %v3495_v39 }
 0x532   : > { %v2574_v45 = vpop.permute.xlu0 %2573 }
 0x533   : > { %3993 = vmatpush1.bf16.msra.mxu1 %v3992_v54  ;;  %v2163_v42 = vpop.permute.xlu1 %2162 }
 0x534   : > { %v2168_v35 = vsel %vm2164_vm11, %v2161_v14, %v2163_v42 }
 0x535   : > { %2176 = vst [vmem:[#allocation3 + $0x398] sm:$0xf] %v2168_v35 }
 0x536   : > { %v1846_v12 = vpop.permute.xlu0 %1845 }
 0x537   : > { %v2576_v53 = vpop.permute.xlu1 %2575  ;;  %v1854_v52 = vsel %vm1851_vm15, %v1846_v12, %v1848_v43 }
 0x538   : > { %v2585_v24 = vsel %vm2583_vm8, %v2574_v45, %v2576_v53  ;;  %1862 = vst [vmem:[#allocation3 + $0x380] sm:$0x3] %v1854_v52  ;;  %v3556_v30 = vld [vmem:[#allocation3 + $0x388] sm:$0xff] }
 0x539   : > { %2593 = vst [vmem:[#allocation3 + $0x398] sm:$0xf0] %v2585_v24 }
 0x53a   : > { %v2159_v21 = vpop.permute.xlu0 %2158 }
 0x53b   : > { %v2153_v25 = vpop.permute.xlu1 %2152  ;;  %v2167_v8 = vsel %vm2164_vm11, %v2159_v21, %v2161_v14 }
 0x53c   : > { %v2165_v38 = vsel %vm2164_vm11, %v2153_v25, %v2155_v20  ;;  %2175 = vst [vmem:[#allocation3 + $0x390] sm:$0xf] %v2167_v8 }
 0x53d   : > { %2173 = vst [vmem:[#allocation3 + $0x380] sm:$0xfc] %v2165_v38 }
 0x53e   : > { %v1668_v63 = vpop.permute.xlu0 %1667 }
 0x53f   : > { %v2572_v34 = vpop.permute.xlu1 %2571 }
 0x540   : > { %v2584_v26 = vsel %vm2583_vm8, %v2572_v34, %v2574_v45  ;;  %v3558_v49 = vld [vmem:[#allocation3 + $0x398] sm:$0xff] }
 0x541   : > { %2592 = vst [vmem:[#allocation3 + $0x390] sm:$0xf0] %v2584_v26  ;;  %v4050_v59 = vpack.c.bf16 %v3558_v49, %v3556_v30 }
 0x542   : > { %v1674_v11 = vpop.permute.xlu0 %1673 }
 0x543   : > { %4051 = vmatprep.subr.bf16.mxu0 %v4050_v59  ;;  %v1670_v13 = vpop.permute.xlu1 %1669  ;;  %v3435_v59 = vld [vmem:[%s7274_s7] sm:$0xff] }
 0x544   : > { %v1679_v31 = vsel %vm1677_vm1, %v1668_v63, %v1670_v13  ;;  %v3555_v46 = vld [vmem:[#allocation3 + $0x380] sm:$0xff]  ;;  %v3440_v13 = vld [vmem:[%s7274_s7 + $0x28] sm:$0xff] }
 0x545   : > { %1687 = vst [vmem:[#allocation3 + $0x1c8] sm:$0xc0] %v1679_v31  ;;  %v3439_v31 = vld [vmem:[%s7274_s7 + $0x20] sm:$0xff] }
 0x546   : > { %v1666_v44 = vpop.permute.xlu0 %1665 }
 0x547   : > { %v1676_v50 = vpop.permute.xlu1 %1675  ;;  %v1678_v22 = vsel %vm1677_vm1, %v1666_v44, %v1668_v63 }
 0x548   : > { %v1681_v57 = vsel %vm1677_vm1, %v1674_v11, %v1676_v50  ;;  %v3557_v40 = vld [vmem:[#allocation3 + $0x390] sm:$0xff]  ;;  %1686 = vst [vmem:[#allocation3 + $0x1c0] sm:$0xc0] %v1678_v22 }
 0x549   : > { %v4052_v61 = vpack.c.bf16 %v3557_v40, %v3555_v46  ;;  %v3437_v46 = vld [vmem:[%s7274_s7 + $0x10] sm:$0xff]  ;;  %v3442_v40 = vld [vmem:[%s7274_s7 + $0x38] sm:$0xff] }
 0x54a   : > { %v2580_v16 = vpop.permute.xlu0 %2579 }
 0x54b   : > { %4053 = vmatpush1.bf16.msra.mxu0 %v4052_v61  ;;  %v1672_v23 = vpop.permute.xlu1 %1671  ;;  %v3441_v61 = vld [vmem:[%s7274_s7 + $0x30] sm:$0xff] }
 0x54c   : > { %v1680_v9 = vsel %vm1677_vm1, %v1672_v23, %v1674_v11  ;;  %v3500_v55 = vld [vmem:[#allocation3 + $0x1c8] sm:$0xff] }
 0x54d   : > { %v3994_v28 = vpack.c.bf16 %v1681_v57, %v3500_v55 }
 0x54e   : > { %v2994_v33 = vpop.permute.xlu0 %2993 }
 0x54f   : > { %v2582_v6 = vpop.permute.xlu1 %2581  ;;  %3995 = vmatprep.subr.bf16.mxu1 %v3994_v28  ;;  %v3499_v47 = vld [vmem:[#allocation3 + $0x1c0] sm:$0xff] }
 0x550   : > { %v2587_v48 = vsel %vm2583_vm8, %v2580_v16, %v2582_v6  ;;  %v3996_v62 = vpack.c.bf16 %v1680_v9, %v3499_v47 }
 0x551   : > { %2595 = vst [vmem:[#allocation3 + $0x3a8] sm:$0x3f] %v2587_v48 }
 0x552   : > { %v3000_v17 = vpop.permute.xlu0 %2999  ;;  %3997 = vmatpush1.bf16.msra.mxu1 %v3996_v62 }
 0x553   : > { %v2996_v2 = vpop.permute.xlu1 %2995 }
 0x554   : > { %v3005_v1 = vsel %vm3003_vm0, %v2994_v33, %v2996_v2 }
 0x555   : > { %3013 = vst [vmem:[#allocation3 + $0x3a8] sm:$0xc0] %v3005_v1 }
 0x556   : > { %v2578_v15 = vpop.permute.xlu0 %2577 }
 0x557   : > { %v3002_v5 = vpop.permute.xlu1 %3001  ;;  %v2586_v3 = vsel %vm2583_vm8, %v2578_v15, %v2580_v16 }
 0x558   : > { %v3007_v36 = vsel %vm3003_vm0, %v3000_v17, %v3002_v5  ;;  %2594 = vst [vmem:[#allocation3 + $0x3a0] sm:$0x3f] %v2586_v3 }
 0x55a   : > { %v2998_v32 = vpop.permute.xlu0 %2997 }
 0x55b   : > { %v2992_v56 = vpop.permute.xlu1 %2991  ;;  %v3006_v10 = vsel %vm3003_vm0, %v2998_v32, %v3000_v17 }
 0x55c   : > { %v3004_v0 = vsel %vm3003_vm0, %v2992_v56, %v2994_v33  ;;  %v3560_v18 = vld [vmem:[#allocation3 + $0x3a8] sm:$0xff] }
 0x55d   : > { %3012 = vst [vmem:[#allocation3 + $0x3a0] sm:$0xc0] %v3004_v0  ;;  %v4054_v43 = vpack.c.bf16 %v3007_v36, %v3560_v18  ;;  %v3745_v0 = vld [vmem:[%s7276_s9] sm:$0xff]  ;;  %v3746_v18 = vld [vmem:[%s7276_s9 + $0x8] sm:$0xff] }
 0x55e   : > { %v2019_v4 = vpop.permute.xlu0 %2018 }
 0x55f   : > { %v2017_v19 = vpop.permute.xlu1 %2016  ;;  %4055 = vmatprep.subr.bf16.mxu0 %v4054_v43  ;;  %v3747_v43 = vld [vmem:[%s8346_s27] sm:$0xff] }
 0x560   : > { %v2028_v20 = vsel %vm2026_vm2, %v2017_v19, %v2019_v4  ;;  %v3750_v4 = vld [vmem:[%s8347_s17 + $0x8] sm:$0xff] }
 0x562   : > { %v2025_v41 = vpop.permute.xlu0 %2024 }
 0x563   : > { %v2023_v29 = vpop.permute.xlu1 %2022 }
 0x564   : > { %v2030_v58 = vsel %vm2026_vm2, %v2023_v29, %v2025_v41  ;;  %v3559_v60 = vld [vmem:[#allocation3 + $0x3a0] sm:$0xff] }
 0x565   : > { %2038 = vst [vmem:[#allocation3 + $0x1f8] sm:$0x3] %v2030_v58  ;;  %v4056_v27 = vpack.c.bf16 %v3006_v10, %v3559_v60 }
 0x567   : > { %v2402_v14 = vpop.permute.xlu0 %2401  ;;  %4057 = vmatpush1.bf16.msra.mxu0 %v4056_v27  ;;  %v2400_v37 = vpop.permute.xlu1 %2399 }
 0x568   : > { %v2411_v51 = vsel %vm2409_vm7, %v2400_v37, %v2402_v14 }
 0x569   : > { %2419 = vst [vmem:[#allocation3 + $0x1f8] sm:$0xfc] %v2411_v51 }
 0x56b   : > { %v2021_v39 = vpop.permute.xlu0 %2020  ;;  %v2015_v54 = vpop.permute.xlu1 %2014 }
 0x56c   : > { %v2029_v7 = vsel %vm2026_vm2, %v2021_v39, %v2023_v29  ;;  %v2027_v45 = vsel %vm2026_vm2, %v2015_v54, %v2017_v19  ;;  %v3748_v19 = vld [vmem:[%s8346_s27 + $0x8] sm:$0xff] }
 0x56d   : > { %2037 = vst [vmem:[#allocation3 + $0x1f0] sm:$0x3] %v2029_v7 }
 0x56f   : > { %v3413_v42 = vpop.permute.xlu0 %3412 }
 0x570   : > { %v3506_v12 = vld [vmem:[#allocation3 + $0x1f8] sm:$0xff] }
 0x571   : > { %v2398_v35 = vpop.permute.xlu1 %2397  ;;  %v3998_v52 = vpack.c.bf16 %v3506_v12, %v2028_v20  ;;  %v8348_v20 = vmov 0  }
 0x572   : > { %v2410_v53 = vsel %vm2409_vm7, %v2398_v35, %v2400_v37  ;;  %vm4372_vm7 = vmmov 1  }
 0x573   : > { %2418 = vst [vmem:[#allocation3 + $0x1f0] sm:$0xfc] %v2410_v53  ;;  %v3419_v24 = vpop.permute.xlu0 %3418  ;;  %3999 = vmatprep.subr.bf16.mxu1 %v3998_v52  ;;  %vm4059_vm13 = vmpackc.low %vm527_vm6, %vm4372_vm7  ;;  %vm3812_vm6 = vcmp.gt.f32.partialorder %v3750_v4, 0.5  ;;  %v3749_v53 = vld [vmem:[%s8347_s17] sm:$0xff] }
 0x574   : > { %v3814_v41 = vsel %vm3812_vm6, 1, %v8348_v20  ;;  %vm3811_vm14 = vcmp.gt.f32.partialorder %v3749_v53, 0.5 }
 0x575   : > { %v3415_v21 = vpop.permute.xlu1 %3414  ;;  %v3813_v52 = vsel %vm3811_vm14, 1, %v8348_v20 }
 0x576   : > { %v3424_v25 = vsel %vm3422_vm10, %v3413_v42, %v3415_v21 }
 0x577   : > { %v3411_v8 = vpop.permute.xlu0 %3410 }
 0x578   : > { %v3423_v38 = vsel %vm3422_vm10, %v3411_v8, %v3413_v42 }
 0x579   : > { %v3421_v63 = vpop.permute.xlu1 %3420 }
 0x57a   : > { %v3426_v34 = vsel %vm3422_vm10, %v3419_v24, %v3421_v63  ;;  %v3505_v26 = vld [vmem:[#allocation3 + $0x1f0] sm:$0xff] }
 0x57b   : > { %3434 = vst [vmem:[#allocation3 + $0x3d8] sm:$0x3] %v3426_v34  ;;  %v4000_v30 = vpack.c.bf16 %v3505_v26, %v2027_v45 }
 0x57d   : > { %4001 = vmatpush1.bf16.msra.mxu1 %v4000_v30  ;;  %v3417_v49 = vpop.permute.xlu1 %3416 }
 0x57e   : > { %v3425_v11 = vsel %vm3422_vm10, %v3417_v49, %v3419_v24 }
 0x57f   : > { %3433 = vst [vmem:[#allocation3 + $0x3d0] sm:$0x3] %v3425_v11 }
 0x580   : > { %3656 = vmatmul.mubr.f32.vlgmr.msra.gmra.mrb[0].mxu1 %v3435_v59 }
 0x581   : > { %3661 = vmatprep.mubr.f32.mxu1 %v3440_v13 }
 0x582   : > { %v3566_v44 = vld [vmem:[#allocation3 + $0x3d8] sm:$0x3] }
 0x583   : > { %v4058_v50 = vpack.c.bf16 %v3566_v44, %v3424_v25 }
 0x584   : > { %3662 = vmatmul.mubr.f32.gmra.mrb[2].mxu1 %v3439_v31 }
 0x585   : > { %4060 = vmatprep.subr.msk.bf16.mxu0 %vm4059_vm13, %v4058_v50 }
 0x586   : > { %v3565_v22 = vld [vmem:[#allocation3 + $0x3d0] sm:$0x3] }
 0x587   : > { %v4061_v57 = vpack.c.bf16 %v3565_v22, %v3423_v38 }
 0x588   : > { %v3572_v28 = vpop.permute.xlu0 %3571 }
 0x589   : > { %4063 = vmatpush1.bf16.msk.msra.mxu0 %vm4059_vm13, %v4061_v57 }
 0x58c   : > { %3733 = vmatmul.mubr.f32.vlgmr.msra.gmra.mrb[4].mxu0 %v3437_v46 }
 0x58d   : > { %3930 = vmatprep.mubr.msk.f32.mxu0 %vm8345_vm5, %v3442_v40 }
 0x58e   : > { %v3577_v17 = vpop.permute.xlu1 %3576 }
 0x590   : > { %3739 = vmatmul.mubr.f32.gmra.mrb[6].mxu0 %v3441_v61 }
 0x653   : > { %v3657_v16 = vpop.f32.mrb[0].mxu1 }
 0x654   : > { %v3659_v23 = vpop.f32.mrb[1].mxu1  ;;  %v3658_v33 = vadd.f32 %v3657_v16, %v3572_v28 }
 0x655   : > { %v3660_v6 = vadd.f32 %v3659_v23, %v3572_v28 }
 0x657   : > { %v3663_v9 = vpop.f32.mrb[2].mxu1 }
 0x658   : > { %v3665_v55 = vpop.f32.mrb[3].mxu1  ;;  %v3664_v1 = vadd.f32 %v3663_v9, %v3577_v17 }
 0x659   : > { %v3666_v15 = vadd.f32 %v3665_v55, %v3577_v17 }
 0x65f   : > { %v3734_v48 = vpop.f32.mrb[4].mxu0 }
 0x660   : > { %v7172_v47 = vadd.f32 %v3734_v48, %v3658_v33  ;;  %v3736_v62 = vpop.f32.mrb[5].mxu0 }
 0x661   : > { %v7174_v2 = vadd.f32 %v3736_v62, %v3660_v6 }
 0x663   : > { %v3740_v5 = vpop.f32.mrb[6].mxu0  ;;  %v3751_v3 = vadd.f32 %v7174_v2, %v7172_v47 }
 0x664   : > { %v7178_v36 = vadd.f32 %v3740_v5, %v3664_v1  ;;  %v3742_v32 = vpop.f32.mrb[7].mxu0 }
 0x665   : > { %v7180_v56 = vadd.f32 %v3742_v32, %v3666_v15  ;;  %3752 = vadd.xlane.f32.xlu0 %v3751_v3 }
 0x667   : > { %v3754_v10 = vadd.f32 %v7180_v56, %v7178_v36 }
 0x669   : > { %3755 = vadd.xlane.f32.xlu1 %v3754_v10 }
 0x67a   : > { %3785 = vperm.xlu1 %4201, %v3745_v0  }
 0x67b   : > { %3790 = vperm.xlu0 %4200, %v3746_v18  }
 0x67e   : > { %3799 = vperm.xlu1 %4201, %v3747_v43  }
 0x682   : > { %3804 = vperm.xlu1 %4201, %v3748_v19  }
 0x686   : > { %3819 = vperm.xlu1 %4201, %v3814_v41  }
 0x6f2   : > { %v3753_v29 = vpop.xlane.xlu0 %3752 }
 0x6f3   : > { %v3757_v58 = vmul.f32 0.00390625, %v3753_v29 }
 0x6f5   : > { %v3759_v60 = vsub.f32 %v7172_v47, %v3757_v58  ;;  %v3760_v27 = vsub.f32 %v7174_v2, %v3757_v58 }
 0x6f6   : > { %v3756_v14 = vpop.xlane.xlu1 %3755 }
 0x6f7   : > { %v3763_v37 = vmul.f32 %v3759_v60, %v3759_v60  ;;  %v3764_v51 = vmul.f32 %v3760_v27, %v3760_v27  ;;  %v3758_v39 = vmul.f32 0.00390625, %v3756_v14 }
 0x6f9   : > { %v3761_v7 = vsub.f32 %v7178_v36, %v3758_v39  ;;  %v3762_v54 = vsub.f32 %v7180_v56, %v3758_v39  ;;  %v3767_v45 = vadd.f32 %v3764_v51, %v3763_v37 }
 0x6fa   : > { %v3791_v24 = vpop.permute.xlu0 %3790  ;;  %v3786_v38 = vpop.permute.xlu1 %3785 }
 0x6fb   : > { %v3765_v42 = vmul.f32 %v3761_v7, %v3761_v7  ;;  %v3766_v35 = vmul.f32 %v3762_v54, %v3762_v54  ;;  %3768 = vadd.xlane.f32.xlu0 %v3767_v45 }
 0x6fd   : > { %v3770_v12 = vadd.f32 %v3766_v35, %v3765_v42 }
 0x6fe   : > { %v3800_v30 = vpop.permute.xlu1 %3799 }
 0x6ff   : > { %3771 = vadd.xlane.f32.xlu0 %v3770_v12 }
 0x702   : > { %v3805_v59 = vpop.permute.xlu1 %3804 }
 0x706   : > { %v3820_v16 = vpop.permute.xlu1 %3819 }
 0x707   : > { %vm3822_vm4 = vcmp.eq.s32.totalorder %v3820_v16, 1 }
 0x715   : > { %3816 = vperm.xlu0 %4200, %v3813_v52  }
 0x788   : > { %v3769_v21 = vpop.xlane.xlu0 %3768 }
 0x789   : > { %v3773_v25 = vmul.f32 0.00390625, %v3769_v21 }
 0x78b   : > { %v3775_v8 = vadd.f32 1e-05, %v3773_v25 }
 0x78c   : > { %v3772_v63 = vpop.xlane.xlu0 %3771 }
 0x78d   : > { %4207 = vrsqrt.f32 %v3775_v8  ;;  %v3774_v34 = vmul.f32 0.00390625, %v3772_v63 }
 0x78f   : > { %v3776_v26 = vadd.f32 1e-05, %v3774_v34 }
 0x791   : > { %4209 = vrsqrt.f32 %v3776_v26 }
 0x794   : > { %v3817_v31 = vpop.permute.xlu0 %3816 }
 0x795   : > { %vm3821_vm9 = vcmp.eq.s32.totalorder %v3817_v31, 1 }
 0x797   : > { %v4208_v49 = vpop.eup %4207 }
 0x798   : > { %v3779_v11 = vmul.f32 %v4208_v49, %v3759_v60  ;;  %v3780_v13 = vmul.f32 %v4208_v49, %v3760_v27 }
 0x79a   : > { %v3793_v44 = vmul.f32 %v3786_v38, %v3779_v11  ;;  %v3794_v50 = vmul.f32 %v3786_v38, %v3780_v13 }
 0x79b   : > { %v4210_v22 = vpop.eup %4209 }
 0x79c   : > { %v3781_v57 = vmul.f32 %v4210_v22, %v3761_v7  ;;  %v3782_v46 = vmul.f32 %v4210_v22, %v3762_v54  ;;  %v3807_v40 = vadd.f32 %v3800_v30, %v3793_v44  ;;  %v3808_v61 = vadd.f32 %v3800_v30, %v3794_v50 }
 0x79e   : > { %v3795_v23 = vmul.f32 %v3791_v24, %v3781_v57  ;;  %v3796_v9 = vmul.f32 %v3791_v24, %v3782_v46  ;;  %v3823_v55 = vsel %vm3821_vm9, %v3807_v40, %v7172_v47  ;;  %v3824_v28 = vsel %vm3821_vm9, %v3808_v61, %v7174_v2 }
 0x79f   : > { %v3827_v33 = vmax.f32 %v3823_v55, 0.0  ;;  %v3828_v6 = vmax.f32 %v3824_v28, 0.0 }
 0x7a0   : > { %v3809_v48 = vadd.f32 %v3805_v59, %v3795_v23  ;;  %v3810_v62 = vadd.f32 %v3805_v59, %v3796_v9 }
 0x7a1   : > { %3831 = vst [vmem:[%s406_s5] sm:$0xff] %v3827_v33  ;;  %3832 = vst [vmem:[%s406_s5 + $0x8] sm:$0xff] %v3828_v6 }
 0x7a2   : > { %v3825_v17 = vsel %vm3822_vm4, %v3809_v48, %v7178_v36  ;;  %v3826_v1 = vsel %vm3822_vm4, %v3810_v62, %v7180_v56 }
 0x7a3   : > { %v3829_v47 = vmax.f32 %v3825_v17, 0.0  ;;  %v3830_v2 = vmax.f32 %v3826_v1, 0.0 }
 0x7a5   : > { %3833 = vst [vmem:[%s406_s5 + $0x10] sm:$0xff] %v3829_v47  ;;  %3834 = vst [vmem:[%s406_s5 + $0x18] sm:$0xff] %v3830_v2 }
 0x7a6   : > { %4234 = shalt.err (!%p4231_p3)
}
 0x7a7   : > { %s4235_s6 = scalar_lea.hbm %s7221_s14, 512  ;;  %s4239_s16 = scalar_lea.hbm %s8352_s13, 1024 }
 0x7a8   : > { %p4236_p4 = scmp.ne.s32.totalorder %s7221_s14, %s4235_s6  ;;  %p4240_p9 = scmp.lt.u32.totalorder %s7221_s14, %s8352_s13 }
 0x7a9   : > { %p4241_p10 = scmp.lt.u32.totalorder %s4239_s16, %s4235_s6  ;;  %p4243_p12 = scmp.lt.u32.totalorder %s4235_s6, %s7221_s14 }
 0x7aa   : > { %p4237_p7 = pnand %p4236_p4, %p4478_p5 }
 0x7ab   : > { %p4242_p11 = por %p4241_p10, %p4240_p9 }
 0x7ac   : > { %p4238_p8 = pneg %p4237_p7 }
 0x7ad   : > { %p4244_p13 = por %p4243_p12, %p4242_p11 }
 0x7af   : > { %p4245_p0 = pnand %p4244_p13, %p4238_p8 }
 0x7b1   : > { %4248 = shalt.err (!%p4245_p0)
}
 0x7b2   : > { %s4374_s20 = smov 256   ;;  %s8353_s19 = smov 16  }
 0x7b3   : > { %4072 = dma.vmem_to_hbm [thread:$0]  (%p4478_p5), %s7216_s10, 512, %s7221_s14, %s7225_s30, %s4374_s20, %s4374_s20, %s8353_s19  }
 0x7b4 PF: > { %s8354_s28 = sld [smem:[#allocation10_spill]]  ;;  %s8355_s26 = sld [smem:[#allocation7_spill]] }
 0x7ba   : > { %p4078_p1 = scmp.ge.s32.totalorder %s8354_s28, 2  ;;  %s3864_s0 = sand.u32 1, %s8355_s26  }
 0x7bb   : > { %s3865_s2 = scalar_lea.sflag [#allocation5], %s3864_s0 }
 0x7bc   : > { %p4075_p2 = pnand %p4078_p1, %p4482_p6 }
 0x7be   : > { %4266 = dma.done.wait (!%p4075_p2), %s3865_s2, 512  }
 0x7bf   : > { %4268 = vsyncadd (!%p4075_p2), %s3865_s2, 4294966784  ;;  %s8357_s24 = sld [smem:[#allocation12_spill]]  ;;  %s8358_s21 = sld [smem:[#allocation8_spill]] }
 0x7c0   : > { %s8359_s22 = sld [smem:[#allocation9_spill]]  ;;  %s8360_s23 = sld [smem:[#allocation13_spill]] }
 0x7c5   : > { %p22_p3 = scmp.ge.s32.totalorder %s8357_s24, 4  }
 0x7c7   :  { %24 = sbr.rel (!%p22_p3) target bundleno = 14 (0xe), region = 108 }
 0x7ce   :  { %3870 = vsyncpa [#allocation5], 1 }
 0x7cf   :  { %3872 = vsyncpa [#allocation5 + $0x1], 1 }

</bundles_post_ra>
